<compile_context>
chip_gen: v6e
topology: v6e:2x2x1
jax: 0.10.0
libtpu: 0.0.40
codegen_flags: <defaults>
</compile_context>

<pallas_src>
import jax
import jax.numpy as jnp
from jax import lax
from jax.experimental import pallas as pl
from jax.experimental.pallas import tpu as pltpu

_NEG_SLOPE = 0.01  # torch.nn.LeakyReLU default


def _leaky_relu(x):
    return jnp.where(x >= 0.0, x, _NEG_SLOPE * x)


def _boxq_kernel(obs_ref, act_ref, w1o_ref, w1a_ref, b1_ref, w2_ref, b2_ref,
                 w3_ref, out_ref):
    """One batch tile of the critic MLP.

    obs_ref : (TB, obs_dim)      act_ref : (TB, act_dim)    [weight dtype]
    w1o_ref : (obs_dim, Hp)      w1a_ref : (act_dim, Hp)    b1_ref: (1, Hp) f32
    w2_ref  : (Hp, Hp)           b2_ref  : (1, Hp) f32
    w3_ref  : (1, Hp)            (final layer as a row; no bias)
    out_ref : (1, 1, TB)         (batch on the lane axis -> unmasked stores)
    """
    w1o = w1o_ref[...]
    w1a = w1a_ref[...]
    w2 = w2_ref[...]
    w3 = w3_ref[...]

    # Layer 1: split-K over [obs | act] (the concat is never materialized).
    # (Fusing the two tiny-K dots into one via an in-VMEM concat would halve the
    #  MXU push count but routes through the XLU when obs_dim isn't lane-aligned;
    #  only worth doing if profiling shows layer 1 on the critical path.)
    h1 = (jnp.dot(obs_ref[...].astype(w1o.dtype), w1o,
                  preferred_element_type=jnp.float32)
          + jnp.dot(act_ref[...].astype(w1a.dtype), w1a,
                    preferred_element_type=jnp.float32)
          + b1_ref[...].astype(jnp.float32))
    h1 = _leaky_relu(h1)

    # Layer 2 (dominant FLOPs): weight-dtype operands, f32 accumulation.
    h2 = (jnp.dot(h1.astype(w2.dtype), w2, preferred_element_type=jnp.float32)
          + b2_ref[...].astype(jnp.float32))
    h2 = _leaky_relu(h2)

    # Layer 3 (H -> 1, no bias), computed as w3_row @ h2^T so the result is a
    # lane-dense (1, TB) row (batch on lanes), not a masked (TB, 1) column.
    # Operands stay in the weight dtype; accumulation is f32.
    q = lax.dot_general(
        w3, h2.astype(w3.dtype),
        dimension_numbers=(((1,), (1,)), ((), ())),
        preferred_element_type=jnp.float32)           # (1, TB)
    out_ref[...] = q[None].astype(out_ref.dtype)      # (1, 1, TB)


def _round_up(x, m):
    return ((x + m - 1) // m) * m


def boxq_forward(observation, action, params, *, block_b=2048,
                 weight_dtype=jnp.bfloat16):
    """observation: (B, obs_dim), action: (B, act_dim) -> q: (B,)"""
    w1, b1, w2, b2, w3 = params
    B, obs_dim = observation.shape
    act_dim = action.shape[-1]
    H = w1.shape[1]
    w_dt = jnp.dtype(weight_dtype)
    a_bytes = w_dt.itemsize

    # --- Weight prep (tiny, one-time): split W1, pad H to a multiple of 256 so
    # the dominant (TB,H)@(H,H) matmul maps onto whole 256x256 MXU passes, and
    # cast matmul weights to the MXU dtype.  Zero padding is exact: padded h1/h2
    # columns are 0 and w3's padded entries are 0.
    hp = _round_up(H, 256)
    pad_h = ((0, 0), (0, hp - H))
    w1o = jnp.pad(w1[:obs_dim], pad_h).astype(w_dt)        # (obs_dim, Hp)
    w1a = jnp.pad(w1[obs_dim:], pad_h).astype(w_dt)        # (act_dim, Hp)
    w2p = jnp.pad(w2, ((0, hp - H), (0, hp - H))).astype(w_dt)   # (Hp, Hp)
    w3r = jnp.pad(w3.reshape(1, H), pad_h).astype(w_dt)    # (1, Hp)
    b1r = jnp.pad(b1.reshape(1, H), pad_h).astype(jnp.float32)   # bias add stays f32
    b2r = jnp.pad(b2.reshape(1, H), pad_h).astype(jnp.float32)

    # Streamed activations in the weight dtype (halves HBM bytes, native MXU
    # path); accumulation / bias / LeakyReLU stay f32 inside the kernel.
    obs = observation.astype(w_dt)
    act = action.astype(w_dt)

    # --- Batch tile: multiple of 256 (MXU + lane-dense output alignment), at
    # least 2 grid steps when B allows it (v7x megacore), capped by block_b and
    # by a VMEM budget that fits every generation's scoped/physical limits.
    block_b = _round_up(max(int(block_b), 256), 256)
    tb = min(block_b, max(256, _round_up(-(-B // 2), 256)))

    def vmem_est(t):
        stream = 2 * t * (obs_dim + act_dim) * a_bytes            # dbl-buffered obs/act
        out_b = 2 * t * 4                                         # dbl-buffered (1,1,t) f32
        wts = 2 * ((obs_dim + act_dim + hp + 1) * hp * a_bytes    # weights (conservative:
                   + 2 * hp * 4)                                  #  counted double-buffered)
        interm = 2 * t * hp * 4                                   # h1/h2 live f32 values
        return stream + out_b + wts + interm

    while tb > 256 and vmem_est(tb) > (32 << 20):
        tb -= 256
    vmem_limit = min(max(int(vmem_est(tb) * 1.5) + (1 << 20), 32 << 20), 48 << 20)

    nb = -(-B // tb)                    # cdiv
    bp = nb * tb
    if bp != B:                         # zero-pad batch to whole tiles
        obs = jnp.pad(obs, ((0, bp - B), (0, 0)))
        act = jnp.pad(act, ((0, bp - B), (0, 0)))

    flops = 2 * bp * hp * (obs_dim + act_dim + hp + 1)
    bytes_accessed = int(
        obs.size * a_bytes + act.size * a_bytes
        + (obs_dim + act_dim + hp + 1) * hp * a_bytes + 2 * hp * 4
        + bp * 4)

    def run(weight_buffering):
        # Resident weights: constant index maps; optionally single-buffered.
        wkw = {} if weight_buffering is None else {"pipeline_mode": weight_buffering}

        def wspec(shape):
            return pl.BlockSpec(shape, lambda i: (0,) * len(shape), **wkw)

        out = pl.pallas_call(
            _boxq_kernel,
            out_shape=jax.ShapeDtypeStruct((nb, 1, tb), jnp.float32),
            grid=(nb,),
            in_specs=[
                pl.BlockSpec((tb, obs_dim), lambda i: (i, 0)),   # streamed activations
                pl.BlockSpec((tb, act_dim), lambda i: (i, 0)),
                wspec((obs_dim, hp)),
                wspec((act_dim, hp)),
                wspec((1, hp)),
                wspec((hp, hp)),
                wspec((1, hp)),
                wspec((1, hp)),
            ],
            out_specs=pl.BlockSpec((1, 1, tb), lambda i: (i, 0, 0)),
            compiler_params=pltpu.CompilerParams(
                dimension_semantics=("parallel",),
                vmem_limit_bytes=vmem_limit),
            cost_estimate=pl.CostEstimate(
                flops=int(flops), transcendentals=0,
                bytes_accessed=bytes_accessed),
        )(obs, act, w1o, w1a, b1r, w2p, b2r, w3r)
        return jax.block_until_ready(out)

    try:
        out = run(pl.Buffered(1))       # single-buffer the resident weights
    except Exception:
        # pipeline_mode on the grid-pipelined TPU path varies by jax version;
        # fall back to default (double-buffered) weights.
        out = run(None)

    return out.reshape(-1)[:B]          # [..., 0] squeeze, matching torch


def init_params(key, obs_dim, act_dim, hidden):
    """Deterministic synthetic init (torch-Linear-like uniform fan-in scaling).

    Weights are stored (in_features, out_features), i.e. transposed vs torch.
    """
    d_in = obs_dim + act_dim
    k1, k2, k3, k4, k5 = jax.random.split(key, 5)

    def u(k, shape, fan_in):
        bound = 1.0 / jnp.sqrt(fan_in)
        return jax.random.uniform(k, shape, jnp.float32, -bound, bound)

    w1 = u(k1, (d_in, hidden), d_in)
    b1 = u(k2, (1, hidden), d_in)
    w2 = u(k3, (hidden, hidden), hidden)
    b2 = u(k4, (1, hidden), hidden)
    w3 = u(k5, (hidden, 1), hidden)      # final layer: bias=False
    return (w1, b1, w2, b2, w3)


def _reference(observation, action, params, compute_dtype=jnp.float32):
    """Pure-JAX reference. compute_dtype mirrors the kernel's MXU operand dtype
    (accumulation always f32), so it matches both the f32 and bf16 paths."""
    w1, b1, w2, b2, w3 = params
    dt = jnp.dtype(compute_dtype)
    x = jnp.concatenate([observation, action], axis=-1).astype(dt)
    h1 = jnp.dot(x, w1.astype(dt), preferred_element_type=jnp.float32)
    h1 = h1 + b1.reshape(1, -1)
    h1 = jnp.where(h1 >= 0, h1, _NEG_SLOPE * h1)
    h2 = jnp.dot(h1.astype(dt), w2.astype(dt), preferred_element_type=jnp.float32)
    h2 = h2 + b2.reshape(1, -1)
    h2 = jnp.where(h2 >= 0, h2, _NEG_SLOPE * h2)
    q = jnp.dot(h2.astype(dt), w3.astype(dt), preferred_element_type=jnp.float32)
    return q[..., 0]


if __name__ == "__main__":
    key = jax.random.PRNGKey(0)
    k_obs, k_act, k_par, k_obs2, k_act2 = jax.random.split(key, 5)

    B, obs_dim, act_dim, hidden = 8, 16, 8, 32
    observation = jax.random.normal(k_obs, (B, obs_dim), jnp.float32)
    action = jax.random.normal(k_act, (B, act_dim), jnp.float32)
    params = init_params(k_par, obs_dim, act_dim, hidden)

    # f32-weight path: tight semantics check against the torch-equivalent
    # f32 reference.
    q32 = jax.block_until_ready(
        boxq_forward(observation, action, params, weight_dtype=jnp.float32))
    q32_ref = _reference(observation, action, params)
    assert q32.shape == (B,), q32.shape
    assert jnp.allclose(q32, q32_ref, atol=1e-4, rtol=1e-4), (q32, q32_ref)

    # Default bf16-weight path: check against the reference with matching casts
    # (bf16 MXU operands, f32 accumulation).
    qbf = jax.block_until_ready(boxq_forward(observation, action, params))
    qbf_ref = _reference(observation, action, params, compute_dtype=jnp.bfloat16)
    assert qbf.shape == (B,), qbf.shape
    assert jnp.allclose(qbf, qbf_ref, atol=2e-2, rtol=2e-2), (qbf, qbf_ref)

    # Exercise the multi-block grid + batch-padding path (nb > 1).
    B2 = 300
    observation2 = jax.random.normal(k_obs2, (B2, obs_dim), jnp.float32)
    action2 = jax.random.normal(k_act2, (B2, act_dim), jnp.float32)
    q2 = jax.block_until_ready(
        boxq_forward(observation2, action2, params, block_b=256))
    q2_ref = _reference(observation2, action2, params,
                        compute_dtype=jnp.bfloat16)
    assert q2.shape == (B2,), q2.shape
    assert jnp.allclose(q2, q2_ref, atol=2e-2, rtol=2e-2), (q2, q2_ref)

    print("KERNEL_OK")
</pallas_src>

<mosaic_0001>
module attributes {stable_mosaic.version = 11 : i64} {
  func.func @_boxq_kernel(%arg0: i32, %arg1: memref<256x16xf32, #tpu.memory_space<vmem>>, %arg2: memref<256x8xf32, #tpu.memory_space<vmem>>, %arg3: memref<16x256xf32, #tpu.memory_space<vmem>>, %arg4: memref<8x256xf32, #tpu.memory_space<vmem>>, %arg5: memref<1x256xf32, #tpu.memory_space<vmem>>, %arg6: memref<256x256xf32, #tpu.memory_space<vmem>>, %arg7: memref<1x256xf32, #tpu.memory_space<vmem>>, %arg8: memref<1x256xf32, #tpu.memory_space<vmem>>, %arg9: memref<1x1x256xf32, #tpu.memory_space<vmem>>) attributes {dimension_semantics = [#tpu.dimension_semantics<parallel>], iteration_bounds = array<i64: 1>, scalar_prefetch = 0 : i64, scratch_operands = 0 : i64, tpu.core_type = #tpu.core_type<tc>, window_params = [{transform_indices = @transform_0, window_bounds = array<i64: 256, 16>}, {transform_indices = @transform_1, window_bounds = array<i64: 256, 8>}, {pipeline_mode = #tpu.pipeline_mode<synchronous>, transform_indices = @transform_2, window_bounds = array<i64: 16, 256>}, {pipeline_mode = #tpu.pipeline_mode<synchronous>, transform_indices = @transform_3, window_bounds = array<i64: 8, 256>}, {pipeline_mode = #tpu.pipeline_mode<synchronous>, transform_indices = @transform_4, window_bounds = array<i64: 1, 256>}, {pipeline_mode = #tpu.pipeline_mode<synchronous>, transform_indices = @transform_5, window_bounds = array<i64: 256, 256>}, {pipeline_mode = #tpu.pipeline_mode<synchronous>, transform_indices = @transform_6, window_bounds = array<i64: 1, 256>}, {pipeline_mode = #tpu.pipeline_mode<synchronous>, transform_indices = @transform_7, window_bounds = array<i64: 1, 256>}, {transform_indices = @transform_8, window_bounds = array<i64: 1, 1, 256>}]} {
    %c0 = arith.constant 0 : index
    %c0_0 = arith.constant 0 : index
    %0 = vector.load %arg3[%c0, %c0_0] : memref<16x256xf32, #tpu.memory_space<vmem>>, vector<16x256xf32>
    %c0_1 = arith.constant 0 : index
    %c0_2 = arith.constant 0 : index
    %1 = vector.load %arg4[%c0_1, %c0_2] : memref<8x256xf32, #tpu.memory_space<vmem>>, vector<8x256xf32>
    %c0_3 = arith.constant 0 : index
    %c0_4 = arith.constant 0 : index
    %2 = vector.load %arg6[%c0_3, %c0_4] : memref<256x256xf32, #tpu.memory_space<vmem>>, vector<256x256xf32>
    %c0_5 = arith.constant 0 : index
    %c0_6 = arith.constant 0 : index
    %3 = vector.load %arg8[%c0_5, %c0_6] : memref<1x256xf32, #tpu.memory_space<vmem>>, vector<1x256xf32>
    %c0_7 = arith.constant 0 : index
    %c0_8 = arith.constant 0 : index
    %4 = vector.load %arg1[%c0_7, %c0_8] : memref<256x16xf32, #tpu.memory_space<vmem>>, vector<256x16xf32>
    %cst = arith.constant dense<0.000000e+00> : vector<256x256xf32>
    %5 = tpu.matmul %4, %0, %cst {dimension_numbers = #tpu.dot_dimension_numbers<[1], [0], [0], [1], [0, 0, 1, 1], [], []>} : vector<256x16xf32>, vector<16x256xf32>, vector<256x256xf32> -> vector<256x256xf32>
    %c0_9 = arith.constant 0 : index
    %c0_10 = arith.constant 0 : index
    %6 = vector.load %arg2[%c0_9, %c0_10] : memref<256x8xf32, #tpu.memory_space<vmem>>, vector<256x8xf32>
    %cst_11 = arith.constant dense<0.000000e+00> : vector<256x256xf32>
    %7 = tpu.matmul %6, %1, %cst_11 {dimension_numbers = #tpu.dot_dimension_numbers<[1], [0], [0], [1], [0, 0, 1, 1], [], []>} : vector<256x8xf32>, vector<8x256xf32>, vector<256x256xf32> -> vector<256x256xf32>
    %8 = arith.addf %5, %7 : vector<256x256xf32>
    %c0_12 = arith.constant 0 : index
    %c0_13 = arith.constant 0 : index
    %9 = vector.load %arg5[%c0_12, %c0_13] : memref<1x256xf32, #tpu.memory_space<vmem>>, vector<1x256xf32>
    %10 = vector.broadcast %9 : vector<1x256xf32> to vector<256x256xf32>
    %11 = arith.addf %8, %10 : vector<256x256xf32>
    %cst_14 = arith.constant 0.000000e+00 : f32
    %12 = vector.broadcast %cst_14 : f32 to vector<256x256xf32>
    %13 = arith.cmpf oge, %11, %12 : vector<256x256xf32>
    %cst_15 = arith.constant 0.00999999977 : f32
    %14 = vector.broadcast %cst_15 : f32 to vector<256x256xf32>
    %15 = arith.mulf %14, %11 : vector<256x256xf32>
    %16 = arith.select %13, %11, %15 : vector<256x256xi1>, vector<256x256xf32>
    %cst_16 = arith.constant dense<0.000000e+00> : vector<256x256xf32>
    %17 = tpu.matmul %16, %2, %cst_16 {dimension_numbers = #tpu.dot_dimension_numbers<[1], [0], [0], [1], [0, 0, 1, 1], [], []>} : vector<256x256xf32>, vector<256x256xf32>, vector<256x256xf32> -> vector<256x256xf32>
    %c0_17 = arith.constant 0 : index
    %c0_18 = arith.constant 0 : index
    %18 = vector.load %arg7[%c0_17, %c0_18] : memref<1x256xf32, #tpu.memory_space<vmem>>, vector<1x256xf32>
    %19 = vector.broadcast %18 : vector<1x256xf32> to vector<256x256xf32>
    %20 = arith.addf %17, %19 : vector<256x256xf32>
    %cst_19 = arith.constant 0.000000e+00 : f32
    %21 = vector.broadcast %cst_19 : f32 to vector<256x256xf32>
    %22 = arith.cmpf oge, %20, %21 : vector<256x256xf32>
    %cst_20 = arith.constant 0.00999999977 : f32
    %23 = vector.broadcast %cst_20 : f32 to vector<256x256xf32>
    %24 = arith.mulf %23, %20 : vector<256x256xf32>
    %25 = arith.select %22, %20, %24 : vector<256x256xi1>, vector<256x256xf32>
    %cst_21 = arith.constant dense<0.000000e+00> : vector<1x256xf32>
    %26 = tpu.matmul %3, %25, %cst_21 {dimension_numbers = #tpu.dot_dimension_numbers<[1], [1], [0], [0], [0, 0, 1, 0], [], []>} : vector<1x256xf32>, vector<256x256xf32>, vector<1x256xf32> -> vector<1x256xf32>
    %27 = vector.shape_cast %26 : vector<1x256xf32> to vector<1x1x256xf32>
    %c0_22 = arith.constant 0 : index
    %c0_23 = arith.constant 0 : index
    %c0_24 = arith.constant 0 : index
    %28 = vector.load %arg9[%c0_22, %c0_23, %c0_24] : memref<1x1x256xf32, #tpu.memory_space<vmem>>, vector<1x1x256xf32>
    tpu.vector_store %arg9[%c0_22, %c0_23, %c0_24], %27 {strides = array<i32>} : memref<1x1x256xf32, #tpu.memory_space<vmem>>, vector<1x1x256xf32>,
    return
  }
  func.func @transform_0(%arg0: i32) -> (i32, i32) {
    %c0_i32 = arith.constant 0 : i32
    %c0_i32_0 = arith.constant 0 : i32
    return %arg0, %c0_i32 : i32, i32
  }
  func.func @transform_1(%arg0: i32) -> (i32, i32) {
    %c0_i32 = arith.constant 0 : i32
    %c0_i32_0 = arith.constant 0 : i32
    return %arg0, %c0_i32 : i32, i32
  }
  func.func @transform_2(%arg0: i32) -> (i32, i32) {
    %c0_i32 = arith.constant 0 : i32
    %c0_i32_0 = arith.constant 0 : i32
    %c0_i32_1 = arith.constant 0 : i32
    return %c0_i32, %c0_i32_0 : i32, i32
  }
  func.func @transform_3(%arg0: i32) -> (i32, i32) {
    %c0_i32 = arith.constant 0 : i32
    %c0_i32_0 = arith.constant 0 : i32
    %c0_i32_1 = arith.constant 0 : i32
    return %c0_i32, %c0_i32_0 : i32, i32
  }
  func.func @transform_4(%arg0: i32) -> (i32, i32) {
    %c0_i32 = arith.constant 0 : i32
    %c0_i32_0 = arith.constant 0 : i32
    %c0_i32_1 = arith.constant 0 : i32
    return %c0_i32, %c0_i32_0 : i32, i32
  }
  func.func @transform_5(%arg0: i32) -> (i32, i32) {
    %c0_i32 = arith.constant 0 : i32
    %c0_i32_0 = arith.constant 0 : i32
    %c0_i32_1 = arith.constant 0 : i32
    return %c0_i32, %c0_i32_0 : i32, i32
  }
  func.func @transform_6(%arg0: i32) -> (i32, i32) {
    %c0_i32 = arith.constant 0 : i32
    %c0_i32_0 = arith.constant 0 : i32
    %c0_i32_1 = arith.constant 0 : i32
    return %c0_i32, %c0_i32_0 : i32, i32
  }
  func.func @transform_7(%arg0: i32) -> (i32, i32) {
    %c0_i32 = arith.constant 0 : i32
    %c0_i32_0 = arith.constant 0 : i32
    %c0_i32_1 = arith.constant 0 : i32
    return %c0_i32, %c0_i32_0 : i32, i32
  }
  func.func @transform_8(%arg0: i32) -> (i32, i32, i32) {
    %c0_i32 = arith.constant 0 : i32
    %c0_i32_0 = arith.constant 0 : i32
    %c0_i32_1 = arith.constant 0 : i32
    return %arg0, %c0_i32, %c0_i32_0 : i32, i32, i32
  }
}

module attributes {stable_mosaic.version = 11 : i64} {
  func.func @_boxq_kernel(%arg0: i32, %arg1: memref<256x16xf32, #tpu.memory_space<vmem>>, %arg2: memref<256x8xf32, #tpu.memory_space<vmem>>, %arg3: memref<16x256xf32, #tpu.memory_space<vmem>>, %arg4: memref<8x256xf32, #tpu.memory_space<vmem>>, %arg5: memref<1x256xf32, #tpu.memory_space<vmem>>, %arg6: memref<256x256xf32, #tpu.memory_space<vmem>>, %arg7: memref<1x256xf32, #tpu.memory_space<vmem>>, %arg8: memref<1x256xf32, #tpu.memory_space<vmem>>, %arg9: memref<1x1x256xf32, #tpu.memory_space<vmem>>) attributes {dimension_semantics = [#tpu.dimension_semantics<parallel>], iteration_bounds = array<i64: 1>, scalar_prefetch = 0 : i64, scratch_operands = 0 : i64, tpu.core_type = #tpu.core_type<tc>, window_params = [{transform_indices = @transform_0, window_bounds = array<i64: 256, 16>}, {transform_indices = @transform_1, window_bounds = array<i64: 256, 8>}, {pipeline_mode = #tpu.pipeline_mode<synchronous>, transform_indices = @transform_2, window_bounds = array<i64: 16, 256>}, {pipeline_mode = #tpu.pipeline_mode<synchronous>, transform_indices = @transform_3, window_bounds = array<i64: 8, 256>}, {pipeline_mode = #tpu.pipeline_mode<synchronous>, transform_indices = @transform_4, window_bounds = array<i64: 1, 256>}, {pipeline_mode = #tpu.pipeline_mode<synchronous>, transform_indices = @transform_5, window_bounds = array<i64: 256, 256>}, {pipeline_mode = #tpu.pipeline_mode<synchronous>, transform_indices = @transform_6, window_bounds = array<i64: 1, 256>}, {pipeline_mode = #tpu.pipeline_mode<synchronous>, transform_indices = @transform_7, window_bounds = array<i64: 1, 256>}, {transform_indices = @transform_8, window_bounds = array<i64: 1, 1, 256>}]} {
    %c0 = arith.constant 0 : index
    %c0_0 = arith.constant 0 : index
    %0 = vector.load %arg3[%c0, %c0_0] : memref<16x256xf32, #tpu.memory_space<vmem>>, vector<16x256xf32>
    %c0_1 = arith.constant 0 : index
    %c0_2 = arith.constant 0 : index
    %1 = vector.load %arg4[%c0_1, %c0_2] : memref<8x256xf32, #tpu.memory_space<vmem>>, vector<8x256xf32>
    %c0_3 = arith.constant 0 : index
    %c0_4 = arith.constant 0 : index
    %2 = vector.load %arg6[%c0_3, %c0_4] : memref<256x256xf32, #tpu.memory_space<vmem>>, vector<256x256xf32>
    %c0_5 = arith.constant 0 : index
    %c0_6 = arith.constant 0 : index
    %3 = vector.load %arg8[%c0_5, %c0_6] : memref<1x256xf32, #tpu.memory_space<vmem>>, vector<1x256xf32>
    %c0_7 = arith.constant 0 : index
    %c0_8 = arith.constant 0 : index
    %4 = vector.load %arg1[%c0_7, %c0_8] : memref<256x16xf32, #tpu.memory_space<vmem>>, vector<256x16xf32>
    %cst = arith.constant dense<0.000000e+00> : vector<256x256xf32>
    %5 = tpu.matmul %4, %0, %cst {dimension_numbers = #tpu.dot_dimension_numbers<[1], [0], [0], [1], [0, 0, 1, 1], [], []>} : vector<256x16xf32>, vector<16x256xf32>, vector<256x256xf32> -> vector<256x256xf32>
    %c0_9 = arith.constant 0 : index
    %c0_10 = arith.constant 0 : index
    %6 = vector.load %arg2[%c0_9, %c0_10] : memref<256x8xf32, #tpu.memory_space<vmem>>, vector<256x8xf32>
    %cst_11 = arith.constant dense<0.000000e+00> : vector<256x256xf32>
    %7 = tpu.matmul %6, %1, %cst_11 {dimension_numbers = #tpu.dot_dimension_numbers<[1], [0], [0], [1], [0, 0, 1, 1], [], []>} : vector<256x8xf32>, vector<8x256xf32>, vector<256x256xf32> -> vector<256x256xf32>
    %8 = arith.addf %5, %7 : vector<256x256xf32>
    %c0_12 = arith.constant 0 : index
    %c0_13 = arith.constant 0 : index
    %9 = vector.load %arg5[%c0_12, %c0_13] : memref<1x256xf32, #tpu.memory_space<vmem>>, vector<1x256xf32>
    %10 = vector.broadcast %9 : vector<1x256xf32> to vector<256x256xf32>
    %11 = arith.addf %8, %10 : vector<256x256xf32>
    %cst_14 = arith.constant 0.000000e+00 : f32
    %12 = vector.broadcast %cst_14 : f32 to vector<256x256xf32>
    %13 = arith.cmpf oge, %11, %12 : vector<256x256xf32>
    %cst_15 = arith.constant 0.00999999977 : f32
    %14 = vector.broadcast %cst_15 : f32 to vector<256x256xf32>
    %15 = arith.mulf %14, %11 : vector<256x256xf32>
    %16 = arith.select %13, %11, %15 : vector<256x256xi1>, vector<256x256xf32>
    %cst_16 = arith.constant dense<0.000000e+00> : vector<256x256xf32>
    %17 = tpu.matmul %16, %2, %cst_16 {dimension_numbers = #tpu.dot_dimension_numbers<[1], [0], [0], [1], [0, 0, 1, 1], [], []>} : vector<256x256xf32>, vector<256x256xf32>, vector<256x256xf32> -> vector<256x256xf32>
    %c0_17 = arith.constant 0 : index
    %c0_18 = arith.constant 0 : index
    %18 = vector.load %arg7[%c0_17, %c0_18] : memref<1x256xf32, #tpu.memory_space<vmem>>, vector<1x256xf32>
    %19 = vector.broadcast %18 : vector<1x256xf32> to vector<256x256xf32>
    %20 = arith.addf %17, %19 : vector<256x256xf32>
    %cst_19 = arith.constant 0.000000e+00 : f32
    %21 = vector.broadcast %cst_19 : f32 to vector<256x256xf32>
    %22 = arith.cmpf oge, %20, %21 : vector<256x256xf32>
    %cst_20 = arith.constant 0.00999999977 : f32
    %23 = vector.broadcast %cst_20 : f32 to vector<256x256xf32>
    %24 = arith.mulf %23, %20 : vector<256x256xf32>
    %25 = arith.select %22, %20, %24 : vector<256x256xi1>, vector<256x256xf32>
    %cst_21 = arith.constant dense<0.000000e+00> : vector<1x256xf32>
    %26 = tpu.matmul %3, %25, %cst_21 {dimension_numbers = #tpu.dot_dimension_numbers<[1], [1], [0], [0], [0, 0, 1, 0], [], []>} : vector<1x256xf32>, vector<256x256xf32>, vector<1x256xf32> -> vector<1x256xf32>
    %27 = vector.shape_cast %26 : vector<1x256xf32> to vector<1x1x256xf32>
    %c0_22 = arith.constant 0 : index
    %c0_23 = arith.constant 0 : index
    %c0_24 = arith.constant 0 : index
    %28 = vector.load %arg9[%c0_22, %c0_23, %c0_24] : memref<1x1x256xf32, #tpu.memory_space<vmem>>, vector<1x1x256xf32>
    tpu.vector_store %arg9[%c0_22, %c0_23, %c0_24], %27 {strides = array<i32>} : memref<1x1x256xf32, #tpu.memory_space<vmem>>, vector<1x1x256xf32>,
    return
  }
  func.func @transform_0(%arg0: i32) -> (i32, i32) {
    %c0_i32 = arith.constant 0 : i32
    %c0_i32_0 = arith.constant 0 : i32
    return %arg0, %c0_i32 : i32, i32
  }
  func.func @transform_1(%arg0: i32) -> (i32, i32) {
    %c0_i32 = arith.constant 0 : i32
    %c0_i32_0 = arith.constant 0 : i32
    return %arg0, %c0_i32 : i32, i32
  }
  func.func @transform_2(%arg0: i32) -> (i32, i32) {
    %c0_i32 = arith.constant 0 : i32
    %c0_i32_0 = arith.constant 0 : i32
    %c0_i32_1 = arith.constant 0 : i32
    return %c0_i32, %c0_i32_0 : i32, i32
  }
  func.func @transform_3(%arg0: i32) -> (i32, i32) {
    %c0_i32 = arith.constant 0 : i32
    %c0_i32_0 = arith.constant 0 : i32
    %c0_i32_1 = arith.constant 0 : i32
    return %c0_i32, %c0_i32_0 : i32, i32
  }
  func.func @transform_4(%arg0: i32) -> (i32, i32) {
    %c0_i32 = arith.constant 0 : i32
    %c0_i32_0 = arith.constant 0 : i32
    %c0_i32_1 = arith.constant 0 : i32
    return %c0_i32, %c0_i32_0 : i32, i32
  }
  func.func @transform_5(%arg0: i32) -> (i32, i32) {
    %c0_i32 = arith.constant 0 : i32
    %c0_i32_0 = arith.constant 0 : i32
    %c0_i32_1 = arith.constant 0 : i32
    return %c0_i32, %c0_i32_0 : i32, i32
  }
  func.func @transform_6(%arg0: i32) -> (i32, i32) {
    %c0_i32 = arith.constant 0 : i32
    %c0_i32_0 = arith.constant 0 : i32
    %c0_i32_1 = arith.constant 0 : i32
    return %c0_i32, %c0_i32_0 : i32, i32
  }
  func.func @transform_7(%arg0: i32) -> (i32, i32) {
    %c0_i32 = arith.constant 0 : i32
    %c0_i32_0 = arith.constant 0 : i32
    %c0_i32_1 = arith.constant 0 : i32
    return %c0_i32, %c0_i32_0 : i32, i32
  }
  func.func @transform_8(%arg0: i32) -> (i32, i32, i32) {
    %c0_i32 = arith.constant 0 : i32
    %c0_i32_0 = arith.constant 0 : i32
    %c0_i32_1 = arith.constant 0 : i32
    return %arg0, %c0_i32, %c0_i32_0 : i32, i32, i32
  }
}

</mosaic_0001>

<bundles_post_ra>
// kernel: tpu_custom_call.1
= control target key start
LH: loop header
LB: loop body
LE: loop exit
PB: predicated region body
PF: predicated region fallthrough
CT: control target
= control target key end

     0   :  { %vm165_vm0 = vcmask 64512   ;;  %v1812_v3 = vmov 0.0   ;;  %s2847_s0 = inlined_call_operand.vmem [shape: f32[256,16], index: 0, kind: input, shape index: {}]   ;;  %s2848_s1 = inlined_call_operand.vmem [shape: f32[256,8], index: 1, kind: input, shape index: {}]   ;;  %s2849_s2 = inlined_call_operand.vmem [shape: f32[16,256], index: 2, kind: input, shape index: {}]   ;;  %s2850_s3 = inlined_call_operand.vmem [shape: f32[8,256], index: 3, kind: input, shape index: {}]   ;;  %s2851_s4 = inlined_call_operand.vmem [shape: f32[1,256], index: 4, kind: input, shape index: {}]   ;;  %s2852_s5 = inlined_call_operand.vmem [shape: f32[256,256], index: 5, kind: input, shape index: {}]   ;;  %s2853_s6 = inlined_call_operand.vmem [shape: f32[1,256], index: 6, kind: input, shape index: {}]   ;;  %s2854_s7 = inlined_call_operand.vmem [shape: f32[1,256], index: 7, kind: input, shape index: {}]   ;;  %s2855_s8 = inlined_call_operand.hbm [shape: f32[1,1,256], index: 8, kind: output, shape index: {}]  }
   0x1   :  { %v35_v0 = vld [vmem:[%s2850_s3 + $0x8] sm:$0xff]  ;;  %v34_v1 = vld [vmem:[%s2850_s3] sm:$0xff]  ;;  %422 = vmatprep.mubr.f32.mxu1 %v1812_v3  ;;  %v33_v4 = vld [vmem:[%s2849_s2 + $0x18] sm:$0xff]  ;;  %326 = vmatprep.mubr.f32.mxu0 %v1812_v3 }
   0x2   :  { %v149_v2 = vld [vmem:[%s2848_s1 + $0x80] sm:$0xff]  ;;  %1785 = vmatprep.subr.mxu1 %v35_v0  ;;  %v32_v5 = vld [vmem:[%s2849_s2 + $0x10] sm:$0xff]  ;;  %292 = vmatprep.subr.mxu0 %v35_v0  ;;  %v150_v6 = vld [vmem:[%s2848_s1 + $0x88] sm:$0xff] }
   0x3   :  { %1786 = vmatpush1.msra.mxu1 %v34_v1  ;;  %v31_v7 = vld [vmem:[%s2849_s2 + $0x8] sm:$0xff]  ;;  %v30_v8 = vld [vmem:[%s2849_s2] sm:$0xff]  ;;  %293 = vmatpush1.msra.mxu0 %v34_v1  ;;  %v151_v10 = vld [vmem:[%s2848_s1 + $0x90] sm:$0xff] }
   0x4   :  { %1737 = vmatmul.mubr.msk.f32.vlgmr.msra.gmra.mxu1 %vm165_vm0, %v149_v2  ;;  %644 = vmatprep.subr.mxu1 %v33_v4  ;;  %v133_v9 = vld [vmem:[%s2848_s1] sm:$0xff]  ;;  %v134_v11 = vld [vmem:[%s2848_s1 + $0x8] sm:$0xff]  ;;  %v152_v12 = vld [vmem:[%s2848_s1 + $0x98] sm:$0xff] }
   0x5   :  { %645 = vmatpush1.msra.mxu1 %v32_v5  ;;  %428 = vmatprep.mubr.f32.mxu1 %v1812_v3  ;;  %v135_v13 = vld [vmem:[%s2848_s1 + $0x10] sm:$0xff]  ;;  %v153_v14 = vld [vmem:[%s2848_s1 + $0xa0] sm:$0xff]  ;;  %v136_v15 = vld [vmem:[%s2848_s1 + $0x18] sm:$0xff] }
   0x6   :  { %646 = vmatprep.subr.mxu1 %v31_v7  ;;  %1721 = vmatmul.mubr.msk.f32.vlgmr.msra.gmra.mxu0 %vm165_vm0, %v133_v9 }
   0x7   :  { %647 = vmatpush1.msra.mxu1 %v30_v8  ;;  %332 = vmatprep.mubr.f32.mxu0 %v1812_v3 }
   0x8   :  { %1738 = vmatmul.mubr.msk.f32.gmra.mxu1 %vm165_vm0, %v150_v6 }
   0x9   :  { %434 = vmatprep.mubr.f32.mxu1 %v1812_v3 }
   0xa   :  { %1722 = vmatmul.mubr.msk.f32.gmra.mxu0 %vm165_vm0, %v134_v11 }
   0xb   :  { %338 = vmatprep.mubr.f32.mxu0 %v1812_v3 }
   0xc   :  { %1739 = vmatmul.mubr.msk.f32.gmra.mxu1 %vm165_vm0, %v151_v10 }
   0xd   :  { %440 = vmatprep.mubr.f32.mxu1 %v1812_v3 }
   0xe   :  { %1723 = vmatmul.mubr.msk.f32.gmra.mxu0 %vm165_vm0, %v135_v13 }
   0xf   :  { %344 = vmatprep.mubr.f32.mxu0 %v1812_v3 }
  0x10   :  { %1740 = vmatmul.mubr.msk.f32.gmra.mxu1 %vm165_vm0, %v152_v12 }
  0x11   :  { %446 = vmatprep.mubr.f32.mxu1 %v1812_v3 }
  0x14   :  { %1741 = vmatmul.mubr.msk.f32.gmra.mxu1 %vm165_vm0, %v153_v14 }
  0x15   :  { %13 = vsyncpa [#allocation3], 0  ;;  %452 = vmatprep.mubr.f32.mxu1 %v1812_v3  ;;  %v154_v16 = vld [vmem:[%s2848_s1 + $0xa8] sm:$0xff]  ;;  %1724 = vmatmul.mubr.msk.f32.gmra.mxu0 %vm165_vm0, %v136_v15  ;;  %v137_v17 = vld [vmem:[%s2848_s1 + $0x20] sm:$0xff]  ;;  %vm519_vm1 = vcmask 130048  }
  0x16   :  { %350 = vmatprep.mubr.f32.mxu0 %v1812_v3  ;;  %v155_v18 = vld [vmem:[%s2848_s1 + $0xb0] sm:$0xff]  ;;  %v138_v19 = vld [vmem:[%s2848_s1 + $0x28] sm:$0xff]  ;;  %v156_v20 = vld [vmem:[%s2848_s1 + $0xb8] sm:$0xff] }
  0x17   :  { %v139_v21 = vld [vmem:[%s2848_s1 + $0x30] sm:$0xff]  ;;  %v157_v22 = vld [vmem:[%s2848_s1 + $0xc0] sm:$0xff]  ;;  %v140_v23 = vld [vmem:[%s2848_s1 + $0x38] sm:$0xff] }
  0x18   :  { %1742 = vmatmul.mubr.msk.f32.gmra.mxu1 %vm165_vm0, %v154_v16  ;;  %v158_v24 = vld [vmem:[%s2848_s1 + $0xc8] sm:$0xff]  ;;  %v141_v25 = vld [vmem:[%s2848_s1 + $0x40] sm:$0xff]  ;;  %v159_v26 = vld [vmem:[%s2848_s1 + $0xd0] sm:$0xff] }
  0x19   :  { %458 = vmatprep.mubr.f32.mxu1 %v1812_v3  ;;  %1725 = vmatmul.mubr.msk.f32.gmra.mxu0 %vm165_vm0, %v137_v17  ;;  %v142_v27 = vld [vmem:[%s2848_s1 + $0x48] sm:$0xff]  ;;  %v160_v28 = vld [vmem:[%s2848_s1 + $0xd8] sm:$0xff]  ;;  %v143_v29 = vld [vmem:[%s2848_s1 + $0x50] sm:$0xff] }
  0x1a   :  { %356 = vmatprep.mubr.f32.mxu0 %v1812_v3  ;;  %v161_v30 = vld [vmem:[%s2848_s1 + $0xe0] sm:$0xff]  ;;  %v144_v31 = vld [vmem:[%s2848_s1 + $0x58] sm:$0xff]  ;;  %v162_v32 = vld [vmem:[%s2848_s1 + $0xe8] sm:$0xff] }
  0x1b   :  { %v145_v33 = vld [vmem:[%s2848_s1 + $0x60] sm:$0xff]  ;;  %v163_v34 = vld [vmem:[%s2848_s1 + $0xf0] sm:$0xff]  ;;  %v146_v35 = vld [vmem:[%s2848_s1 + $0x68] sm:$0xff] }
  0x1c   :  { %1743 = vmatmul.mubr.msk.f32.gmra.mxu1 %vm165_vm0, %v155_v18  ;;  %v164_v36 = vld [vmem:[%s2848_s1 + $0xf8] sm:$0xff]  ;;  %v147_v37 = vld [vmem:[%s2848_s1 + $0x70] sm:$0xff]  ;;  %v101_v38 = vld [vmem:[%s2847_s0] sm:$0xff] }
  0x1d   :  { %464 = vmatprep.mubr.f32.mxu1 %v1812_v3  ;;  %1726 = vmatmul.mubr.msk.f32.gmra.mxu0 %vm165_vm0, %v138_v19  ;;  %v148_v39 = vld [vmem:[%s2848_s1 + $0x78] sm:$0xff]  ;;  %v102_v40 = vld [vmem:[%s2847_s0 + $0x8] sm:$0xff]  ;;  %v103_v41 = vld [vmem:[%s2847_s0 + $0x10] sm:$0xff] }
  0x1e   :  { %362 = vmatprep.mubr.f32.mxu0 %v1812_v3  ;;  %v104_v42 = vld [vmem:[%s2847_s0 + $0x18] sm:$0xff]  ;;  %v66_v44 = vld [vmem:[%s2852_s5 + $0xf0] sm:$0xff]  ;;  %v65_v45 = vld [vmem:[%s2852_s5 + $0xe8] sm:$0xff] }
  0x1f   :  { %v67_v43 = vld [vmem:[%s2852_s5 + $0xf8] sm:$0xff]  ;;  %v105_v46 = vld [vmem:[%s2847_s0 + $0x20] sm:$0xff]  ;;  %v62_v49 = vld [vmem:[%s2852_s5 + $0xd0] sm:$0xff] }
  0x20   :  { %1744 = vmatmul.mubr.msk.f32.gmra.mxu1 %vm165_vm0, %v156_v20  ;;  %1153 = vmatprep.subr.mxu0 %v67_v43  ;;  %v64_v47 = vld [vmem:[%s2852_s5 + $0xe0] sm:$0xff]  ;;  %v63_v48 = vld [vmem:[%s2852_s5 + $0xd8] sm:$0xff]  ;;  %v61_v50 = vld [vmem:[%s2852_s5 + $0xc8] sm:$0xff] }
  0x21   :  { %470 = vmatprep.mubr.f32.mxu1 %v1812_v3  ;;  %1727 = vmatmul.mubr.msk.f32.gmra.mxu0 %vm165_vm0, %v139_v21  ;;  %v106_v51 = vld [vmem:[%s2847_s0 + $0x28] sm:$0xff]  ;;  %v60_v52 = vld [vmem:[%s2852_s5 + $0xc0] sm:$0xff]  ;;  %v59_v53 = vld [vmem:[%s2852_s5 + $0xb8] sm:$0xff] }
  0x22   :  { %368 = vmatprep.mubr.f32.mxu0 %v1812_v3  ;;  %1154 = vmatpush1.msra.mxu0 %v66_v44  ;;  %v58_v54 = vld [vmem:[%s2852_s5 + $0xb0] sm:$0xff]  ;;  %v57_v55 = vld [vmem:[%s2852_s5 + $0xa8] sm:$0xff]  ;;  %v56_v57 = vld [vmem:[%s2852_s5 + $0xa0] sm:$0xff] }
  0x23   :  { %1155 = vmatprep.subr.mxu0 %v65_v45  ;;  %v107_v56 = vld [vmem:[%s2847_s0 + $0x30] sm:$0xff]  ;;  %v55_v58 = vld [vmem:[%s2852_s5 + $0x98] sm:$0xff]  ;;  %v53_v60 = vld [vmem:[%s2852_s5 + $0x88] sm:$0xff] }
  0x24   :  { %1745 = vmatmul.mubr.msk.f32.gmra.mxu1 %vm165_vm0, %v157_v22  ;;  %1156 = vmatpush1.msra.mxu0 %v64_v47  ;;  %v54_v59 = vld [vmem:[%s2852_s5 + $0x90] sm:$0xff]  ;;  %v108_v61 = vld [vmem:[%s2847_s0 + $0x38] sm:$0xff]  ;;  %v52_v62 = vld [vmem:[%s2852_s5 + $0x80] sm:$0xff] }
  0x25   :  { %476 = vmatprep.mubr.f32.mxu1 %v1812_v3  ;;  %1728 = vmatmul.mubr.msk.f32.gmra.mxu0 %vm165_vm0, %v140_v23  ;;  %v51_v63 = vld [vmem:[%s2852_s5 + $0x78] sm:$0xff]  ;;  %v50_v0 = vld [vmem:[%s2852_s5 + $0x70] sm:$0xff]  ;;  %v49_v1 = vld [vmem:[%s2852_s5 + $0x68] sm:$0xff] }
  0x26   :  { %374 = vmatprep.mubr.f32.mxu0 %v1812_v3  ;;  %1157 = vmatprep.subr.mxu0 %v63_v48  ;;  %v109_v2 = vld [vmem:[%s2847_s0 + $0x40] sm:$0xff]  ;;  %v47_v5 = vld [vmem:[%s2852_s5 + $0x58] sm:$0xff]  ;;  %v46_v6 = vld [vmem:[%s2852_s5 + $0x50] sm:$0xff] }
  0x27   :  { %1158 = vmatpush1.msra.mxu0 %v62_v49  ;;  %v48_v4 = vld [vmem:[%s2852_s5 + $0x60] sm:$0xff]  ;;  %v45_v7 = vld [vmem:[%s2852_s5 + $0x48] sm:$0xff]  ;;  %v43_v10 = vld [vmem:[%s2852_s5 + $0x38] sm:$0xff] }
  0x28   :  { %1746 = vmatmul.mubr.msk.f32.gmra.mxu1 %vm165_vm0, %v158_v24  ;;  %1159 = vmatprep.subr.mxu0 %v61_v50  ;;  %v110_v8 = vld [vmem:[%s2847_s0 + $0x48] sm:$0xff]  ;;  %v44_v9 = vld [vmem:[%s2852_s5 + $0x40] sm:$0xff]  ;;  %v42_v11 = vld [vmem:[%s2852_s5 + $0x30] sm:$0xff] }
  0x29   :  { %482 = vmatprep.mubr.f32.mxu1 %v1812_v3  ;;  %1729 = vmatmul.mubr.msk.f32.gmra.mxu0 %vm165_vm0, %v141_v25  ;;  %v41_v12 = vld [vmem:[%s2852_s5 + $0x28] sm:$0xff]  ;;  %v111_v13 = vld [vmem:[%s2847_s0 + $0x50] sm:$0xff]  ;;  %v40_v14 = vld [vmem:[%s2852_s5 + $0x20] sm:$0xff] }
  0x2a   :  { %380 = vmatprep.mubr.f32.mxu0 %v1812_v3  ;;  %1160 = vmatpush1.msra.mxu0 %v60_v52  ;;  %v39_v15 = vld [vmem:[%s2852_s5 + $0x18] sm:$0xff]  ;;  %v38_v16 = vld [vmem:[%s2852_s5 + $0x10] sm:$0xff]  ;;  %v37_v17 = vld [vmem:[%s2852_s5 + $0x8] sm:$0xff] }
  0x2b   :  { %1161 = vmatprep.subr.mxu0 %v59_v53  ;;  %v112_v18 = vld [vmem:[%s2847_s0 + $0x58] sm:$0xff]  ;;  %v36_v19 = vld [vmem:[%s2852_s5] sm:$0xff]  ;;  %v98_v21 = vld [vmem:[%s2852_s5 + $0x1f0] sm:$0xff] }
  0x2c   :  { %1747 = vmatmul.mubr.msk.f32.gmra.mxu1 %vm165_vm0, %v159_v26  ;;  %1162 = vmatpush1.msra.mxu0 %v58_v54  ;;  %v99_v20 = vld [vmem:[%s2852_s5 + $0x1f8] sm:$0xff]  ;;  %v97_v22 = vld [vmem:[%s2852_s5 + $0x1e8] sm:$0xff]  ;;  %v113_v23 = vld [vmem:[%s2847_s0 + $0x60] sm:$0xff] }
  0x2d   :  { %488 = vmatprep.mubr.f32.mxu1 %v1812_v3  ;;  %1730 = vmatmul.mubr.msk.f32.gmra.mxu0 %vm165_vm0, %v142_v27  ;;  %v96_v24 = vld [vmem:[%s2852_s5 + $0x1e0] sm:$0xff]  ;;  %v95_v25 = vld [vmem:[%s2852_s5 + $0x1d8] sm:$0xff]  ;;  %v94_v26 = vld [vmem:[%s2852_s5 + $0x1d0] sm:$0xff] }
  0x2e   :  { %386 = vmatprep.mubr.f32.mxu0 %v1812_v3  ;;  %1163 = vmatprep.subr.mxu0 %v57_v55  ;;  %v93_v27 = vld [vmem:[%s2852_s5 + $0x1c8] sm:$0xff]  ;;  %v117_v43 = vld [vmem:[%s2847_s0 + $0x80] sm:$0xff]  ;;  %v79_v45 = vld [vmem:[%s2852_s5 + $0x158] sm:$0xff] }
  0x2f   :  { %1164 = vmatpush1.msra.mxu0 %v56_v57  ;;  %v80_v44 = vld [vmem:[%s2852_s5 + $0x160] sm:$0xff]  ;;  %v77_v47 = vld [vmem:[%s2852_s5 + $0x148] sm:$0xff]  ;;  %v75_v50 = vld [vmem:[%s2852_s5 + $0x138] sm:$0xff] }
  0x30   :  { %1748 = vmatmul.mubr.msk.f32.gmra.mxu1 %vm165_vm0, %v160_v28  ;;  %1165 = vmatprep.subr.mxu0 %v55_v58  ;;  %v114_v28 = vld [vmem:[%s2847_s0 + $0x68] sm:$0xff]  ;;  %v76_v49 = vld [vmem:[%s2852_s5 + $0x140] sm:$0xff]  ;;  %v119_v53 = vld [vmem:[%s2847_s0 + $0x90] sm:$0xff] }
  0x31   :  { %494 = vmatprep.mubr.f32.mxu1 %v1812_v3  ;;  %1731 = vmatmul.mubr.msk.f32.gmra.mxu0 %vm165_vm0, %v143_v29  ;;  %v92_v29 = vld [vmem:[%s2852_s5 + $0x1c0] sm:$0xff]  ;;  %v118_v48 = vld [vmem:[%s2847_s0 + $0x88] sm:$0xff]  ;;  %v71_v55 = vld [vmem:[%s2852_s5 + $0x118] sm:$0xff] }
  0x32   :  { %392 = vmatprep.mubr.f32.mxu0 %v1812_v3  ;;  %1166 = vmatpush1.msra.mxu0 %v54_v59  ;;  %v73_v52 = vld [vmem:[%s2852_s5 + $0x128] sm:$0xff]  ;;  %v72_v54 = vld [vmem:[%s2852_s5 + $0x120] sm:$0xff]  ;;  %v120_v58 = vld [vmem:[%s2847_s0 + $0x98] sm:$0xff] }
  0x33   :  { %1167 = vmatprep.subr.mxu0 %v53_v60  ;;  %v69_v57 = vld [vmem:[%s2852_s5 + $0x108] sm:$0xff]  ;;  %v68_v59 = vld [vmem:[%s2852_s5 + $0x100] sm:$0xff] }
  0x34   :  { %1749 = vmatmul.mubr.msk.f32.gmra.mxu1 %vm165_vm0, %v161_v30  ;;  %1168 = vmatpush1.msra.mxu0 %v52_v62  ;;  %v91_v30 = vld [vmem:[%s2852_s5 + $0x1b8] sm:$0xff]  ;;  %v121_v60 = vld [vmem:[%s2847_s0 + $0xa0] sm:$0xff]  ;;  %v123_v62 = vld [vmem:[%s2847_s0 + $0xb0] sm:$0xff] }
  0x35   :  { %500 = vmatprep.mubr.f32.mxu1 %v1812_v3  ;;  %1732 = vmatmul.mubr.msk.f32.gmra.mxu0 %vm165_vm0, %v144_v31  ;;  %v90_v31 = vld [vmem:[%s2852_s5 + $0x1b0] sm:$0xff] }
  0x36   :  { %398 = vmatprep.mubr.f32.mxu0 %v1812_v3  ;;  %1169 = vmatprep.subr.mxu0 %v51_v63  ;;  %v124_v63 = vld [vmem:[%s2847_s0 + $0xb8] sm:$0xff] }
  0x37   :  { %1170 = vmatpush1.msra.mxu0 %v50_v0  ;;  %v125_v0 = vld [vmem:[%s2847_s0 + $0xc0] sm:$0xff] }
  0x38   :  { %1750 = vmatmul.mubr.msk.f32.gmra.mxu1 %vm165_vm0, %v162_v32  ;;  %1171 = vmatprep.subr.mxu0 %v49_v1  ;;  %v89_v32 = vld [vmem:[%s2852_s5 + $0x1a8] sm:$0xff] }
  0x39   :  { %506 = vmatprep.mubr.f32.mxu1 %v1812_v3  ;;  %1733 = vmatmul.mubr.msk.f32.gmra.mxu0 %vm165_vm0, %v145_v33  ;;  %v115_v33 = vld [vmem:[%s2847_s0 + $0x70] sm:$0xff]  ;;  %v126_v1 = vld [vmem:[%s2847_s0 + $0xc8] sm:$0xff] }
  0x3a   :  { %404 = vmatprep.mubr.f32.mxu0 %v1812_v3  ;;  %1172 = vmatpush1.msra.mxu0 %v48_v4  ;;  %v128_v4 = vld [vmem:[%s2847_s0 + $0xd8] sm:$0xff] }
  0x3b   :  { %1173 = vmatprep.subr.mxu0 %v47_v5  ;;  %v129_v5 = vld [vmem:[%s2847_s0 + $0xe0] sm:$0xff] }
  0x3c   :  { %1751 = vmatmul.mubr.msk.f32.gmra.mxu1 %vm165_vm0, %v163_v34  ;;  %1174 = vmatpush1.msra.mxu0 %v46_v6  ;;  %v88_v34 = vld [vmem:[%s2852_s5 + $0x1a0] sm:$0xff]  ;;  %v130_v6 = vld [vmem:[%s2847_s0 + $0xe8] sm:$0xff] }
  0x3d   :  { %512 = vmatprep.mubr.f32.mxu1 %v1812_v3  ;;  %1734 = vmatmul.mubr.msk.f32.gmra.mxu0 %vm165_vm0, %v146_v35  ;;  %v87_v35 = vld [vmem:[%s2852_s5 + $0x198] sm:$0xff] }
  0x3e   :  { %410 = vmatprep.mubr.f32.mxu0 %v1812_v3  ;;  %1175 = vmatprep.subr.mxu0 %v45_v7  ;;  %v131_v7 = vld [vmem:[%s2847_s0 + $0xf0] sm:$0xff] }
  0x3f   :  { %1176 = vmatpush1.msra.mxu0 %v44_v9 }
  0x40   :  { %1752 = vmatmul.mubr.msk.f32.gmra.mxu1 %vm165_vm0, %v164_v36  ;;  %1177 = vmatprep.subr.mxu0 %v43_v10  ;;  %v86_v36 = vld [vmem:[%s2852_s5 + $0x190] sm:$0xff] }
  0x41   :  { %680 = vmatprep.mubr.f32.mxu1 %v1812_v3  ;;  %1735 = vmatmul.mubr.msk.f32.gmra.mxu0 %vm165_vm0, %v147_v37  ;;  %v85_v37 = vld [vmem:[%s2852_s5 + $0x188] sm:$0xff] }
  0x42   :  { %416 = vmatprep.mubr.f32.mxu0 %v1812_v3  ;;  %1178 = vmatpush1.msra.mxu0 %v42_v11 }
  0x43   :  { %1179 = vmatprep.subr.mxu0 %v41_v12 }
  0x44   :  { %1753 = vmatmul.mubr.msk.f32.vlgmr.msra.gmra.mxu1 %vm519_vm1, %v101_v38  ;;  %1180 = vmatpush1.msra.mxu0 %v40_v14  ;;  %v116_v38 = vld [vmem:[%s2847_s0 + $0x78] sm:$0xff] }
  0x45   :  { %686 = vmatprep.mubr.f32.mxu1 %v1812_v3  ;;  %1736 = vmatmul.mubr.msk.f32.gmra.mxu0 %vm165_vm0, %v148_v39  ;;  %v84_v39 = vld [vmem:[%s2852_s5 + $0x180] sm:$0xff] }
  0x46   :  { %1181 = vmatprep.subr.mxu0 %v39_v15 }
  0x47   :  { %1182 = vmatpush1.msra.mxu0 %v38_v16 }
  0x48   :  { %1754 = vmatmul.mubr.msk.f32.gmra.mxu1 %vm519_vm1, %v102_v40  ;;  %1183 = vmatprep.subr.mxu0 %v37_v17  ;;  %v83_v40 = vld [vmem:[%s2852_s5 + $0x178] sm:$0xff] }
  0x49   :  { %692 = vmatprep.mubr.f32.mxu1 %v1812_v3  ;;  %1184 = vmatpush1.msra.mxu0 %v36_v19 }
  0x4a   :  { %1185 = vmatprep.subr.mxu0 %v99_v20 }
  0x4b   :  { %1186 = vmatpush2.msra.mxu0 %v98_v21 }
  0x4c   :  { %1755 = vmatmul.mubr.msk.f32.gmra.mxu1 %vm519_vm1, %v103_v41  ;;  %1187 = vmatprep.subr.mxu0 %v97_v22  ;;  %v82_v41 = vld [vmem:[%s2852_s5 + $0x170] sm:$0xff] }
  0x4d   :  { %698 = vmatprep.mubr.f32.mxu1 %v1812_v3  ;;  %1188 = vmatpush2.msra.mxu0 %v96_v24 }
  0x4e   :  { %1189 = vmatprep.subr.mxu0 %v95_v25 }
  0x4f   :  { %1190 = vmatpush2.msra.mxu0 %v94_v26 }
  0x50   :  { %1756 = vmatmul.mubr.msk.f32.gmra.mxu1 %vm519_vm1, %v104_v42  ;;  %1191 = vmatprep.subr.mxu0 %v93_v27  ;;  %v81_v42 = vld [vmem:[%s2852_s5 + $0x168] sm:$0xff] }
  0x51   :  { %704 = vmatprep.mubr.f32.mxu1 %v1812_v3  ;;  %1192 = vmatpush2.msra.mxu0 %v92_v29 }
  0x52   :  { %1193 = vmatprep.subr.mxu0 %v91_v30 }
  0x53   :  { %1194 = vmatpush2.msra.mxu0 %v90_v31 }
  0x54   :  { %1757 = vmatmul.mubr.msk.f32.gmra.mxu1 %vm519_vm1, %v105_v46  ;;  %1195 = vmatprep.subr.mxu0 %v89_v32  ;;  %v78_v46 = vld [vmem:[%s2852_s5 + $0x150] sm:$0xff] }
  0x55   :  { %710 = vmatprep.mubr.f32.mxu1 %v1812_v3  ;;  %1196 = vmatpush2.msra.mxu0 %v88_v34 }
  0x56   :  { %1197 = vmatprep.subr.mxu0 %v87_v35 }
  0x57   :  { %1198 = vmatpush2.msra.mxu0 %v86_v36 }
  0x58   :  { %1758 = vmatmul.mubr.msk.f32.gmra.mxu1 %vm519_vm1, %v106_v51  ;;  %1199 = vmatprep.subr.mxu0 %v85_v37  ;;  %v74_v51 = vld [vmem:[%s2852_s5 + $0x130] sm:$0xff] }
  0x59   :  { %716 = vmatprep.mubr.f32.mxu1 %v1812_v3  ;;  %1200 = vmatpush2.msra.mxu0 %v84_v39 }
  0x5a   :  { %1201 = vmatprep.subr.mxu0 %v83_v40 }
  0x5b   :  { %1202 = vmatpush2.msra.mxu0 %v82_v41 }
  0x5c   :  { %1759 = vmatmul.mubr.msk.f32.gmra.mxu1 %vm519_vm1, %v107_v56  ;;  %1203 = vmatprep.subr.mxu0 %v81_v42  ;;  %v70_v56 = vld [vmem:[%s2852_s5 + $0x110] sm:$0xff] }
  0x5d   :  { %722 = vmatprep.mubr.f32.mxu1 %v1812_v3  ;;  %1204 = vmatpush2.msra.mxu0 %v80_v44 }
  0x5e   :  { %1205 = vmatprep.subr.mxu0 %v79_v45 }
  0x5f   :  { %1206 = vmatpush2.msra.mxu0 %v78_v46 }
  0x60   :  { %1760 = vmatmul.mubr.msk.f32.gmra.mxu1 %vm519_vm1, %v108_v61  ;;  %1207 = vmatprep.subr.mxu0 %v77_v47  ;;  %v122_v61 = vld [vmem:[%s2847_s0 + $0xa8] sm:$0xff]  ;;  %v2856_v47 = vlaneseq }
  0x61   :  { %728 = vmatprep.mubr.f32.mxu1 %v1812_v3  ;;  %1208 = vmatpush2.msra.mxu0 %v76_v49 }
  0x62   :  { %1209 = vmatprep.subr.mxu0 %v75_v50 }
  0x63   :  { %1210 = vmatpush2.msra.mxu0 %v74_v51  ;;  %v2465_v51 = vshrl.u32 %v2856_v47, 7 }
  0x64   :  { %1761 = vmatmul.mubr.msk.f32.gmra.mxu1 %vm519_vm1, %v109_v2  ;;  %1211 = vmatprep.subr.mxu0 %v73_v52  ;;  %v127_v2 = vld [vmem:[%s2847_s0 + $0xd0] sm:$0xff] }
  0x65   :  { %734 = vmatprep.mubr.f32.mxu1 %v1812_v3  ;;  %1212 = vmatpush2.msra.mxu0 %v72_v54  ;;  %2862 = vst [vmem:[#allocation5_spill] sm:$0xff] %v2465_v51 }
  0x66   :  { %1213 = vmatprep.subr.mxu0 %v71_v55  ;;  %v2474_v55 = vsub.s32 0, %v2465_v51 }
  0x67   :  { %1214 = vmatpush2.msra.mxu0 %v70_v56 }
  0x68   :  { %1762 = vmatmul.mubr.msk.f32.gmra.mxu1 %vm519_vm1, %v110_v8  ;;  %1215 = vmatprep.subr.mxu0 %v69_v57  ;;  %v132_v8 = vld [vmem:[%s2847_s0 + $0xf8] sm:$0xff]  ;;  %2864 = vst [vmem:[#allocation7_spill] sm:$0xff] %v2474_v55  ;;  %v873_v57 = vld [vmem:[%s2851_s4] sm:$0x3] }
  0x69   :  { %740 = vmatprep.mubr.f32.mxu1 %v1812_v3  ;;  %1216 = vmatpush2.msra.mxu0 %v68_v59 }
  0x6c   :  { %1763 = vmatmul.mubr.msk.f32.gmra.mxu1 %vm519_vm1, %v111_v13 }
  0x6d   :  { %746 = vmatprep.mubr.f32.mxu1 %v1812_v3 }
  0x70   :  { %1764 = vmatmul.mubr.msk.f32.gmra.mxu1 %vm519_vm1, %v112_v18 }
  0x71   :  { %752 = vmatprep.mubr.f32.mxu1 %v1812_v3 }
  0x74   :  { %1765 = vmatmul.mubr.msk.f32.gmra.mxu1 %vm519_vm1, %v113_v23 }
  0x75   :  { %758 = vmatprep.mubr.f32.mxu1 %v1812_v3 }
  0x78   :  { %1766 = vmatmul.mubr.msk.f32.gmra.mxu1 %vm519_vm1, %v114_v28 }
  0x79   :  { %764 = vmatprep.mubr.f32.mxu1 %v1812_v3 }
  0x7c   :  { %1767 = vmatmul.mubr.msk.f32.gmra.mxu1 %vm519_vm1, %v115_v33 }
  0x7d   :  { %770 = vmatprep.mubr.f32.mxu1 %v1812_v3 }
  0x80   :  { %1768 = vmatmul.mubr.msk.f32.gmra.mxu1 %vm519_vm1, %v116_v38 }
  0x81   :  { %776 = vmatprep.mubr.f32.mxu1 %v1812_v3 }
  0x84   :  { %1769 = vmatmul.mubr.msk.f32.gmra.mxu1 %vm519_vm1, %v117_v43 }
  0x85   :  { %782 = vmatprep.mubr.f32.mxu1 %v1812_v3 }
  0x88   :  { %1770 = vmatmul.mubr.msk.f32.gmra.mxu1 %vm519_vm1, %v118_v48 }
  0x89   :  { %788 = vmatprep.mubr.f32.mxu1 %v1812_v3 }
  0x8c   :  { %1771 = vmatmul.mubr.msk.f32.gmra.mxu1 %vm519_vm1, %v119_v53 }
  0x8d   :  { %794 = vmatprep.mubr.f32.mxu1 %v1812_v3 }
  0x90   :  { %1772 = vmatmul.mubr.msk.f32.gmra.mxu1 %vm519_vm1, %v120_v58  ;;  %v2482_v58 = vsub.s32 1, %v2465_v51 }
  0x91   :  { %800 = vmatprep.mubr.f32.mxu1 %v1812_v3 }
  0x92   :  { %2866 = vst [vmem:[#allocation9_spill] sm:$0xff] %v2482_v58 }
  0x94   :  { %1773 = vmatmul.mubr.msk.f32.gmra.mxu1 %vm519_vm1, %v121_v60 }
  0x95   :  { %806 = vmatprep.mubr.f32.mxu1 %v1812_v3 }
  0x98   :  { %1774 = vmatmul.mubr.msk.f32.gmra.mxu1 %vm519_vm1, %v122_v61  ;;  %v2489_v61 = vrot.slane %v873_v57, %v2474_v55 }
  0x99   :  { %812 = vmatprep.mubr.f32.mxu1 %v1812_v3 }
  0x9c   :  { %1775 = vmatmul.mubr.msk.f32.gmra.mxu1 %vm519_vm1, %v123_v62 }
  0x9d   :  { %818 = vmatprep.mubr.f32.mxu1 %v1812_v3 }
  0xa0   :  { %1776 = vmatmul.mubr.msk.f32.gmra.mxu1 %vm519_vm1, %v124_v63 }
  0xa1   :  { %824 = vmatprep.mubr.f32.mxu1 %v1812_v3 }
  0xa4   :  { %1777 = vmatmul.mubr.msk.f32.gmra.mxu1 %vm519_vm1, %v125_v0  ;;  %v2492_v0 = vrot.slane %v873_v57, %v2482_v58 }
  0xa5   :  { %830 = vmatprep.mubr.f32.mxu1 %v1812_v3 }
  0xa8   :  { %1778 = vmatmul.mubr.msk.f32.gmra.mxu1 %vm519_vm1, %v126_v1 }
  0xa9   :  { %836 = vmatprep.mubr.f32.mxu1 %v1812_v3 }
  0xac   :  { %1779 = vmatmul.mubr.msk.f32.gmra.mxu1 %vm519_vm1, %v127_v2 }
  0xad   :  { %842 = vmatprep.mubr.f32.mxu1 %v1812_v3 }
  0xb0   :  { %1780 = vmatmul.mubr.msk.f32.gmra.mxu1 %vm519_vm1, %v128_v4 }
  0xb1   :  { %848 = vmatprep.mubr.f32.mxu1 %v1812_v3 }
  0xb4   :  { %1781 = vmatmul.mubr.msk.f32.gmra.mxu1 %vm519_vm1, %v129_v5 }
  0xb5   :  { %854 = vmatprep.mubr.f32.mxu1 %v1812_v3 }
  0xb8   :  { %1782 = vmatmul.mubr.msk.f32.gmra.mxu1 %vm519_vm1, %v130_v6 }
  0xb9   :  { %860 = vmatprep.mubr.f32.mxu1 %v1812_v3 }
  0xbc   :  { %1783 = vmatmul.mubr.msk.f32.gmra.mxu1 %vm519_vm1, %v131_v7 }
  0xbd   :  { %866 = vmatprep.mubr.f32.mxu1 %v1812_v3 }
  0xc0   :  { %1784 = vmatmul.mubr.msk.f32.gmra.mxu1 %vm519_vm1, %v132_v8 }
  0xc4   :  { %v2390_v9 = vpop.f32.mrf.mxu1 }
  0xc6   :  { %v2392_v10 = vpop.f32.mrf.mxu1  ;;  %v328_v12 = vpop.f32.mrf.mxu0 }
  0xc8   :  { %v2394_v11 = vpop.f32.mrf.mxu1  ;;  %v330_v14 = vpop.f32.mrf.mxu0 }
  0xca   :  { %v2396_v13 = vpop.f32.mrf.mxu1  ;;  %v334_v3 = vpop.f32.mrf.mxu0 }
  0xcc   :  { %v2398_v15 = vpop.f32.mrf.mxu1  ;;  %v336_v19 = vpop.f32.mrf.mxu0 }
  0xce   :  { %v2400_v16 = vpop.f32.mrf.mxu1  ;;  %v340_v22 = vpop.f32.mrf.mxu0 }
  0xd0   :  { %v2402_v17 = vpop.f32.mrf.mxu1  ;;  %v2414_v25 = vpop.f32.mrf.mxu0 }
  0xd2   :  { %v2404_v18 = vpop.f32.mrf.mxu1 }
  0xd4   :  { %v2406_v20 = vpop.f32.mrf.mxu1 }
  0xd5   :  { %v2420_v28 = vpop.f32.mrf.mxu0 }
  0xd6   :  { %v2408_v21 = vpop.f32.mrf.mxu1 }
  0xd7   :  { %v2426_v31 = vpop.f32.mrf.mxu0 }
  0xd8   :  { %v2410_v23 = vpop.f32.mrf.mxu1 }
  0xd9   :  { %v2432_v34 = vpop.f32.mrf.mxu0 }
  0xda   :  { %v2412_v24 = vpop.f32.mrf.mxu1 }
  0xdb   :  { %v2438_v37 = vpop.f32.mrf.mxu0 }
  0xdc   :  { %v2416_v26 = vpop.f32.mrf.mxu1 }
  0xdd   :  { %v2444_v40 = vpop.f32.mrf.mxu0 }
  0xde   :  { %v2418_v27 = vpop.f32.mrf.mxu1 }
  0xdf   :  { %v2450_v43 = vpop.f32.mrf.mxu0 }
  0xe0   :  { %v2422_v29 = vpop.f32.mrf.mxu1 }
  0xe1   :  { %v2456_v46 = vpop.f32.mrf.mxu0 }
  0xe2   :  { %v2424_v30 = vpop.f32.mrf.mxu1 }
  0xe3   :  { %v2462_v50 = vpop.f32.mrf.mxu0 }
  0xe4   :  { %v2428_v32 = vpop.f32.mrf.mxu1 }
  0xe5   :  { %v2471_v54 = vpop.f32.mrf.mxu0 }
  0xe6   :  { %v2430_v33 = vpop.f32.mrf.mxu1 }
  0xe7   :  { %v2486_v60 = vpop.f32.mrf.mxu0 }
  0xe8   :  { %v2434_v35 = vpop.f32.mrf.mxu1 }
  0xe9   :  { %v2494_v2 = vpop.f32.mrf.mxu0 }
  0xea   :  { %v2436_v36 = vpop.f32.mrf.mxu1 }
  0xeb   :  { %v2498_v55 = vpop.f32.mrf.mxu0 }
  0xec   :  { %v2440_v38 = vpop.f32.mrf.mxu1 }
  0xee   :  { %v2442_v39 = vpop.f32.mrf.mxu1 }
  0xf0   :  { %v2446_v41 = vpop.f32.mrf.mxu1 }
  0xf2   :  { %v2448_v42 = vpop.f32.mrf.mxu1 }
  0xf4   :  { %v2452_v44 = vpop.f32.mrf.mxu1 }
  0xf6   :  { %v2454_v45 = vpop.f32.mrf.mxu1 }
  0xf8   :  { %v2458_v48 = vpop.f32.mrf.mxu1 }
  0xfa   :  { %v2460_v49 = vpop.f32.mrf.mxu1 }
  0xfc   :  { %v2467_v52 = vpop.f32.mrf.mxu1 }
  0xfe   :  { %v2469_v53 = vpop.f32.mrf.mxu1 }
  0xff   :  { %2863 = vst [vmem:[#allocation6_spill] sm:$0xff] %v2469_v53 }
 0x100   :  { %v2476_v56 = vpop.f32.mrf.mxu1 }
 0x101   :  { %2865 = vst [vmem:[#allocation8_spill] sm:$0xff] %v2476_v56 }
 0x102   :  { %v2484_v59 = vpop.f32.mrf.mxu1 }
 0x103   :  { %2867 = vst [vmem:[#allocation10_spill] sm:$0xff] %v2484_v59 }
 0x104   :  { %v682_v62 = vpop.f32.mrf.mxu1 }
 0x105   :  { %v683_v63 = vadd.f32 %v682_v62, %v328_v12 }
 0x106   :  { %v684_v1 = vpop.f32.mrf.mxu1 }
 0x107   :  { %v885_v4 = vadd.f32 %v2489_v61, %v683_v63  ;;  %v685_v5 = vadd.f32 %v684_v1, %v330_v14 }
 0x108   :  { %v688_v6 = vpop.f32.mrf.mxu1 }
 0x109   :  { %v886_v7 = vadd.f32 %v2492_v0, %v685_v5  ;;  %v689_v8 = vadd.f32 %v688_v6, %v334_v3  ;;  %vm949_vm2 = vcmp.ge.f32.partialorder %v885_v4, 0.0  ;;  %v1013_v47 = vmul.f32 0.01, %v885_v4  ;;  %v2502_v5 = vpop.f32.mrf.mxu0 }
 0x10a   :  { %v690_v51 = vpop.f32.mrf.mxu1 }
 0x10b   :  { %v887_v12 = vadd.f32 %v2489_v61, %v689_v8  ;;  %v691_v62 = vadd.f32 %v690_v51, %v336_v19  ;;  %vm950_vm3 = vcmp.ge.f32.partialorder %v886_v7, 0.0  ;;  %v1014_v57 = vmul.f32 0.01, %v886_v7 }
 0x10c   :  { %v694_v58 = vpop.f32.mrf.mxu1  ;;  %v1077_v1 = vsel %vm949_vm2, %v885_v4, %v1013_v47 }
 0x10d   :  { %v888_v59 = vadd.f32 %v2492_v0, %v691_v62  ;;  %v695_v56 = vadd.f32 %v694_v58, %v340_v22  ;;  %v1078_v63 = vsel %vm950_vm3, %v886_v7, %v1014_v57  ;;  %vm951_vm4 = vcmp.ge.f32.partialorder %v887_v12, 0.0  ;;  %v2508_v62 = vpop.f32.mrf.mxu0 }
 0x10e   :  { %v696_v14 = vpop.f32.mrf.mxu1  ;;  %1217 = vmatprep.mubr.f32.mxu0 %v1078_v63  ;;  %v1015_v3 = vmul.f32 0.01, %v887_v12 }
 0x10f   :  { %v889_v6 = vadd.f32 %v2489_v61, %v695_v56  ;;  %v697_v53 = vadd.f32 %v696_v14, %v2414_v25  ;;  %1218 = vmatmul.mubr.f32.vlgmr.msra.gmra.mxu0 %v1077_v1  ;;  %vm952_vm5 = vcmp.ge.f32.partialorder %v888_v59, 0.0  ;;  %v1016_v19 = vmul.f32 0.01, %v888_v59 }
 0x110   :  { %v700_v51 = vpop.f32.mrf.mxu1  ;;  %v1079_v47 = vsel %vm951_vm4, %v887_v12, %v1015_v3  ;;  %v2514_v3 = vpop.f32.mrf.mxu0 }
 0x111   :  { %v890_v8 = vadd.f32 %v2492_v0, %v697_v53  ;;  %v701_v22 = vadd.f32 %v700_v51, %v2420_v28  ;;  %v1080_v58 = vsel %vm952_vm5, %v888_v59, %v1016_v19  ;;  %vm953_vm6 = vcmp.ge.f32.partialorder %v889_v6, 0.0 }
 0x112   :  { %v702_v7 = vpop.f32.mrf.mxu1  ;;  %1223 = vmatprep.mubr.f32.mxu0 %v1080_v58  ;;  %v1017_v4 = vmul.f32 0.01, %v889_v6 }
 0x113   :  { %v891_v56 = vadd.f32 %v2489_v61, %v701_v22  ;;  %v703_v25 = vadd.f32 %v702_v7, %v2426_v31  ;;  %1224 = vmatmul.mubr.f32.gmra.mxu0 %v1079_v47  ;;  %vm954_vm7 = vcmp.ge.f32.partialorder %v890_v8, 0.0  ;;  %v1018_v57 = vmul.f32 0.01, %v890_v8 }
 0x114   :  { %v706_v63 = vpop.f32.mrf.mxu1  ;;  %v1081_v12 = vsel %vm953_vm6, %v889_v6, %v1017_v4  ;;  %v2520_v4 = vpop.f32.mrf.mxu0 }
 0x115   :  { %v892_v53 = vadd.f32 %v2492_v0, %v703_v25  ;;  %v707_v28 = vadd.f32 %v706_v63, %v2432_v34  ;;  %v1082_v59 = vsel %vm954_vm7, %v890_v8, %v1018_v57  ;;  %vm955_vm8 = vcmp.ge.f32.partialorder %v891_v56, 0.0 }
 0x116   :  { %v708_v14 = vpop.f32.mrf.mxu1  ;;  %1229 = vmatprep.mubr.f32.mxu0 %v1082_v59  ;;  %v1019_v1 = vmul.f32 0.01, %v891_v56 }
 0x117   :  { %v893_v19 = vadd.f32 %v2489_v61, %v707_v28  ;;  %v709_v31 = vadd.f32 %v708_v14, %v2438_v37  ;;  %1230 = vmatmul.mubr.f32.gmra.mxu0 %v1081_v12  ;;  %vm956_vm9 = vcmp.ge.f32.partialorder %v892_v53, 0.0  ;;  %v1020_v51 = vmul.f32 0.01, %v892_v53  ;;  %v2526_v12 = vpop.f32.mrf.mxu0 }
 0x118   :  { %v712_v22 = vpop.f32.mrf.mxu1  ;;  %v1083_v6 = vsel %vm955_vm8, %v891_v56, %v1019_v1 }
 0x119   :  { %v894_v58 = vadd.f32 %v2492_v0, %v709_v31  ;;  %v713_v34 = vadd.f32 %v712_v22, %v2444_v40  ;;  %v1084_v8 = vsel %vm956_vm9, %v892_v53, %v1020_v51  ;;  %vm957_vm10 = vcmp.ge.f32.partialorder %v893_v19, 0.0 }
 0x11a   :  { %v714_v7 = vpop.f32.mrf.mxu1  ;;  %1235 = vmatprep.mubr.f32.mxu0 %v1084_v8  ;;  %v1021_v47 = vmul.f32 0.01, %v893_v19 }
 0x11b   :  { %v895_v25 = vadd.f32 %v2489_v61, %v713_v34  ;;  %v715_v37 = vadd.f32 %v714_v7, %v2450_v43  ;;  %1236 = vmatmul.mubr.f32.gmra.mxu0 %v1083_v6  ;;  %vm958_vm11 = vcmp.ge.f32.partialorder %v894_v58, 0.0  ;;  %v1022_v57 = vmul.f32 0.01, %v894_v58  ;;  %v396_v7 = vpop.f32.mrf.mxu0 }
 0x11c   :  { %v718_v63 = vpop.f32.mrf.mxu1  ;;  %v1085_v56 = vsel %vm957_vm10, %v893_v19, %v1021_v47 }
 0x11d   :  { %v896_v28 = vadd.f32 %v2492_v0, %v715_v37  ;;  %v719_v40 = vadd.f32 %v718_v63, %v2456_v46  ;;  %v1086_v53 = vsel %vm958_vm11, %v894_v58, %v1022_v57  ;;  %vm959_vm12 = vcmp.ge.f32.partialorder %v895_v25, 0.0 }
 0x11e   :  { %v720_v59 = vpop.f32.mrf.mxu1  ;;  %1241 = vmatprep.mubr.f32.mxu0 %v1086_v53  ;;  %v1023_v14 = vmul.f32 0.01, %v895_v25  ;;  %v400_v53 = vpop.f32.mrf.mxu0 }
 0x11f   :  { %v897_v1 = vadd.f32 %v2489_v61, %v719_v40  ;;  %v721_v43 = vadd.f32 %v720_v59, %v2462_v50  ;;  %1242 = vmatmul.mubr.f32.gmra.mxu0 %v1085_v56  ;;  %vm960_vm13 = vcmp.ge.f32.partialorder %v896_v28, 0.0  ;;  %v1024_v31 = vmul.f32 0.01, %v896_v28 }
 0x120   :  { %v724_v51 = vpop.f32.mrf.mxu1  ;;  %v1087_v19 = vsel %vm959_vm12, %v895_v25, %v1023_v14 }
 0x121   :  { %v898_v22 = vadd.f32 %v2492_v0, %v721_v43  ;;  %v725_v46 = vadd.f32 %v724_v51, %v2471_v54  ;;  %v1088_v58 = vsel %vm960_vm13, %v896_v28, %v1024_v31  ;;  %vm961_vm14 = vcmp.ge.f32.partialorder %v897_v1, 0.0 }
 0x122   :  { %v726_v34 = vpop.f32.mrf.mxu1  ;;  %1247 = vmatprep.mubr.f32.mxu0 %v1088_v58  ;;  %v1025_v8 = vmul.f32 0.01, %v897_v1 }
 0x123   :  { %v899_v6 = vadd.f32 %v2489_v61, %v725_v46  ;;  %v727_v47 = vadd.f32 %v726_v34, %v2486_v60  ;;  %1248 = vmatmul.mubr.f32.gmra.mxu0 %v1087_v19  ;;  %vm962_vm15 = vcmp.ge.f32.partialorder %v898_v22, 0.0  ;;  %v1026_v50 = vmul.f32 0.01, %v898_v22  ;;  %v402_v46 = vpop.f32.mrf.mxu0 }
 0x124   :  { %v730_v37 = vpop.f32.mrf.mxu1  ;;  %v1089_v40 = vsel %vm961_vm14, %v897_v1, %v1025_v8 }
 0x125   :  { %v900_v57 = vadd.f32 %v2492_v0, %v727_v47  ;;  %v731_v63 = vadd.f32 %v730_v37, %v2494_v2  ;;  %v1090_v54 = vsel %vm962_vm15, %v898_v22, %v1026_v50  ;;  %vm963_vm0 = vcmp.ge.f32.partialorder %v899_v6, 0.0 }
 0x126   :  { %v732_v28 = vpop.f32.mrf.mxu1  ;;  %1253 = vmatprep.mubr.f32.mxu0 %v1090_v54  ;;  %v1027_v25 = vmul.f32 0.01, %v899_v6 }
 0x127   :  { %v901_v59 = vadd.f32 %v2489_v61, %v731_v63  ;;  %v733_v56 = vadd.f32 %v732_v28, %v2498_v55  ;;  %1254 = vmatmul.mubr.f32.gmra.mxu0 %v1089_v40  ;;  %vm964_vm1 = vcmp.ge.f32.partialorder %v900_v57, 0.0  ;;  %v1028_v60 = vmul.f32 0.01, %v900_v57 }
 0x128   :  { %v736_v14 = vpop.f32.mrf.mxu1  ;;  %v1091_v22 = vsel %vm963_vm0, %v899_v6, %v1027_v25 }
 0x129   :  { %v902_v43 = vadd.f32 %v2492_v0, %v733_v56  ;;  %v737_v31 = vadd.f32 %v736_v14, %v2502_v5  ;;  %v1092_v2 = vsel %vm964_vm1, %v900_v57, %v1028_v60  ;;  %vm965_vm2 = vcmp.ge.f32.partialorder %v901_v59, 0.0  ;;  %v406_v57 = vpop.f32.mrf.mxu0 }
 0x12a   :  { %v738_v51 = vpop.f32.mrf.mxu1  ;;  %1259 = vmatprep.mubr.f32.mxu0 %v1092_v2  ;;  %v1029_v1 = vmul.f32 0.01, %v901_v59 }
 0x12b   :  { %v903_v58 = vadd.f32 %v2489_v61, %v737_v31  ;;  %v739_v34 = vadd.f32 %v738_v51, %v2508_v62  ;;  %1260 = vmatmul.mubr.f32.gmra.mxu0 %v1091_v22  ;;  %vm966_vm3 = vcmp.ge.f32.partialorder %v902_v43, 0.0  ;;  %v1030_v55 = vmul.f32 0.01, %v902_v43  ;;  %v408_v14 = vpop.f32.mrf.mxu0 }
 0x12c   :  { %v742_v19 = vpop.f32.mrf.mxu1  ;;  %v1093_v37 = vsel %vm965_vm2, %v901_v59, %v1029_v1 }
 0x12d   :  { %v904_v8 = vadd.f32 %v2492_v0, %v739_v34  ;;  %v743_v47 = vadd.f32 %v742_v19, %v2514_v3  ;;  %v1094_v5 = vsel %vm966_vm3, %v902_v43, %v1030_v55  ;;  %vm967_vm4 = vcmp.ge.f32.partialorder %v903_v58, 0.0  ;;  %v412_v55 = vpop.f32.mrf.mxu0 }
 0x12e   :  { %v744_v50 = vpop.f32.mrf.mxu1  ;;  %1265 = vmatprep.mubr.f32.mxu0 %v1094_v5  ;;  %v1031_v6 = vmul.f32 0.01, %v903_v58 }
 0x12f   :  { %v905_v63 = vadd.f32 %v2489_v61, %v743_v47  ;;  %v745_v54 = vadd.f32 %v744_v50, %v2520_v4  ;;  %1266 = vmatmul.mubr.f32.gmra.mxu0 %v1093_v37  ;;  %vm968_vm5 = vcmp.ge.f32.partialorder %v904_v8, 0.0  ;;  %v1032_v62 = vmul.f32 0.01, %v904_v8 }
 0x130   :  { %v748_v28 = vpop.f32.mrf.mxu1  ;;  %v1095_v60 = vsel %vm967_vm4, %v903_v58, %v1031_v6 }
 0x131   :  { %v906_v40 = vadd.f32 %v2492_v0, %v745_v54  ;;  %v749_v25 = vadd.f32 %v748_v28, %v2526_v12  ;;  %v1096_v3 = vsel %vm968_vm5, %v904_v8, %v1032_v62  ;;  %vm969_vm6 = vcmp.ge.f32.partialorder %v905_v63, 0.0  ;;  %v414_v54 = vpop.f32.mrf.mxu0 }
 0x132   :  { %v750_v56 = vpop.f32.mrf.mxu1  ;;  %1271 = vmatprep.mubr.f32.mxu0 %v1096_v3  ;;  %v1033_v59 = vmul.f32 0.01, %v905_v63 }
 0x133   :  { %v907_v43 = vadd.f32 %v2489_v61, %v749_v25  ;;  %v751_v31 = vadd.f32 %v750_v56, %v396_v7  ;;  %1272 = vmatmul.mubr.f32.gmra.mxu0 %v1095_v60  ;;  %vm970_vm7 = vcmp.ge.f32.partialorder %v906_v40, 0.0  ;;  %v1034_v4 = vmul.f32 0.01, %v906_v40  ;;  %v418_v60 = vpop.f32.mrf.mxu0 }
 0x134   :  { %v754_v2 = vpop.f32.mrf.mxu1  ;;  %v1097_v12 = vsel %vm969_vm6, %v905_v63, %v1033_v59 }
 0x135   :  { %v908_v51 = vadd.f32 %v2492_v0, %v751_v31  ;;  %v755_v22 = vadd.f32 %v754_v2, %v400_v53  ;;  %v1098_v1 = vsel %vm970_vm7, %v906_v40, %v1034_v4  ;;  %vm971_vm8 = vcmp.ge.f32.partialorder %v907_v43, 0.0 }
 0x136   :  { %v756_v34 = vpop.f32.mrf.mxu1  ;;  %1277 = vmatprep.mubr.f32.mxu0 %v1098_v1  ;;  %v1035_v58 = vmul.f32 0.01, %v907_v43 }
 0x137   :  { %v909_v19 = vadd.f32 %v2489_v61, %v755_v22  ;;  %v757_v8 = vadd.f32 %v756_v34, %v402_v46  ;;  %1278 = vmatmul.mubr.f32.gmra.mxu0 %v1097_v12  ;;  %vm972_vm9 = vcmp.ge.f32.partialorder %v908_v51, 0.0  ;;  %v1036_v7 = vmul.f32 0.01, %v908_v51  ;;  %v420_v34 = vpop.f32.mrf.mxu0 }
 0x138   :  { %v760_v47 = vpop.f32.mrf.mxu1  ;;  %v1099_v53 = vsel %vm971_vm8, %v907_v43, %v1035_v58 }
 0x139   :  { %v910_v5 = vadd.f32 %v2492_v0, %v757_v8  ;;  %v761_v50 = vadd.f32 %v760_v47, %v406_v57  ;;  %v1100_v37 = vsel %vm972_vm9, %v908_v51, %v1036_v7  ;;  %vm973_vm10 = vcmp.ge.f32.partialorder %v909_v19, 0.0 }
 0x13a   :  { %v762_v6 = vpop.f32.mrf.mxu1  ;;  %1283 = vmatprep.mubr.f32.mxu0 %v1100_v37  ;;  %v1037_v63 = vmul.f32 0.01, %v909_v19 }
 0x13b   :  { %v911_v62 = vadd.f32 %v2489_v61, %v761_v50  ;;  %v763_v28 = vadd.f32 %v762_v6, %v408_v14  ;;  %1284 = vmatmul.mubr.f32.gmra.mxu0 %v1099_v53  ;;  %vm974_vm11 = vcmp.ge.f32.partialorder %v910_v5, 0.0  ;;  %v1038_v46 = vmul.f32 0.01, %v910_v5 }
 0x13c   :  { %v766_v40 = vpop.f32.mrf.mxu1  ;;  %v1101_v59 = vsel %vm973_vm10, %v909_v19, %v1037_v63 }
 0x13d   :  { %v912_v25 = vadd.f32 %v2492_v0, %v763_v28  ;;  %v767_v3 = vadd.f32 %v766_v40, %v412_v55  ;;  %v1102_v56 = vsel %vm974_vm11, %v910_v5, %v1038_v46  ;;  %vm975_vm12 = vcmp.ge.f32.partialorder %v911_v62, 0.0 }
 0x13e   :  { %v768_v57 = vpop.f32.mrf.mxu1  ;;  %1289 = vmatprep.mubr.f32.mxu0 %v1102_v56  ;;  %v1039_v43 = vmul.f32 0.01, %v911_v62 }
 0x13f   :  { %v913_v31 = vadd.f32 %v2489_v61, %v767_v3  ;;  %v769_v4 = vadd.f32 %v768_v57, %v414_v54  ;;  %1290 = vmatmul.mubr.f32.gmra.mxu0 %v1101_v59  ;;  %vm976_vm13 = vcmp.ge.f32.partialorder %v912_v25, 0.0  ;;  %v1040_v14 = vmul.f32 0.01, %v912_v25 }
 0x140   :  { %v772_v2 = vpop.f32.mrf.mxu1  ;;  %v1103_v55 = vsel %vm975_vm12, %v911_v62, %v1039_v43 }
 0x141   :  { %v914_v51 = vadd.f32 %v2492_v0, %v769_v4  ;;  %v773_v22 = vadd.f32 %v772_v2, %v418_v60  ;;  %v1104_v1 = vsel %vm976_vm13, %v912_v25, %v1040_v14  ;;  %vm977_vm14 = vcmp.ge.f32.partialorder %v913_v31, 0.0 }
 0x142   :  { %v774_v12 = vpop.f32.mrf.mxu1  ;;  %1295 = vmatprep.mubr.f32.mxu0 %v1104_v1  ;;  %v1041_v58 = vmul.f32 0.01, %v913_v31 }
 0x143   :  { %v915_v19 = vadd.f32 %v2489_v61, %v773_v22  ;;  %v775_v8 = vadd.f32 %v774_v12, %v420_v34  ;;  %1296 = vmatmul.mubr.f32.gmra.mxu0 %v1103_v55  ;;  %vm978_vm15 = vcmp.ge.f32.partialorder %v914_v51, 0.0  ;;  %v1042_v7 = vmul.f32 0.01, %v914_v51 }
 0x144   :  { %v778_v47 = vpop.f32.mrf.mxu1  ;;  %v1105_v53 = vsel %vm977_vm14, %v913_v31, %v1041_v58 }
 0x145   :  { %v916_v5 = vadd.f32 %v2492_v0, %v775_v8  ;;  %v779_v50 = vadd.f32 %v778_v47, %v2390_v9  ;;  %v1106_v37 = vsel %vm978_vm15, %v914_v51, %v1042_v7  ;;  %vm979_vm0 = vcmp.ge.f32.partialorder %v915_v19, 0.0 }
 0x146   :  { %v780_v6 = vpop.f32.mrf.mxu1  ;;  %1301 = vmatprep.mubr.f32.mxu0 %v1106_v37  ;;  %v1043_v54 = vmul.f32 0.01, %v915_v19 }
 0x147   :  { %v917_v63 = vadd.f32 %v2489_v61, %v779_v50  ;;  %v781_v62 = vadd.f32 %v780_v6, %v2392_v10  ;;  %1302 = vmatmul.mubr.f32.gmra.mxu0 %v1105_v53  ;;  %vm980_vm1 = vcmp.ge.f32.partialorder %v916_v5, 0.0  ;;  %v1044_v28 = vmul.f32 0.01, %v916_v5 }
 0x148   :  { %v784_v46 = vpop.f32.mrf.mxu1  ;;  %v1107_v56 = vsel %vm979_vm0, %v915_v19, %v1043_v54 }
 0x149   :  { %v918_v40 = vadd.f32 %v2492_v0, %v781_v62  ;;  %v785_v25 = vadd.f32 %v784_v46, %v2394_v11  ;;  %v1108_v3 = vsel %vm980_vm1, %v916_v5, %v1044_v28  ;;  %vm981_vm2 = vcmp.ge.f32.partialorder %v917_v63, 0.0 }
 0x14a   :  { %v786_v9 = vpop.f32.mrf.mxu1  ;;  %1307 = vmatprep.mubr.f32.mxu0 %v1108_v3  ;;  %v1045_v60 = vmul.f32 0.01, %v917_v63 }
 0x14b   :  { %v919_v57 = vadd.f32 %v2489_v61, %v785_v25  ;;  %v787_v59 = vadd.f32 %v786_v9, %v2396_v13  ;;  %1308 = vmatmul.mubr.f32.gmra.mxu0 %v1107_v56  ;;  %vm982_vm3 = vcmp.ge.f32.partialorder %v918_v40, 0.0  ;;  %v1046_v10 = vmul.f32 0.01, %v918_v40 }
 0x14c   :  { %v790_v43 = vpop.f32.mrf.mxu1  ;;  %v1109_v2 = vsel %vm981_vm2, %v917_v63, %v1045_v60 }
 0x14d   :  { %v920_v31 = vadd.f32 %v2492_v0, %v787_v59  ;;  %v791_v4 = vadd.f32 %v790_v43, %v2398_v15  ;;  %v1110_v14 = vsel %vm982_vm3, %v918_v40, %v1046_v10  ;;  %vm983_vm4 = vcmp.ge.f32.partialorder %v919_v57, 0.0 }
 0x14e   :  { %v792_v11 = vpop.f32.mrf.mxu1  ;;  %1313 = vmatprep.mubr.f32.mxu0 %v1110_v14  ;;  %v1047_v51 = vmul.f32 0.01, %v919_v57 }
 0x14f   :  { %v921_v22 = vadd.f32 %v2489_v61, %v791_v4  ;;  %v793_v1 = vadd.f32 %v792_v11, %v2400_v16  ;;  %1314 = vmatmul.mubr.f32.gmra.mxu0 %v1109_v2  ;;  %vm984_vm5 = vcmp.ge.f32.partialorder %v920_v31, 0.0  ;;  %v1048_v13 = vmul.f32 0.01, %v920_v31 }
 0x150   :  { %v796_v34 = vpop.f32.mrf.mxu1  ;;  %v1111_v19 = vsel %vm983_vm4, %v919_v57, %v1047_v51 }
 0x151   :  { %v922_v12 = vadd.f32 %v2492_v0, %v793_v1  ;;  %v797_v55 = vadd.f32 %v796_v34, %v2402_v17  ;;  %v1112_v58 = vsel %vm984_vm5, %v920_v31, %v1048_v13  ;;  %vm985_vm6 = vcmp.ge.f32.partialorder %v921_v22, 0.0 }
 0x152   :  { %v798_v15 = vpop.f32.mrf.mxu1  ;;  %1319 = vmatprep.mubr.f32.mxu0 %v1112_v58  ;;  %v1049_v8 = vmul.f32 0.01, %v921_v22 }
 0x153   :  { %v923_v7 = vadd.f32 %v2489_v61, %v797_v55  ;;  %v799_v47 = vadd.f32 %v798_v15, %v2404_v18  ;;  %1320 = vmatmul.mubr.f32.gmra.mxu0 %v1111_v19  ;;  %vm986_vm7 = vcmp.ge.f32.partialorder %v922_v12, 0.0  ;;  %v1050_v16 = vmul.f32 0.01, %v922_v12 }
 0x154   :  { %v802_v5 = vpop.f32.mrf.mxu1  ;;  %v1113_v53 = vsel %vm985_vm6, %v921_v22, %v1049_v8 }
 0x155   :  { %v924_v50 = vadd.f32 %v2492_v0, %v799_v47  ;;  %v803_v37 = vadd.f32 %v802_v5, %v2406_v20  ;;  %v1114_v6 = vsel %vm986_vm7, %v922_v12, %v1050_v16  ;;  %vm987_vm8 = vcmp.ge.f32.partialorder %v923_v7, 0.0 }
 0x156   :  { %v804_v17 = vpop.f32.mrf.mxu1  ;;  %1325 = vmatprep.mubr.f32.mxu0 %v1114_v6  ;;  %v1051_v54 = vmul.f32 0.01, %v923_v7 }
 0x157   :  { %v925_v63 = vadd.f32 %v2489_v61, %v803_v37  ;;  %v805_v62 = vadd.f32 %v804_v17, %v2408_v21  ;;  %1326 = vmatmul.mubr.f32.gmra.mxu0 %v1113_v53  ;;  %vm988_vm9 = vcmp.ge.f32.partialorder %v924_v50, 0.0  ;;  %v1052_v18 = vmul.f32 0.01, %v924_v50 }
 0x158   :  { %v808_v28 = vpop.f32.mrf.mxu1  ;;  %v1115_v3 = vsel %vm987_vm8, %v923_v7, %v1051_v54 }
 0x159   :  { %v926_v46 = vadd.f32 %v2492_v0, %v805_v62  ;;  %v809_v40 = vadd.f32 %v808_v28, %v2410_v23  ;;  %v1116_v25 = vsel %vm988_vm9, %v924_v50, %v1052_v18  ;;  %vm989_vm10 = vcmp.ge.f32.partialorder %v925_v63, 0.0 }
 0x15a   :  { %v810_v20 = vpop.f32.mrf.mxu1  ;;  %1331 = vmatprep.mubr.f32.mxu0 %v1116_v25  ;;  %v1053_v9 = vmul.f32 0.01, %v925_v63 }
 0x15b   :  { %v927_v56 = vadd.f32 %v2489_v61, %v809_v40  ;;  %v811_v60 = vadd.f32 %v810_v20, %v2412_v24  ;;  %1332 = vmatmul.mubr.f32.gmra.mxu0 %v1115_v3  ;;  %vm990_vm11 = vcmp.ge.f32.partialorder %v926_v46, 0.0  ;;  %v1054_v21 = vmul.f32 0.01, %v926_v46 }
 0x15c   :  { %v814_v57 = vpop.f32.mrf.mxu1  ;;  %v1117_v31 = vsel %vm989_vm10, %v925_v63, %v1053_v9 }
 0x15d   :  { %v928_v59 = vadd.f32 %v2492_v0, %v811_v60  ;;  %v815_v10 = vadd.f32 %v814_v57, %v2416_v26  ;;  %v1118_v43 = vsel %vm990_vm11, %v926_v46, %v1054_v21  ;;  %vm991_vm12 = vcmp.ge.f32.partialorder %v927_v56, 0.0 }
 0x15e   :  { %v816_v23 = vpop.f32.mrf.mxu1  ;;  %1337 = vmatprep.mubr.f32.mxu0 %v1118_v43  ;;  %v1055_v4 = vmul.f32 0.01, %v927_v56 }
 0x15f   :  { %v929_v14 = vadd.f32 %v2489_v61, %v815_v10  ;;  %v817_v11 = vadd.f32 %v816_v23, %v2418_v27  ;;  %1338 = vmatmul.mubr.f32.gmra.mxu0 %v1117_v31  ;;  %vm992_vm13 = vcmp.ge.f32.partialorder %v928_v59, 0.0  ;;  %v1056_v24 = vmul.f32 0.01, %v928_v59 }
 0x160   :  { %v820_v2 = vpop.f32.mrf.mxu1  ;;  %v1119_v13 = vsel %vm991_vm12, %v927_v56, %v1055_v4 }
 0x161   :  { %v930_v51 = vadd.f32 %v2492_v0, %v817_v11  ;;  %v821_v22 = vadd.f32 %v820_v2, %v2422_v29  ;;  %v1120_v1 = vsel %vm992_vm13, %v928_v59, %v1056_v24  ;;  %vm993_vm14 = vcmp.ge.f32.partialorder %v929_v14, 0.0 }
 0x162   :  { %v822_v26 = vpop.f32.mrf.mxu1  ;;  %1343 = vmatprep.mubr.f32.mxu0 %v1120_v1  ;;  %v1057_v34 = vmul.f32 0.01, %v929_v14 }
 0x163   :  { %v931_v12 = vadd.f32 %v2489_v61, %v821_v22  ;;  %v823_v55 = vadd.f32 %v822_v26, %v2424_v30  ;;  %1344 = vmatmul.mubr.f32.gmra.mxu0 %v1119_v13  ;;  %vm994_vm15 = vcmp.ge.f32.partialorder %v930_v51, 0.0  ;;  %v1058_v27 = vmul.f32 0.01, %v930_v51 }
 0x164   :  { %v826_v58 = vpop.f32.mrf.mxu1  ;;  %v1121_v7 = vsel %vm993_vm14, %v929_v14, %v1057_v34 }
 0x165   :  { %v932_v15 = vadd.f32 %v2492_v0, %v823_v55  ;;  %v827_v19 = vadd.f32 %v826_v58, %v2428_v32  ;;  %v1122_v8 = vsel %vm994_vm15, %v930_v51, %v1058_v27  ;;  %vm995_vm0 = vcmp.ge.f32.partialorder %v931_v12, 0.0 }
 0x166   :  { %v828_v29 = vpop.f32.mrf.mxu1  ;;  %1349 = vmatprep.mubr.f32.mxu0 %v1122_v8  ;;  %v1059_v47 = vmul.f32 0.01, %v931_v12 }
 0x167   :  { %v933_v16 = vadd.f32 %v2489_v61, %v827_v19  ;;  %v829_v5 = vadd.f32 %v828_v29, %v2430_v33  ;;  %1350 = vmatmul.mubr.f32.gmra.mxu0 %v1121_v7  ;;  %vm996_vm1 = vcmp.ge.f32.partialorder %v932_v15, 0.0  ;;  %v1060_v30 = vmul.f32 0.01, %v932_v15 }
 0x168   :  { %v832_v50 = vpop.f32.mrf.mxu1  ;;  %v1123_v53 = vsel %vm995_vm0, %v931_v12, %v1059_v47 }
 0x169   :  { %v934_v37 = vadd.f32 %v2492_v0, %v829_v5  ;;  %v833_v6 = vadd.f32 %v832_v50, %v2434_v35  ;;  %v1124_v17 = vsel %vm996_vm1, %v932_v15, %v1060_v30  ;;  %vm997_vm2 = vcmp.ge.f32.partialorder %v933_v16, 0.0  ;;  %v2868_v5 = vld [vmem:[#allocation6_spill] sm:$0xff] }
 0x16a   :  { %v834_v32 = vpop.f32.mrf.mxu1  ;;  %1355 = vmatprep.mubr.f32.mxu0 %v1124_v17  ;;  %v1061_v54 = vmul.f32 0.01, %v933_v16 }
 0x16b   :  { %v935_v63 = vadd.f32 %v2489_v61, %v833_v6  ;;  %v835_v62 = vadd.f32 %v834_v32, %v2436_v36  ;;  %1356 = vmatmul.mubr.f32.gmra.mxu0 %v1123_v53  ;;  %vm998_vm3 = vcmp.ge.f32.partialorder %v934_v37, 0.0  ;;  %v1062_v33 = vmul.f32 0.01, %v934_v37  ;;  %v2869_v6 = vld [vmem:[#allocation8_spill] sm:$0xff] }
 0x16c   :  { %v838_v18 = vpop.f32.mrf.mxu1  ;;  %v1125_v25 = vsel %vm997_vm2, %v933_v16, %v1061_v54 }
 0x16d   :  { %v936_v28 = vadd.f32 %v2492_v0, %v835_v62  ;;  %v839_v46 = vadd.f32 %v838_v18, %v2440_v38  ;;  %v1126_v40 = vsel %vm998_vm3, %v934_v37, %v1062_v33  ;;  %vm999_vm4 = vcmp.ge.f32.partialorder %v935_v63, 0.0  ;;  %v2870_v62 = vld [vmem:[#allocation10_spill] sm:$0xff] }
 0x16e   :  { %v840_v35 = vpop.f32.mrf.mxu1  ;;  %1361 = vmatprep.mubr.f32.mxu0 %v1126_v40  ;;  %v1063_v20 = vmul.f32 0.01, %v935_v63 }
 0x16f   :  { %v937_v3 = vadd.f32 %v2489_v61, %v839_v46  ;;  %v841_v9 = vadd.f32 %v840_v35, %v2442_v39  ;;  %1362 = vmatmul.mubr.f32.gmra.mxu0 %v1125_v25  ;;  %vm1000_vm5 = vcmp.ge.f32.partialorder %v936_v28, 0.0  ;;  %v1064_v36 = vmul.f32 0.01, %v936_v28 }
 0x170   :  { %v844_v56 = vpop.f32.mrf.mxu1  ;;  %v1127_v59 = vsel %vm999_vm4, %v935_v63, %v1063_v20 }
 0x171   :  { %v938_v60 = vadd.f32 %v2492_v0, %v841_v9  ;;  %v845_v21 = vadd.f32 %v844_v56, %v2446_v41  ;;  %v1128_v57 = vsel %vm1000_vm5, %v936_v28, %v1064_v36  ;;  %vm1001_vm6 = vcmp.ge.f32.partialorder %v937_v3, 0.0 }
 0x172   :  { %v846_v38 = vpop.f32.mrf.mxu1  ;;  %1367 = vmatprep.mubr.f32.mxu0 %v1128_v57  ;;  %v1065_v10 = vmul.f32 0.01, %v937_v3 }
 0x173   :  { %v939_v43 = vadd.f32 %v2489_v61, %v845_v21  ;;  %v847_v23 = vadd.f32 %v846_v38, %v2448_v42  ;;  %1368 = vmatmul.mubr.f32.gmra.mxu0 %v1127_v59  ;;  %vm1002_vm7 = vcmp.ge.f32.partialorder %v938_v60, 0.0  ;;  %v1066_v39 = vmul.f32 0.01, %v938_v60 }
 0x174   :  { %v850_v31 = vpop.f32.mrf.mxu1  ;;  %v1129_v24 = vsel %vm1001_vm6, %v937_v3, %v1065_v10 }
 0x175   :  { %v940_v4 = vadd.f32 %v2492_v0, %v847_v23  ;;  %v851_v14 = vadd.f32 %v850_v31, %v2452_v44  ;;  %v1130_v11 = vsel %vm1002_vm7, %v938_v60, %v1066_v39  ;;  %vm1003_vm8 = vcmp.ge.f32.partialorder %v939_v43, 0.0 }
 0x176   :  { %v852_v41 = vpop.f32.mrf.mxu1  ;;  %1373 = vmatprep.mubr.f32.mxu0 %v1130_v11  ;;  %v1067_v2 = vmul.f32 0.01, %v939_v43 }
 0x177   :  { %v941_v51 = vadd.f32 %v2489_v61, %v851_v14  ;;  %v853_v22 = vadd.f32 %v852_v41, %v2454_v45  ;;  %1374 = vmatmul.mubr.f32.gmra.mxu0 %v1129_v24  ;;  %vm1004_vm9 = vcmp.ge.f32.partialorder %v940_v4, 0.0  ;;  %v1068_v42 = vmul.f32 0.01, %v940_v4 }
 0x178   :  { %v856_v1 = vpop.f32.mrf.mxu1  ;;  %v1131_v12 = vsel %vm1003_vm8, %v939_v43, %v1067_v2 }
 0x179   :  { %v942_v26 = vadd.f32 %v2492_v0, %v853_v22  ;;  %v857_v13 = vadd.f32 %v856_v1, %v2458_v48  ;;  %v1132_v34 = vsel %vm1004_vm9, %v940_v4, %v1068_v42  ;;  %vm1005_vm10 = vcmp.ge.f32.partialorder %v941_v51, 0.0 }
 0x17a   :  { %v858_v44 = vpop.f32.mrf.mxu1  ;;  %1379 = vmatprep.mubr.f32.mxu0 %v1132_v34  ;;  %v1069_v55 = vmul.f32 0.01, %v941_v51 }
 0x17b   :  { %v943_v27 = vadd.f32 %v2489_v61, %v857_v13  ;;  %v859_v58 = vadd.f32 %v858_v44, %v2460_v49  ;;  %1380 = vmatmul.mubr.f32.gmra.mxu0 %v1131_v12  ;;  %vm1006_vm11 = vcmp.ge.f32.partialorder %v942_v26, 0.0  ;;  %v1070_v45 = vmul.f32 0.01, %v942_v26  ;;  %v1141_v44 = vld [vmem:[%s2853_s6] sm:$0x3] }
 0x17c   :  { %v862_v15 = vpop.f32.mrf.mxu1  ;;  %v1133_v7 = vsel %vm1005_vm10, %v941_v51, %v1069_v55  ;;  %v2871_v55 = vld [vmem:[#allocation9_spill] sm:$0xff] }
 0x17d   :  { %v944_v19 = vadd.f32 %v2492_v0, %v859_v58  ;;  %v863_v8 = vadd.f32 %v862_v15, %v2467_v52  ;;  %v1134_v29 = vsel %vm1006_vm11, %v942_v26, %v1070_v45  ;;  %vm1007_vm12 = vcmp.ge.f32.partialorder %v943_v27, 0.0  ;;  %v2872_v45 = vld [vmem:[#allocation7_spill] sm:$0xff] }
 0x17e   :  { %v864_v48 = vpop.f32.mrf.mxu1  ;;  %1385 = vmatprep.mubr.f32.mxu0 %v1134_v29  ;;  %v1071_v47 = vmul.f32 0.01, %v943_v27  ;;  %v2671_v15 = vrot.slane %v1141_v44, %v2872_v45 }
 0x17f   :  { %v945_v16 = vadd.f32 %v2489_v61, %v863_v8  ;;  %v865_v30 = vadd.f32 %v864_v48, %v2868_v5  ;;  %1386 = vmatmul.mubr.f32.gmra.mxu0 %v1133_v7  ;;  %vm1008_vm13 = vcmp.ge.f32.partialorder %v944_v19, 0.0  ;;  %v1072_v49 = vmul.f32 0.01, %v944_v19 }
 0x180   :  { %v868_v50 = vpop.f32.mrf.mxu1  ;;  %v1135_v53 = vsel %vm1007_vm12, %v943_v27, %v1071_v47  ;;  %v2668_v27 = vrot.slane %v1141_v44, %v2871_v55 }
 0x181   :  { %v946_v37 = vadd.f32 %v2492_v0, %v865_v30  ;;  %v869_v17 = vadd.f32 %v868_v50, %v2869_v6  ;;  %v1136_v32 = vsel %vm1008_vm13, %v944_v19, %v1072_v49  ;;  %vm1009_vm14 = vcmp.ge.f32.partialorder %v945_v16, 0.0 }
 0x182   :  { %v870_v52 = vpop.f32.mrf.mxu1  ;;  %1391 = vmatprep.mubr.f32.mxu0 %v1136_v32  ;;  %v1073_v54 = vmul.f32 0.01, %v945_v16 }
 0x183   :  { %v947_v63 = vadd.f32 %v2489_v61, %v869_v17  ;;  %v871_v33 = vadd.f32 %v870_v52, %v2870_v62  ;;  %1392 = vmatmul.mubr.f32.gmra.mxu0 %v1135_v53  ;;  %vm1010_vm15 = vcmp.ge.f32.partialorder %v946_v37, 0.0  ;;  %v1074_v18 = vmul.f32 0.01, %v946_v37 }
 0x184   :  { %v1137_v40 = vsel %vm1009_vm14, %v945_v16, %v1073_v54 }
 0x185   :  { %v948_v28 = vadd.f32 %v2492_v0, %v871_v33  ;;  %v1138_v46 = vsel %vm1010_vm15, %v946_v37, %v1074_v18  ;;  %v1075_v35 = vmul.f32 0.01, %v947_v63  ;;  %vm1011_vm1 = vcmp.ge.f32.partialorder %v947_v63, 0.0  ;;  %v2683_v37 = vld [vmem:[%s2854_s7] sm:$0x3]  ;;  %s1814_s7 = smov [#allocation2]  }
 0x186   :  { %1397 = vmatprep.mubr.f32.mxu0 %v1138_v46  ;;  %v1610_v17 = vrot.slane %v2683_v37, %v2871_v55  ;;  %s1713_s25 = sshll.u32 %s1814_s7, 4  ;;  %s1714_s25 = int_to_ptr.vmem [resolvable:$true] %s1713_s25 }
 0x187   :  { %1398 = vmatmul.mubr.f32.gmra.mxu0 %v1137_v40  ;;  %vm1012_vm0 = vcmp.ge.f32.partialorder %v948_v28, 0.0  ;;  %v1076_v25 = vmul.f32 0.01, %v948_v28  ;;  %v1139_v3 = vsel %vm1011_vm1, %v947_v63, %v1075_v35  ;;  %s1790_s26 = scalar_lea.vmem %s1714_s25, 32  ;;  %p1795_p1 = scmp.lt.s32.totalorder %s1714_s25, %s1714_s25 }
 0x188   :  { %1677 = vmatprep.mubr.f32.mxu1 %v1610_v17  ;;  %p1791_p0 = scmp.ne.s32.totalorder %s1714_s25, %s1790_s26  ;;  %p1796_p2 = scmp.lt.s32.totalorder %s1790_s26, %s1790_s26 }
 0x189   :  { %v1140_v20 = vsel %vm1012_vm0, %v948_v28, %v1076_v25 }
 0x18a   :  { %1403 = vmatprep.mubr.f32.mxu0 %v1140_v20  ;;  %p1797_p3 = por %p1796_p2, %p1795_p1 }
 0x18b   :  { %1404 = vmatmul.mubr.f32.gmra.mxu0 %v1139_v3 }
 0x18c   :  { %p1798_p4 = pnand %p1797_p3, %p1791_p0 }
 0x1cf   :  { %v2622_v61 = vpop.f32.mrf.mxu0 }
 0x1d1   :  { %v2624_v9 = vpop.f32.mrf.mxu0 }
 0x1d3   :  { %v2626_v36 = vpop.f32.mrf.mxu0 }
 0x1d5   :  { %v2628_v56 = vpop.f32.mrf.mxu0 }
 0x1d7   :  { %v2630_v0 = vpop.f32.mrf.mxu0 }
 0x1d9   :  { %v2632_v60 = vpop.f32.mrf.mxu0 }
 0x1db   :  { %v2634_v21 = vpop.f32.mrf.mxu0 }
 0x1dd   :  { %v2636_v57 = vpop.f32.mrf.mxu0 }
 0x1df   :  { %v2638_v38 = vpop.f32.mrf.mxu0 }
 0x1e1   :  { %v2640_v59 = vpop.f32.mrf.mxu0 }
 0x1e3   :  { %v2642_v10 = vpop.f32.mrf.mxu0 }
 0x1e5   :  { %v2644_v43 = vpop.f32.mrf.mxu0 }
 0x1e7   :  { %v2646_v23 = vpop.f32.mrf.mxu0 }
 0x1e9   :  { %v2648_v39 = vpop.f32.mrf.mxu0 }
 0x1eb   :  { %v2650_v31 = vpop.f32.mrf.mxu0 }
 0x1ed   :  { %v2652_v4 = vpop.f32.mrf.mxu0 }
 0x1ef   :  { %v2654_v14 = vpop.f32.mrf.mxu0 }
 0x1f1   :  { %v2656_v11 = vpop.f32.mrf.mxu0 }
 0x1f2   :  { %v1270_v17 = vadd.f32 %v2656_v11, %v2668_v27 }
 0x1f3   :  { %v2658_v41 = vpop.f32.mrf.mxu0 }
 0x1f4   :  { %vm1427_vm0 = vcmp.ge.f32.partialorder %v1270_v17, 0.0 }
 0x1f5   :  { %v2660_v24 = vpop.f32.mrf.mxu0 }
 0x1f7   :  { %v2662_v2 = vpop.f32.mrf.mxu0 }
 0x1f9   :  { %v1281_v51 = vpop.f32.mrf.mxu0 }
 0x1fa   :  { %v1282_v55 = vadd.f32 %v1281_v51, %v2668_v27 }
 0x1fb   :  { %v1285_v22 = vpop.f32.mrf.mxu0 }
 0x1fc   :  { %vm1431_vm12 = vcmp.ge.f32.partialorder %v1282_v55, 0.0 }
 0x1fd   :  { %v1287_v42 = vpop.f32.mrf.mxu0 }
 0x1fe   :  { %v1288_v20 = vadd.f32 %v1287_v42, %v2668_v27 }
 0x1ff   :  { %v1291_v1 = vpop.f32.mrf.mxu0 }
 0x200   :  { %v1292_v46 = vadd.f32 %v1291_v1, %v2671_v15  ;;  %vm1433_vm10 = vcmp.ge.f32.partialorder %v1288_v20, 0.0 }
 0x201   :  { %v1293_v26 = vpop.f32.mrf.mxu0 }
 0x202   :  { %v1294_v62 = vadd.f32 %v1293_v26, %v2668_v27  ;;  %v1498_v44 = vmul.f32 0.01, %v1292_v46  ;;  %vm1434_vm9 = vcmp.ge.f32.partialorder %v1292_v46, 0.0 }
 0x203   :  { %v1297_v13 = vpop.f32.mrf.mxu0 }
 0x204   :  { %v1298_v52 = vadd.f32 %v1297_v13, %v2671_v15  ;;  %v1499_v3 = vmul.f32 0.01, %v1294_v62  ;;  %vm1435_vm8 = vcmp.ge.f32.partialorder %v1294_v62, 0.0 }
 0x205   :  { %v1299_v34 = vpop.f32.mrf.mxu0 }
 0x206   :  { %v1300_v49 = vadd.f32 %v1299_v34, %v2668_v27  ;;  %v1500_v40 = vmul.f32 0.01, %v1298_v52  ;;  %vm1436_vm7 = vcmp.ge.f32.partialorder %v1298_v52, 0.0  ;;  %v1286_v34 = vadd.f32 %v1285_v22, %v2671_v15 }
 0x207   :  { %v1303_v12 = vpop.f32.mrf.mxu0  ;;  %v1563_v42 = vsel %vm1435_vm8, %v1294_v62, %v1499_v3  ;;  %v1562_v22 = vsel %vm1434_vm9, %v1292_v46, %v1498_v44  ;;  %v1258_v3 = vadd.f32 %v2648_v39, %v2668_v27  ;;  %v1256_v44 = vadd.f32 %v2646_v23, %v2671_v15 }
 0x208   :  { %v1304_v47 = vadd.f32 %v1303_v12, %v2671_v15  ;;  %v1501_v33 = vmul.f32 0.01, %v1300_v49  ;;  %vm1437_vm6 = vcmp.ge.f32.partialorder %v1300_v49, 0.0  ;;  %v1564_v1 = vsel %vm1436_vm7, %v1298_v52, %v1500_v40 }
 0x209   :  { %v1305_v58 = vpop.f32.mrf.mxu0  ;;  %vm1432_vm11 = vcmp.ge.f32.partialorder %v1286_v34, 0.0  ;;  %v1262_v40 = vadd.f32 %v2650_v31, %v2671_v15 }
 0x20a   :  { %v1306_v19 = vadd.f32 %v1305_v58, %v2668_v27  ;;  %v1502_v53 = vmul.f32 0.01, %v1304_v47  ;;  %vm1438_vm5 = vcmp.ge.f32.partialorder %v1304_v47, 0.0  ;;  %v1565_v26 = vsel %vm1437_vm6, %v1300_v49, %v1501_v33 }
 0x20b   :  { %v1309_v8 = vpop.f32.mrf.mxu0  ;;  %v1497_v58 = vmul.f32 0.01, %v1288_v20  ;;  %v1264_v33 = vadd.f32 %v2652_v4, %v2668_v27 }
 0x20c   :  { %v1310_v29 = vadd.f32 %v1309_v8, %v2671_v15  ;;  %v1503_v16 = vmul.f32 0.01, %v1306_v19  ;;  %vm1439_vm4 = vcmp.ge.f32.partialorder %v1306_v19, 0.0  ;;  %v1566_v25 = vsel %vm1438_vm5, %v1304_v47, %v1502_v53 }
 0x20d   :  { %v1311_v48 = vpop.f32.mrf.mxu0  ;;  %v1280_v8 = vadd.f32 %v2662_v2, %v2671_v15  ;;  %v1495_v47 = vmul.f32 0.01, %v1282_v55  ;;  %v1561_v51 = vsel %vm1433_vm10, %v1288_v20, %v1497_v58  ;;  %v1268_v53 = vadd.f32 %v2654_v14, %v2671_v15 }
 0x20e   :  { %v1312_v7 = vadd.f32 %v1311_v48, %v2668_v27  ;;  %v1504_v5 = vmul.f32 0.01, %v1310_v29  ;;  %vm1440_vm2 = vcmp.ge.f32.partialorder %v1310_v29, 0.0  ;;  %v1567_v18 = vsel %vm1439_vm4, %v1306_v19, %v1503_v16 }
 0x20f   :  { %v2677_v30 = vpop.f32.mrf.mxu0  ;;  %v1494_v49 = vmul.f32 0.01, %v1280_v8  ;;  %vm1430_vm13 = vcmp.ge.f32.partialorder %v1280_v8, 0.0  ;;  %vm1426_vm1 = vcmp.ge.f32.partialorder %v1268_v53, 0.0  ;;  %v1252_v58 = vadd.f32 %v2644_v43, %v2668_v27 }
 0x210   :  { %v1505_v50 = vmul.f32 0.01, %v1312_v7  ;;  %vm1441_vm3 = vcmp.ge.f32.partialorder %v1312_v7, 0.0  ;;  %v1568_v63 = vsel %vm1440_vm2, %v1310_v29, %v1504_v5  ;;  %v1496_v29 = vmul.f32 0.01, %v1286_v34 }
 0x211   :  { %v2685_v6 = vpop.f32.mrf.mxu0  ;;  %v1274_v5 = vadd.f32 %v2658_v41, %v2671_v15  ;;  %v1558_v62 = vsel %vm1430_vm13, %v1280_v8, %v1494_v49  ;;  %vm1425_vm2 = vcmp.ge.f32.partialorder %v1264_v33, 0.0  ;;  %vm1423_vm4 = vcmp.ge.f32.partialorder %v1258_v3, 0.0 }
 0x212   :  { %v1569_v32 = vsel %vm1441_vm3, %v1312_v7, %v1505_v50  ;;  %v1276_v7 = vadd.f32 %v2660_v24, %v2668_v27  ;;  %v1560_v50 = vsel %vm1432_vm11, %v1286_v34, %v1496_v29  ;;  %v1559_v24 = vsel %vm1431_vm12, %v1282_v55, %v1495_v47 }
 0x213   :  { %v2690_v54 = vpop.f32.mrf.mxu0  ;;  %1613 = vmatprep.subr.mxu1 %v1569_v32  ;;  %vm1428_vm15 = vcmp.ge.f32.partialorder %v1274_v5, 0.0  ;;  %vm1424_vm3 = vcmp.ge.f32.partialorder %v1262_v40, 0.0  ;;  %v1250_v29 = vadd.f32 %v2642_v10, %v2671_v15  ;;  %v1246_v47 = vadd.f32 %v2640_v59, %v2668_v27 }
 0x214   :  { %1614 = vmatpush1.xpose.msra.mxu1 %v1568_v63  ;;  %v1493_v32 = vmul.f32 0.01, %v1276_v7  ;;  %vm1429_vm14 = vcmp.ge.f32.partialorder %v1276_v7, 0.0  ;;  %v1492_v63 = vmul.f32 0.01, %v1274_v5  ;;  %vm1422_vm5 = vcmp.ge.f32.partialorder %v1256_v44, 0.0 }
 0x215   :  { %v2693_v28 = vpop.f32.mrf.mxu0  ;;  %1615 = vmatprep.subr.mxu1 %v1567_v18  ;;  %v1491_v18 = vmul.f32 0.01, %v1270_v17  ;;  %vm1421_vm6 = vcmp.ge.f32.partialorder %v1252_v58, 0.0  ;;  %v1244_v49 = vadd.f32 %v2638_v38, %v2671_v15  ;;  %vm1420_vm7 = vcmp.ge.f32.partialorder %v1250_v29, 0.0 }
 0x216   :  { %v1557_v11 = vsel %vm1429_vm14, %v1276_v7, %v1493_v32  ;;  %v1556_v20 = vsel %vm1428_vm15, %v1274_v5, %v1492_v63  ;;  %v1240_v32 = vadd.f32 %v2636_v57, %v2668_v27  ;;  %vm1419_vm8 = vcmp.ge.f32.partialorder %v1246_v47, 0.0 }
 0x217   :  { %v2696_v35 = vpop.f32.mrf.mxu0  ;;  %v1555_v4 = vsel %vm1427_vm0, %v1270_v17, %v1491_v18  ;;  %v1238_v63 = vadd.f32 %v2634_v21, %v2671_v15  ;;  %v1234_v18 = vadd.f32 %v2632_v60, %v2668_v27  ;;  %vm1418_vm9 = vcmp.ge.f32.partialorder %v1244_v49, 0.0 }
 0x218   :  { %1616 = vmatpush1.xpose.msra.mxu1 %v1566_v25  ;;  %v1490_v25 = vmul.f32 0.01, %v1268_v53  ;;  %vm1417_vm10 = vcmp.ge.f32.partialorder %v1240_v32, 0.0 }
 0x219   :  { %v2699_v13 = vpop.f32.mrf.mxu0  ;;  %1617 = vmatprep.subr.mxu1 %v1565_v26  ;;  %v1489_v26 = vmul.f32 0.01, %v1264_v33  ;;  %vm1416_vm11 = vcmp.ge.f32.partialorder %v1238_v63, 0.0  ;;  %vm1415_vm12 = vcmp.ge.f32.partialorder %v1234_v18, 0.0 }
 0x21a   :  { %v1554_v55 = vsel %vm1426_vm1, %v1268_v53, %v1490_v25  ;;  %v1232_v25 = vadd.f32 %v2630_v0, %v2671_v15 }
 0x21b   :  { %v2702_v12 = vpop.f32.mrf.mxu0  ;;  %v1553_v39 = vsel %vm1425_vm2, %v1264_v33, %v1489_v26  ;;  %v1228_v26 = vadd.f32 %v2628_v56, %v2668_v27 }
 0x21c   :  { %1618 = vmatpush1.xpose.msra.mxu1 %v1564_v1  ;;  %v1488_v1 = vmul.f32 0.01, %v1262_v40  ;;  %vm1414_vm13 = vcmp.ge.f32.partialorder %v1232_v25, 0.0 }
 0x21d   :  { %v2705_v19 = vpop.f32.mrf.mxu0  ;;  %1619 = vmatprep.subr.mxu1 %v1563_v42  ;;  %v1487_v42 = vmul.f32 0.01, %v1258_v3  ;;  %vm1413_vm14 = vcmp.ge.f32.partialorder %v1228_v26, 0.0 }
 0x21e   :  { %v1552_v7 = vsel %vm1424_vm3, %v1262_v40, %v1488_v1  ;;  %v1226_v1 = vadd.f32 %v2626_v36, %v2671_v15 }
 0x21f   :  { %v2709_v48 = vpop.f32.mrf.mxu0  ;;  %v1551_v43 = vsel %vm1423_vm4, %v1258_v3, %v1487_v42  ;;  %v1222_v42 = vadd.f32 %v2624_v9, %v2668_v27 }
 0x220   :  { %1620 = vmatpush1.xpose.msra.mxu1 %v1562_v22  ;;  %v1486_v22 = vmul.f32 0.01, %v1256_v44  ;;  %vm1412_vm15 = vcmp.ge.f32.partialorder %v1226_v1, 0.0 }
 0x221   :  { %v2713_v16 = vpop.f32.mrf.mxu0  ;;  %1621 = vmatprep.subr.mxu1 %v1561_v51  ;;  %v1485_v51 = vmul.f32 0.01, %v1252_v58  ;;  %v1475_v36 = vmul.f32 0.01, %v1222_v42  ;;  %vm1411_vm0 = vcmp.ge.f32.partialorder %v1222_v42, 0.0 }
 0x222   :  { %v1550_v17 = vsel %vm1422_vm5, %v1256_v44, %v1486_v22  ;;  %v1220_v22 = vadd.f32 %v2622_v61, %v2671_v15 }
 0x223   :  { %v2717_v2 = vpop.f32.mrf.mxu0  ;;  %v1549_v59 = vsel %vm1421_vm6, %v1252_v58, %v1485_v51  ;;  %v1539_v61 = vsel %vm1411_vm0, %v1222_v42, %v1475_v36 }
 0x224   :  { %1622 = vmatpush1.xpose.msra.mxu1 %v1560_v50  ;;  %v1484_v50 = vmul.f32 0.01, %v1250_v29  ;;  %v1474_v9 = vmul.f32 0.01, %v1220_v22  ;;  %vm1410_vm1 = vcmp.ge.f32.partialorder %v1220_v22, 0.0 }
 0x225   :  { %v2721_v52 = vpop.f32.mrf.mxu0  ;;  %1623 = vmatprep.subr.mxu1 %v1559_v24  ;;  %v1483_v24 = vmul.f32 0.01, %v1246_v47 }
 0x226   :  { %v1548_v33 = vsel %vm1420_vm7, %v1250_v29, %v1484_v50 }
 0x227   :  { %v2725_v41 = vpop.f32.mrf.mxu0  ;;  %v1547_v57 = vsel %vm1419_vm8, %v1246_v47, %v1483_v24 }
 0x228   :  { %1624 = vmatpush1.xpose.msra.mxu1 %v1558_v62  ;;  %v1482_v62 = vmul.f32 0.01, %v1244_v49 }
 0x229   :  { %v2729_v46 = vpop.f32.mrf.mxu0  ;;  %1625 = vmatprep.subr.mxu1 %v1557_v11  ;;  %v1481_v11 = vmul.f32 0.01, %v1240_v32 }
 0x22a   :  { %v1546_v3 = vsel %vm1418_vm9, %v1244_v49, %v1482_v62 }
 0x22b   :  { %v2733_v14 = vpop.f32.mrf.mxu0  ;;  %v1545_v60 = vsel %vm1417_vm10, %v1240_v32, %v1481_v11  ;;  %v1538_v11 = vsel %vm1410_vm1, %v1220_v22, %v1474_v9 }
 0x22c   :  { %1626 = vmatpush1.xpose.msra.mxu1 %v1556_v20  ;;  %v1480_v20 = vmul.f32 0.01, %v1238_v63 }
 0x22d   :  { %v2737_v34 = vpop.f32.mrf.mxu0  ;;  %1627 = vmatprep.subr.mxu1 %v1555_v4  ;;  %v1479_v4 = vmul.f32 0.01, %v1234_v18 }
 0x22e   :  { %v1544_v0 = vsel %vm1416_vm11, %v1238_v63, %v1480_v20 }
 0x22f   :  { %v2741_v31 = vpop.f32.mrf.mxu0  ;;  %v1543_v56 = vsel %vm1415_vm12, %v1234_v18, %v1479_v4 }
 0x230   :  { %1628 = vmatpush1.xpose.msra.mxu1 %v1554_v55  ;;  %v1478_v55 = vmul.f32 0.01, %v1232_v25 }
 0x231   :  { %v2745_v8 = vpop.f32.mrf.mxu0  ;;  %1629 = vmatprep.subr.mxu1 %v1553_v39  ;;  %v1477_v39 = vmul.f32 0.01, %v1228_v26 }
 0x232   :  { %v1542_v51 = vsel %vm1414_vm13, %v1232_v25, %v1478_v55 }
 0x233   :  { %v2749_v23 = vpop.f32.mrf.mxu0 }
 0x234   :  { %1630 = vmatpush1.xpose.msra.mxu1 %v1552_v7  ;;  %v1476_v7 = vmul.f32 0.01, %v1226_v1 }
 0x235   :  { %v2753_v5 = vpop.f32.mrf.mxu0  ;;  %1631 = vmatprep.subr.mxu1 %v1551_v43  ;;  %v1541_v43 = vsel %vm1413_vm14, %v1228_v26, %v1477_v39 }
 0x237   :  { %v2757_v10 = vpop.f32.mrf.mxu0 }
 0x238   :  { %1632 = vmatpush1.xpose.msra.mxu1 %v1550_v17  ;;  %v1540_v17 = vsel %vm1412_vm15, %v1226_v1, %v1476_v7 }
 0x239   :  { %v2761_v53 = vpop.f32.mrf.mxu0  ;;  %1633 = vmatprep.subr.mxu1 %v1549_v59 }
 0x23b   :  { %v2765_v38 = vpop.f32.mrf.mxu0 }
 0x23c   :  { %1634 = vmatpush1.xpose.msra.mxu1 %v1548_v33 }
 0x23d   :  { %v2769_v40 = vpop.f32.mrf.mxu0  ;;  %1635 = vmatprep.subr.mxu1 %v1547_v57 }
 0x23f   :  { %v2773_v21 = vpop.f32.mrf.mxu0 }
 0x240   :  { %1636 = vmatpush1.xpose.msra.mxu1 %v1546_v3 }
 0x241   :  { %v1389_v44 = vpop.f32.mrf.mxu0  ;;  %1637 = vmatprep.subr.mxu1 %v1545_v60 }
 0x242   :  { %v1390_v60 = vadd.f32 %v1389_v44, %v2668_v27  ;;  %v1382_v44 = vadd.f32 %v2765_v38, %v2671_v15 }
 0x243   :  { %v1393_v58 = vpop.f32.mrf.mxu0 }
 0x244   :  { %1638 = vmatpush1.xpose.msra.mxu1 %v1544_v0  ;;  %v1394_v3 = vadd.f32 %v1393_v58, %v2671_v15  ;;  %v1388_v0 = vadd.f32 %v2773_v21, %v2671_v15  ;;  %v1531_v58 = vmul.f32 0.01, %v1390_v60  ;;  %vm1467_vm8 = vcmp.ge.f32.partialorder %v1390_v60, 0.0 }
 0x245   :  { %v1395_v29 = vpop.f32.mrf.mxu0  ;;  %1639 = vmatprep.subr.mxu1 %v1543_v56  ;;  %v1384_v56 = vadd.f32 %v2769_v40, %v2668_v27  ;;  %v1376_v40 = vadd.f32 %v2757_v10, %v2671_v15  ;;  %v1528_v36 = vmul.f32 0.01, %v1382_v44  ;;  %vm1464_vm11 = vcmp.ge.f32.partialorder %v1382_v44, 0.0 }
 0x246   :  { %v1396_v62 = vadd.f32 %v1395_v29, %v2668_v27  ;;  %v1532_v42 = vmul.f32 0.01, %v1394_v3  ;;  %vm1468_vm7 = vcmp.ge.f32.partialorder %v1394_v3, 0.0  ;;  %v1530_v22 = vmul.f32 0.01, %v1388_v0 }
 0x247   :  { %v1399_v47 = vpop.f32.mrf.mxu0  ;;  %v1529_v21 = vmul.f32 0.01, %v1384_v56  ;;  %vm1466_vm9 = vcmp.ge.f32.partialorder %v1388_v0, 0.0  ;;  %vm1465_vm10 = vcmp.ge.f32.partialorder %v1384_v56, 0.0  ;;  %vm1462_vm13 = vcmp.ge.f32.partialorder %v1376_v40, 0.0 }
 0x248   :  { %1640 = vmatpush1.xpose.msra.mxu1 %v1542_v51  ;;  %v1400_v33 = vadd.f32 %v1399_v47, %v2671_v15  ;;  %v1533_v1 = vmul.f32 0.01, %v1396_v62  ;;  %vm1469_vm6 = vcmp.ge.f32.partialorder %v1396_v62, 0.0  ;;  %v1596_v7 = vsel %vm1468_vm7, %v1394_v3, %v1532_v42 }
 0x249   :  { %v1401_v49 = vpop.f32.mrf.mxu0  ;;  %1641 = vmatprep.subr.mxu1 %v1541_v43  ;;  %v1378_v47 = vadd.f32 %v2761_v53, %v2668_v27  ;;  %v1595_v51 = vsel %vm1467_vm8, %v1390_v60, %v1531_v58  ;;  %v1594_v43 = vsel %vm1466_vm9, %v1388_v0, %v1530_v22  ;;  %v1593_v9 = vsel %vm1465_vm10, %v1384_v56, %v1529_v21 }
 0x24a   :  { %v1402_v32 = vadd.f32 %v1401_v49, %v2668_v27  ;;  %v1534_v26 = vmul.f32 0.01, %v1400_v33  ;;  %vm1470_vm5 = vcmp.ge.f32.partialorder %v1400_v33, 0.0  ;;  %v1597_v29 = vsel %vm1469_vm6, %v1396_v62, %v1533_v1 }
 0x24b   :  { %v1405_v50 = vpop.f32.mrf.mxu0  ;;  %v1372_v49 = vadd.f32 %v2753_v5, %v2668_v27  ;;  %v1527_v38 = vmul.f32 0.01, %v1378_v47  ;;  %vm1463_vm12 = vcmp.ge.f32.partialorder %v1378_v47, 0.0  ;;  %v1370_v53 = vadd.f32 %v2749_v23, %v2671_v15 }
 0x24c   :  { %v1406_v24 = vadd.f32 %v1405_v50, %v2671_v15  ;;  %1642 = vmatpush1.xpose.msra.mxu1 %v1540_v17  ;;  %v1535_v57 = vmul.f32 0.01, %v1402_v32  ;;  %vm1471_vm4 = vcmp.ge.f32.partialorder %v1402_v32, 0.0  ;;  %v1598_v39 = vsel %vm1470_vm5, %v1400_v33, %v1534_v26 }
 0x24d   :  { %v1407_v59 = vpop.f32.mrf.mxu0  ;;  %1643 = vmatprep.subr.mxu1 %v1539_v61  ;;  %v1526_v50 = vmul.f32 0.01, %v1376_v40  ;;  %v1592_v17 = vsel %vm1464_vm11, %v1382_v44, %v1528_v36  ;;  %v1525_v10 = vmul.f32 0.01, %v1372_v49  ;;  %vm1461_vm14 = vcmp.ge.f32.partialorder %v1372_v49, 0.0 }
 0x24e   :  { %v1408_v63 = vadd.f32 %v1407_v59, %v2668_v27  ;;  %v1536_v18 = vmul.f32 0.01, %v1406_v24  ;;  %vm1472_vm2 = vcmp.ge.f32.partialorder %v1406_v24, 0.0  ;;  %v1599_v55 = vsel %vm1471_vm4, %v1402_v32, %v1535_v57 }
 0x24f   :  { %v1366_v32 = vadd.f32 %v2745_v8, %v2668_v27  ;;  %v1364_v5 = vadd.f32 %v2741_v31, %v2671_v15  ;;  %v1524_v61 = vmul.f32 0.01, %v1370_v53  ;;  %v1590_v59 = vsel %vm1462_vm13, %v1376_v40, %v1526_v50 }
 0x250   :  { %v1537_v25 = vmul.f32 0.01, %v1408_v63  ;;  %1644 = vmatpush1.xpose.msra.mxu1 %v1538_v11  ;;  %vm1473_vm3 = vcmp.ge.f32.partialorder %v1408_v63, 0.0  ;;  %v1600_v4 = vsel %vm1472_vm2, %v1406_v24, %v1536_v18  ;;  %v1591_v24 = vsel %vm1463_vm12, %v1378_v47, %v1527_v38 }
 0x251   :  { %v1523_v23 = vmul.f32 0.01, %v1366_v32  ;;  %vm1460_vm15 = vcmp.ge.f32.partialorder %v1370_v53, 0.0  ;;  %v1589_v62 = vsel %vm1461_vm14, %v1372_v49, %v1525_v10  ;;  %vm1459_vm0 = vcmp.ge.f32.partialorder %v1366_v32, 0.0 }
 0x252   :  { %v1601_v20 = vsel %vm1473_vm3, %v1408_v63, %v1537_v25  ;;  %v1360_v63 = vadd.f32 %v2737_v34, %v2668_v27  ;;  %v1358_v8 = vadd.f32 %v2733_v14, %v2671_v15  ;;  %v1522_v33 = vmul.f32 0.01, %v1364_v5 }
 0x253   :  { %1645 = vmatprep.subr.mxu1 %v1601_v20  ;;  %v1588_v18 = vsel %vm1460_vm15, %v1370_v53, %v1524_v61  ;;  %v1354_v11 = vadd.f32 %v2729_v46, %v2668_v27  ;;  %vm1458_vm1 = vcmp.ge.f32.partialorder %v1364_v5, 0.0  ;;  %v1587_v57 = vsel %vm1459_vm0, %v1366_v32, %v1523_v23 }
 0x254   :  { %1646 = vmatpush2.xpose.msra.mxu1 %v1600_v4  ;;  %v1521_v31 = vmul.f32 0.01, %v1360_v63  ;;  %vm1457_vm2 = vcmp.ge.f32.partialorder %v1360_v63, 0.0  ;;  %v1352_v34 = vadd.f32 %v2725_v41, %v2671_v15  ;;  %v1520_v25 = vmul.f32 0.01, %v1358_v8 }
 0x255   :  { %1647 = vmatprep.subr.mxu1 %v1599_v55  ;;  %v1586_v20 = vsel %vm1458_vm1, %v1364_v5, %v1522_v33  ;;  %v1348_v3 = vadd.f32 %v2721_v52, %v2668_v27  ;;  %v1519_v14 = vmul.f32 0.01, %v1354_v11  ;;  %vm1456_vm3 = vcmp.ge.f32.partialorder %v1358_v8, 0.0  ;;  %v2873_v5 = vld [vmem:[#allocation5_spill] sm:$0xff] }
 0x256   :  { %v1585_v26 = vsel %vm1457_vm2, %v1360_v63, %v1521_v31  ;;  %vm1455_vm4 = vcmp.ge.f32.partialorder %v1354_v11, 0.0  ;;  %v1346_v46 = vadd.f32 %v2717_v2, %v2671_v15  ;;  %v1518_v4 = vmul.f32 0.01, %v1352_v34 }
 0x257   :  { %v1584_v60 = vsel %vm1456_vm3, %v1358_v8, %v1520_v25  ;;  %v1342_v1 = vadd.f32 %v2713_v16, %v2668_v27  ;;  %v1517_v41 = vmul.f32 0.01, %v1348_v3  ;;  %vm1454_vm5 = vcmp.ge.f32.partialorder %v1352_v34, 0.0 }
 0x258   :  { %1648 = vmatpush2.xpose.msra.mxu1 %v1598_v39  ;;  %v1583_v55 = vsel %vm1455_vm4, %v1354_v11, %v1519_v14  ;;  %vm1453_vm6 = vcmp.ge.f32.partialorder %v1348_v3, 0.0  ;;  %v1340_v52 = vadd.f32 %v2709_v48, %v2671_v15  ;;  %v1516_v0 = vmul.f32 0.01, %v1346_v46 }
 0x259   :  { %1649 = vmatprep.subr.mxu1 %v1597_v29  ;;  %v1582_v42 = vsel %vm1454_vm5, %v1352_v34, %v1518_v4  ;;  %v1336_v39 = vadd.f32 %v2705_v19, %v2668_v27  ;;  %v1515_v2 = vmul.f32 0.01, %v1342_v1  ;;  %vm1452_vm7 = vcmp.ge.f32.partialorder %v1346_v46, 0.0 }
 0x25a   :  { %v1581_v56 = vsel %vm1453_vm6, %v1348_v3, %v1517_v41  ;;  %vm1451_vm8 = vcmp.ge.f32.partialorder %v1342_v1, 0.0  ;;  %v1334_v16 = vadd.f32 %v2702_v12, %v2671_v15  ;;  %v1514_v58 = vmul.f32 0.01, %v1340_v52 }
 0x25b   :  { %v1580_v29 = vsel %vm1452_vm7, %v1346_v46, %v1516_v0  ;;  %v1330_v44 = vadd.f32 %v2699_v13, %v2668_v27  ;;  %v1513_v48 = vmul.f32 0.01, %v1336_v39  ;;  %vm1450_vm9 = vcmp.ge.f32.partialorder %v1340_v52, 0.0 }
 0x25c   :  { %1650 = vmatpush2.xpose.msra.mxu1 %v1596_v7  ;;  %v1579_v22 = vsel %vm1451_vm8, %v1342_v1, %v1515_v2  ;;  %vm1449_vm10 = vcmp.ge.f32.partialorder %v1336_v39, 0.0  ;;  %v1328_v19 = vadd.f32 %v2696_v35, %v2671_v15  ;;  %v1512_v7 = vmul.f32 0.01, %v1334_v16 }
 0x25d   :  { %1651 = vmatprep.subr.mxu1 %v1595_v51  ;;  %v1578_v47 = vsel %vm1450_vm9, %v1340_v52, %v1514_v58  ;;  %v1324_v21 = vadd.f32 %v2693_v28, %v2668_v27  ;;  %v1511_v12 = vmul.f32 0.01, %v1330_v44  ;;  %vm1448_vm11 = vcmp.ge.f32.partialorder %v1334_v16, 0.0 }
 0x25e   :  { %v1577_v51 = vsel %vm1449_vm10, %v1336_v39, %v1513_v48  ;;  %vm1447_vm12 = vcmp.ge.f32.partialorder %v1330_v44, 0.0  ;;  %v1322_v13 = vadd.f32 %v2690_v54, %v2671_v15  ;;  %v1510_v40 = vmul.f32 0.01, %v1328_v19 }
 0x25f   :  { %v1576_v36 = vsel %vm1448_vm11, %v1334_v16, %v1512_v7  ;;  %v1509_v35 = vmul.f32 0.01, %v1324_v21  ;;  %vm1446_vm13 = vcmp.ge.f32.partialorder %v1328_v19, 0.0  ;;  %v1575_v49 = vsel %vm1447_vm12, %v1330_v44, %v1511_v12 }
 0x260   :  { %1652 = vmatpush2.xpose.msra.mxu1 %v1594_v43  ;;  %v1318_v43 = vadd.f32 %v2685_v6, %v2668_v27  ;;  %vm1445_vm14 = vcmp.ge.f32.partialorder %v1324_v21, 0.0  ;;  %v1316_v28 = vadd.f32 %v2677_v30, %v2671_v15  ;;  %v1508_v38 = vmul.f32 0.01, %v1322_v13 }
 0x261   :  { %1653 = vmatprep.subr.mxu1 %v1593_v9  ;;  %v1574_v9 = vsel %vm1446_vm13, %v1328_v19, %v1510_v40  ;;  %vm1444_vm15 = vcmp.ge.f32.partialorder %v1322_v13, 0.0  ;;  %v1573_v54 = vsel %vm1445_vm14, %v1324_v21, %v1509_v35  ;;  %v1606_v32 = vrot.slane %v2683_v37, %v2872_v45 }
 0x262   :  { %v1507_v53 = vmul.f32 0.01, %v1318_v43  ;;  %vm1443_vm0 = vcmp.ge.f32.partialorder %v1318_v43, 0.0  ;;  %v1506_v50 = vmul.f32 0.01, %v1316_v28  ;;  %vm1442_vm1 = vcmp.ge.f32.partialorder %v1316_v28, 0.0 }
 0x263   :  { %v1813_v15 = vmov 1966171168  }
 0x264   :  { %1654 = vmatpush2.xpose.msra.mxu1 %v1592_v17  ;;  %v1572_v17 = vsel %vm1444_vm15, %v1322_v13, %v1508_v38  ;;  %v1571_v27 = vsel %vm1443_vm0, %v1318_v43, %v1507_v53  ;;  %v1570_v6 = vsel %vm1442_vm1, %v1316_v28, %v1506_v50  ;;  %v1688_v30 = vunpack.c.l.s4 %v1813_v15 }
 0x265   :  { %1655 = vmatprep.subr.mxu1 %v1591_v24 }
 0x266   :  { %v1689_v10 = vunpack.c.0.s8 %v1688_v30 }
 0x268   :  { %1656 = vmatpush2.xpose.msra.mxu1 %v1590_v59  ;;  %v1692_v61 = vsub.s32 %v1689_v10, %v2873_v5 }
 0x269   :  { %1657 = vmatprep.subr.mxu1 %v1589_v62  ;;  %v2874_v62 = vlaneseq }
 0x26b   :  { %vm1704_vm2 = vcmp.lt.s32.totalorder %v2874_v62, 256 }
 0x26c   :  { %1658 = vmatpush2.xpose.msra.mxu1 %v1588_v18 }
 0x26d   :  { %1659 = vmatprep.subr.mxu1 %v1587_v57 }
 0x270   :  { %1660 = vmatpush2.xpose.msra.mxu1 %v1586_v20 }
 0x271   :  { %1661 = vmatprep.subr.mxu1 %v1585_v26 }
 0x274   :  { %1662 = vmatpush2.xpose.msra.mxu1 %v1584_v60 }
 0x275   :  { %1663 = vmatprep.subr.mxu1 %v1583_v55 }
 0x278   :  { %1664 = vmatpush2.xpose.msra.mxu1 %v1582_v42 }
 0x279   :  { %1665 = vmatprep.subr.mxu1 %v1581_v56 }
 0x27c   :  { %1666 = vmatpush2.xpose.msra.mxu1 %v1580_v29 }
 0x27d   :  { %1667 = vmatprep.subr.mxu1 %v1579_v22 }
 0x280   :  { %1668 = vmatpush2.xpose.msra.mxu1 %v1578_v47 }
 0x281   :  { %1669 = vmatprep.subr.mxu1 %v1577_v51 }
 0x284   :  { %1670 = vmatpush2.xpose.msra.mxu1 %v1576_v36 }
 0x285   :  { %1671 = vmatprep.subr.mxu1 %v1575_v49 }
 0x288   :  { %1672 = vmatpush2.xpose.msra.mxu1 %v1574_v9 }
 0x289   :  { %1673 = vmatprep.subr.mxu1 %v1573_v54 }
 0x28c   :  { %1674 = vmatpush2.xpose.msra.mxu1 %v1572_v17 }
 0x28d   :  { %1675 = vmatprep.subr.mxu1 %v1571_v27 }
 0x290   :  { %1676 = vmatpush2.xpose.msra.mxu1 %v1570_v6 }
 0x293   :  { %1678 = vmatmul.mubr.f32.vlgmr.msra.gmra.mxu1 %v1606_v32 }
 0x353   :  { %v1679_v24 = vpop.f32.mrf.mxu1 }
 0x355   :  { %v1681_v59 = vpop.f32.mrf.mxu1 }
 0x356   :  { %v1686_v63 = vcombine.low %v1679_v24, %v1681_v59 }
 0x358   :  { %v1693_v23 = vrot.slane %v1686_v63, %v1692_v61 }
 0x35a   :  { %v1700_v8 = vrot.slane %v1693_v23, %v1692_v61 }
 0x35c   :  { %1706 = vst.msk [vmem:[#allocation2] sm:$0x3] %vm1704_vm2, %v1700_v8 }
 0x35d   :  { %1801 = shalt.err (!%p1798_p4)
}
 0x35e   :  { %1716 = dma.vmem_to_hbm [thread:$0]  %s1714_s25, 32, %s2855_s8, [#allocation3]  }
 0x35f   :  { %1810 = dma.done.wait [#allocation3], 32  }
 0x360   :  { %1811 = vsyncadd [#allocation3], 4294967264 }
 0x361   :  { %1720 = vsyncpa [#allocation3], 1 }

// kernel: tpu_custom_call.1
= control target key start
LH: loop header
LB: loop body
LE: loop exit
PB: predicated region body
PF: predicated region fallthrough
CT: control target
= control target key end

     0   :  { %vm165_vm0 = vcmask 64512   ;;  %v1812_v3 = vmov 0.0   ;;  %s2847_s0 = inlined_call_operand.vmem [shape: f32[256,16], index: 0, kind: input, shape index: {}]   ;;  %s2848_s1 = inlined_call_operand.vmem [shape: f32[256,8], index: 1, kind: input, shape index: {}]   ;;  %s2849_s2 = inlined_call_operand.vmem [shape: f32[16,256], index: 2, kind: input, shape index: {}]   ;;  %s2850_s3 = inlined_call_operand.vmem [shape: f32[8,256], index: 3, kind: input, shape index: {}]   ;;  %s2851_s4 = inlined_call_operand.vmem [shape: f32[1,256], index: 4, kind: input, shape index: {}]   ;;  %s2852_s5 = inlined_call_operand.vmem [shape: f32[256,256], index: 5, kind: input, shape index: {}]   ;;  %s2853_s6 = inlined_call_operand.vmem [shape: f32[1,256], index: 6, kind: input, shape index: {}]   ;;  %s2854_s7 = inlined_call_operand.vmem [shape: f32[1,256], index: 7, kind: input, shape index: {}]   ;;  %s2855_s8 = inlined_call_operand.hbm [shape: f32[1,1,256], index: 8, kind: output, shape index: {}]  }
   0x1   :  { %v35_v0 = vld [vmem:[%s2850_s3 + $0x8] sm:$0xff]  ;;  %v34_v1 = vld [vmem:[%s2850_s3] sm:$0xff]  ;;  %422 = vmatprep.mubr.f32.mxu1 %v1812_v3  ;;  %v33_v4 = vld [vmem:[%s2849_s2 + $0x18] sm:$0xff]  ;;  %326 = vmatprep.mubr.f32.mxu0 %v1812_v3 }
   0x2   :  { %v149_v2 = vld [vmem:[%s2848_s1 + $0x80] sm:$0xff]  ;;  %1785 = vmatprep.subr.mxu1 %v35_v0  ;;  %v32_v5 = vld [vmem:[%s2849_s2 + $0x10] sm:$0xff]  ;;  %292 = vmatprep.subr.mxu0 %v35_v0  ;;  %v150_v6 = vld [vmem:[%s2848_s1 + $0x88] sm:$0xff] }
   0x3   :  { %1786 = vmatpush1.msra.mxu1 %v34_v1  ;;  %v31_v7 = vld [vmem:[%s2849_s2 + $0x8] sm:$0xff]  ;;  %v30_v8 = vld [vmem:[%s2849_s2] sm:$0xff]  ;;  %293 = vmatpush1.msra.mxu0 %v34_v1  ;;  %v151_v10 = vld [vmem:[%s2848_s1 + $0x90] sm:$0xff] }
   0x4   :  { %1737 = vmatmul.mubr.msk.f32.vlgmr.msra.gmra.mxu1 %vm165_vm0, %v149_v2  ;;  %644 = vmatprep.subr.mxu1 %v33_v4  ;;  %v133_v9 = vld [vmem:[%s2848_s1] sm:$0xff]  ;;  %v134_v11 = vld [vmem:[%s2848_s1 + $0x8] sm:$0xff]  ;;  %v152_v12 = vld [vmem:[%s2848_s1 + $0x98] sm:$0xff] }
   0x5   :  { %645 = vmatpush1.msra.mxu1 %v32_v5  ;;  %428 = vmatprep.mubr.f32.mxu1 %v1812_v3  ;;  %v135_v13 = vld [vmem:[%s2848_s1 + $0x10] sm:$0xff]  ;;  %v153_v14 = vld [vmem:[%s2848_s1 + $0xa0] sm:$0xff]  ;;  %v136_v15 = vld [vmem:[%s2848_s1 + $0x18] sm:$0xff] }
   0x6   :  { %646 = vmatprep.subr.mxu1 %v31_v7  ;;  %1721 = vmatmul.mubr.msk.f32.vlgmr.msra.gmra.mxu0 %vm165_vm0, %v133_v9 }
   0x7   :  { %647 = vmatpush1.msra.mxu1 %v30_v8  ;;  %332 = vmatprep.mubr.f32.mxu0 %v1812_v3 }
   0x8   :  { %1738 = vmatmul.mubr.msk.f32.gmra.mxu1 %vm165_vm0, %v150_v6 }
   0x9   :  { %434 = vmatprep.mubr.f32.mxu1 %v1812_v3 }
   0xa   :  { %1722 = vmatmul.mubr.msk.f32.gmra.mxu0 %vm165_vm0, %v134_v11 }
   0xb   :  { %338 = vmatprep.mubr.f32.mxu0 %v1812_v3 }
   0xc   :  { %1739 = vmatmul.mubr.msk.f32.gmra.mxu1 %vm165_vm0, %v151_v10 }
   0xd   :  { %440 = vmatprep.mubr.f32.mxu1 %v1812_v3 }
   0xe   :  { %1723 = vmatmul.mubr.msk.f32.gmra.mxu0 %vm165_vm0, %v135_v13 }
   0xf   :  { %344 = vmatprep.mubr.f32.mxu0 %v1812_v3 }
  0x10   :  { %1740 = vmatmul.mubr.msk.f32.gmra.mxu1 %vm165_vm0, %v152_v12 }
  0x11   :  { %446 = vmatprep.mubr.f32.mxu1 %v1812_v3 }
  0x14   :  { %1741 = vmatmul.mubr.msk.f32.gmra.mxu1 %vm165_vm0, %v153_v14 }
  0x15   :  { %13 = vsyncpa [#allocation3], 0  ;;  %452 = vmatprep.mubr.f32.mxu1 %v1812_v3  ;;  %v154_v16 = vld [vmem:[%s2848_s1 + $0xa8] sm:$0xff]  ;;  %1724 = vmatmul.mubr.msk.f32.gmra.mxu0 %vm165_vm0, %v136_v15  ;;  %v137_v17 = vld [vmem:[%s2848_s1 + $0x20] sm:$0xff]  ;;  %vm519_vm1 = vcmask 130048  }
  0x16   :  { %350 = vmatprep.mubr.f32.mxu0 %v1812_v3  ;;  %v155_v18 = vld [vmem:[%s2848_s1 + $0xb0] sm:$0xff]  ;;  %v138_v19 = vld [vmem:[%s2848_s1 + $0x28] sm:$0xff]  ;;  %v156_v20 = vld [vmem:[%s2848_s1 + $0xb8] sm:$0xff] }
  0x17   :  { %v139_v21 = vld [vmem:[%s2848_s1 + $0x30] sm:$0xff]  ;;  %v157_v22 = vld [vmem:[%s2848_s1 + $0xc0] sm:$0xff]  ;;  %v140_v23 = vld [vmem:[%s2848_s1 + $0x38] sm:$0xff] }
  0x18   :  { %1742 = vmatmul.mubr.msk.f32.gmra.mxu1 %vm165_vm0, %v154_v16  ;;  %v158_v24 = vld [vmem:[%s2848_s1 + $0xc8] sm:$0xff]  ;;  %v141_v25 = vld [vmem:[%s2848_s1 + $0x40] sm:$0xff]  ;;  %v159_v26 = vld [vmem:[%s2848_s1 + $0xd0] sm:$0xff] }
  0x19   :  { %458 = vmatprep.mubr.f32.mxu1 %v1812_v3  ;;  %1725 = vmatmul.mubr.msk.f32.gmra.mxu0 %vm165_vm0, %v137_v17  ;;  %v142_v27 = vld [vmem:[%s2848_s1 + $0x48] sm:$0xff]  ;;  %v160_v28 = vld [vmem:[%s2848_s1 + $0xd8] sm:$0xff]  ;;  %v143_v29 = vld [vmem:[%s2848_s1 + $0x50] sm:$0xff] }
  0x1a   :  { %356 = vmatprep.mubr.f32.mxu0 %v1812_v3  ;;  %v161_v30 = vld [vmem:[%s2848_s1 + $0xe0] sm:$0xff]  ;;  %v144_v31 = vld [vmem:[%s2848_s1 + $0x58] sm:$0xff]  ;;  %v162_v32 = vld [vmem:[%s2848_s1 + $0xe8] sm:$0xff] }
  0x1b   :  { %v145_v33 = vld [vmem:[%s2848_s1 + $0x60] sm:$0xff]  ;;  %v163_v34 = vld [vmem:[%s2848_s1 + $0xf0] sm:$0xff]  ;;  %v146_v35 = vld [vmem:[%s2848_s1 + $0x68] sm:$0xff] }
  0x1c   :  { %1743 = vmatmul.mubr.msk.f32.gmra.mxu1 %vm165_vm0, %v155_v18  ;;  %v164_v36 = vld [vmem:[%s2848_s1 + $0xf8] sm:$0xff]  ;;  %v147_v37 = vld [vmem:[%s2848_s1 + $0x70] sm:$0xff]  ;;  %v101_v38 = vld [vmem:[%s2847_s0] sm:$0xff] }
  0x1d   :  { %464 = vmatprep.mubr.f32.mxu1 %v1812_v3  ;;  %1726 = vmatmul.mubr.msk.f32.gmra.mxu0 %vm165_vm0, %v138_v19  ;;  %v148_v39 = vld [vmem:[%s2848_s1 + $0x78] sm:$0xff]  ;;  %v102_v40 = vld [vmem:[%s2847_s0 + $0x8] sm:$0xff]  ;;  %v103_v41 = vld [vmem:[%s2847_s0 + $0x10] sm:$0xff] }
  0x1e   :  { %362 = vmatprep.mubr.f32.mxu0 %v1812_v3  ;;  %v104_v42 = vld [vmem:[%s2847_s0 + $0x18] sm:$0xff]  ;;  %v66_v44 = vld [vmem:[%s2852_s5 + $0xf0] sm:$0xff]  ;;  %v65_v45 = vld [vmem:[%s2852_s5 + $0xe8] sm:$0xff] }
  0x1f   :  { %v67_v43 = vld [vmem:[%s2852_s5 + $0xf8] sm:$0xff]  ;;  %v105_v46 = vld [vmem:[%s2847_s0 + $0x20] sm:$0xff]  ;;  %v62_v49 = vld [vmem:[%s2852_s5 + $0xd0] sm:$0xff] }
  0x20   :  { %1744 = vmatmul.mubr.msk.f32.gmra.mxu1 %vm165_vm0, %v156_v20  ;;  %1153 = vmatprep.subr.mxu0 %v67_v43  ;;  %v64_v47 = vld [vmem:[%s2852_s5 + $0xe0] sm:$0xff]  ;;  %v63_v48 = vld [vmem:[%s2852_s5 + $0xd8] sm:$0xff]  ;;  %v61_v50 = vld [vmem:[%s2852_s5 + $0xc8] sm:$0xff] }
  0x21   :  { %470 = vmatprep.mubr.f32.mxu1 %v1812_v3  ;;  %1727 = vmatmul.mubr.msk.f32.gmra.mxu0 %vm165_vm0, %v139_v21  ;;  %v106_v51 = vld [vmem:[%s2847_s0 + $0x28] sm:$0xff]  ;;  %v60_v52 = vld [vmem:[%s2852_s5 + $0xc0] sm:$0xff]  ;;  %v59_v53 = vld [vmem:[%s2852_s5 + $0xb8] sm:$0xff] }
  0x22   :  { %368 = vmatprep.mubr.f32.mxu0 %v1812_v3  ;;  %1154 = vmatpush1.msra.mxu0 %v66_v44  ;;  %v58_v54 = vld [vmem:[%s2852_s5 + $0xb0] sm:$0xff]  ;;  %v57_v55 = vld [vmem:[%s2852_s5 + $0xa8] sm:$0xff]  ;;  %v56_v57 = vld [vmem:[%s2852_s5 + $0xa0] sm:$0xff] }
  0x23   :  { %1155 = vmatprep.subr.mxu0 %v65_v45  ;;  %v107_v56 = vld [vmem:[%s2847_s0 + $0x30] sm:$0xff]  ;;  %v55_v58 = vld [vmem:[%s2852_s5 + $0x98] sm:$0xff]  ;;  %v53_v60 = vld [vmem:[%s2852_s5 + $0x88] sm:$0xff] }
  0x24   :  { %1745 = vmatmul.mubr.msk.f32.gmra.mxu1 %vm165_vm0, %v157_v22  ;;  %1156 = vmatpush1.msra.mxu0 %v64_v47  ;;  %v54_v59 = vld [vmem:[%s2852_s5 + $0x90] sm:$0xff]  ;;  %v108_v61 = vld [vmem:[%s2847_s0 + $0x38] sm:$0xff]  ;;  %v52_v62 = vld [vmem:[%s2852_s5 + $0x80] sm:$0xff] }
  0x25   :  { %476 = vmatprep.mubr.f32.mxu1 %v1812_v3  ;;  %1728 = vmatmul.mubr.msk.f32.gmra.mxu0 %vm165_vm0, %v140_v23  ;;  %v51_v63 = vld [vmem:[%s2852_s5 + $0x78] sm:$0xff]  ;;  %v50_v0 = vld [vmem:[%s2852_s5 + $0x70] sm:$0xff]  ;;  %v49_v1 = vld [vmem:[%s2852_s5 + $0x68] sm:$0xff] }
  0x26   :  { %374 = vmatprep.mubr.f32.mxu0 %v1812_v3  ;;  %1157 = vmatprep.subr.mxu0 %v63_v48  ;;  %v109_v2 = vld [vmem:[%s2847_s0 + $0x40] sm:$0xff]  ;;  %v47_v5 = vld [vmem:[%s2852_s5 + $0x58] sm:$0xff]  ;;  %v46_v6 = vld [vmem:[%s2852_s5 + $0x50] sm:$0xff] }
  0x27   :  { %1158 = vmatpush1.msra.mxu0 %v62_v49  ;;  %v48_v4 = vld [vmem:[%s2852_s5 + $0x60] sm:$0xff]  ;;  %v45_v7 = vld [vmem:[%s2852_s5 + $0x48] sm:$0xff]  ;;  %v43_v10 = vld [vmem:[%s2852_s5 + $0x38] sm:$0xff] }
  0x28   :  { %1746 = vmatmul.mubr.msk.f32.gmra.mxu1 %vm165_vm0, %v158_v24  ;;  %1159 = vmatprep.subr.mxu0 %v61_v50  ;;  %v110_v8 = vld [vmem:[%s2847_s0 + $0x48] sm:$0xff]  ;;  %v44_v9 = vld [vmem:[%s2852_s5 + $0x40] sm:$0xff]  ;;  %v42_v11 = vld [vmem:[%s2852_s5 + $0x30] sm:$0xff] }
  0x29   :  { %482 = vmatprep.mubr.f32.mxu1 %v1812_v3  ;;  %1729 = vmatmul.mubr.msk.f32.gmra.mxu0 %vm165_vm0, %v141_v25  ;;  %v41_v12 = vld [vmem:[%s2852_s5 + $0x28] sm:$0xff]  ;;  %v111_v13 = vld [vmem:[%s2847_s0 + $0x50] sm:$0xff]  ;;  %v40_v14 = vld [vmem:[%s2852_s5 + $0x20] sm:$0xff] }
  0x2a   :  { %380 = vmatprep.mubr.f32.mxu0 %v1812_v3  ;;  %1160 = vmatpush1.msra.mxu0 %v60_v52  ;;  %v39_v15 = vld [vmem:[%s2852_s5 + $0x18] sm:$0xff]  ;;  %v38_v16 = vld [vmem:[%s2852_s5 + $0x10] sm:$0xff]  ;;  %v37_v17 = vld [vmem:[%s2852_s5 + $0x8] sm:$0xff] }
  0x2b   :  { %1161 = vmatprep.subr.mxu0 %v59_v53  ;;  %v112_v18 = vld [vmem:[%s2847_s0 + $0x58] sm:$0xff]  ;;  %v36_v19 = vld [vmem:[%s2852_s5] sm:$0xff]  ;;  %v98_v21 = vld [vmem:[%s2852_s5 + $0x1f0] sm:$0xff] }
  0x2c   :  { %1747 = vmatmul.mubr.msk.f32.gmra.mxu1 %vm165_vm0, %v159_v26  ;;  %1162 = vmatpush1.msra.mxu0 %v58_v54  ;;  %v99_v20 = vld [vmem:[%s2852_s5 + $0x1f8] sm:$0xff]  ;;  %v97_v22 = vld [vmem:[%s2852_s5 + $0x1e8] sm:$0xff]  ;;  %v113_v23 = vld [vmem:[%s2847_s0 + $0x60] sm:$0xff] }
  0x2d   :  { %488 = vmatprep.mubr.f32.mxu1 %v1812_v3  ;;  %1730 = vmatmul.mubr.msk.f32.gmra.mxu0 %vm165_vm0, %v142_v27  ;;  %v96_v24 = vld [vmem:[%s2852_s5 + $0x1e0] sm:$0xff]  ;;  %v95_v25 = vld [vmem:[%s2852_s5 + $0x1d8] sm:$0xff]  ;;  %v94_v26 = vld [vmem:[%s2852_s5 + $0x1d0] sm:$0xff] }
  0x2e   :  { %386 = vmatprep.mubr.f32.mxu0 %v1812_v3  ;;  %1163 = vmatprep.subr.mxu0 %v57_v55  ;;  %v93_v27 = vld [vmem:[%s2852_s5 + $0x1c8] sm:$0xff]  ;;  %v117_v43 = vld [vmem:[%s2847_s0 + $0x80] sm:$0xff]  ;;  %v79_v45 = vld [vmem:[%s2852_s5 + $0x158] sm:$0xff] }
  0x2f   :  { %1164 = vmatpush1.msra.mxu0 %v56_v57  ;;  %v80_v44 = vld [vmem:[%s2852_s5 + $0x160] sm:$0xff]  ;;  %v77_v47 = vld [vmem:[%s2852_s5 + $0x148] sm:$0xff]  ;;  %v75_v50 = vld [vmem:[%s2852_s5 + $0x138] sm:$0xff] }
  0x30   :  { %1748 = vmatmul.mubr.msk.f32.gmra.mxu1 %vm165_vm0, %v160_v28  ;;  %1165 = vmatprep.subr.mxu0 %v55_v58  ;;  %v114_v28 = vld [vmem:[%s2847_s0 + $0x68] sm:$0xff]  ;;  %v76_v49 = vld [vmem:[%s2852_s5 + $0x140] sm:$0xff]  ;;  %v119_v53 = vld [vmem:[%s2847_s0 + $0x90] sm:$0xff] }
  0x31   :  { %494 = vmatprep.mubr.f32.mxu1 %v1812_v3  ;;  %1731 = vmatmul.mubr.msk.f32.gmra.mxu0 %vm165_vm0, %v143_v29  ;;  %v92_v29 = vld [vmem:[%s2852_s5 + $0x1c0] sm:$0xff]  ;;  %v118_v48 = vld [vmem:[%s2847_s0 + $0x88] sm:$0xff]  ;;  %v71_v55 = vld [vmem:[%s2852_s5 + $0x118] sm:$0xff] }
  0x32   :  { %392 = vmatprep.mubr.f32.mxu0 %v1812_v3  ;;  %1166 = vmatpush1.msra.mxu0 %v54_v59  ;;  %v73_v52 = vld [vmem:[%s2852_s5 + $0x128] sm:$0xff]  ;;  %v72_v54 = vld [vmem:[%s2852_s5 + $0x120] sm:$0xff]  ;;  %v120_v58 = vld [vmem:[%s2847_s0 + $0x98] sm:$0xff] }
  0x33   :  { %1167 = vmatprep.subr.mxu0 %v53_v60  ;;  %v69_v57 = vld [vmem:[%s2852_s5 + $0x108] sm:$0xff]  ;;  %v68_v59 = vld [vmem:[%s2852_s5 + $0x100] sm:$0xff] }
  0x34   :  { %1749 = vmatmul.mubr.msk.f32.gmra.mxu1 %vm165_vm0, %v161_v30  ;;  %1168 = vmatpush1.msra.mxu0 %v52_v62  ;;  %v91_v30 = vld [vmem:[%s2852_s5 + $0x1b8] sm:$0xff]  ;;  %v121_v60 = vld [vmem:[%s2847_s0 + $0xa0] sm:$0xff]  ;;  %v123_v62 = vld [vmem:[%s2847_s0 + $0xb0] sm:$0xff] }
  0x35   :  { %500 = vmatprep.mubr.f32.mxu1 %v1812_v3  ;;  %1732 = vmatmul.mubr.msk.f32.gmra.mxu0 %vm165_vm0, %v144_v31  ;;  %v90_v31 = vld [vmem:[%s2852_s5 + $0x1b0] sm:$0xff] }
  0x36   :  { %398 = vmatprep.mubr.f32.mxu0 %v1812_v3  ;;  %1169 = vmatprep.subr.mxu0 %v51_v63  ;;  %v124_v63 = vld [vmem:[%s2847_s0 + $0xb8] sm:$0xff] }
  0x37   :  { %1170 = vmatpush1.msra.mxu0 %v50_v0  ;;  %v125_v0 = vld [vmem:[%s2847_s0 + $0xc0] sm:$0xff] }
  0x38   :  { %1750 = vmatmul.mubr.msk.f32.gmra.mxu1 %vm165_vm0, %v162_v32  ;;  %1171 = vmatprep.subr.mxu0 %v49_v1  ;;  %v89_v32 = vld [vmem:[%s2852_s5 + $0x1a8] sm:$0xff] }
  0x39   :  { %506 = vmatprep.mubr.f32.mxu1 %v1812_v3  ;;  %1733 = vmatmul.mubr.msk.f32.gmra.mxu0 %vm165_vm0, %v145_v33  ;;  %v115_v33 = vld [vmem:[%s2847_s0 + $0x70] sm:$0xff]  ;;  %v126_v1 = vld [vmem:[%s2847_s0 + $0xc8] sm:$0xff] }
  0x3a   :  { %404 = vmatprep.mubr.f32.mxu0 %v1812_v3  ;;  %1172 = vmatpush1.msra.mxu0 %v48_v4  ;;  %v128_v4 = vld [vmem:[%s2847_s0 + $0xd8] sm:$0xff] }
  0x3b   :  { %1173 = vmatprep.subr.mxu0 %v47_v5  ;;  %v129_v5 = vld [vmem:[%s2847_s0 + $0xe0] sm:$0xff] }
  0x3c   :  { %1751 = vmatmul.mubr.msk.f32.gmra.mxu1 %vm165_vm0, %v163_v34  ;;  %1174 = vmatpush1.msra.mxu0 %v46_v6  ;;  %v88_v34 = vld [vmem:[%s2852_s5 + $0x1a0] sm:$0xff]  ;;  %v130_v6 = vld [vmem:[%s2847_s0 + $0xe8] sm:$0xff] }
  0x3d   :  { %512 = vmatprep.mubr.f32.mxu1 %v1812_v3  ;;  %1734 = vmatmul.mubr.msk.f32.gmra.mxu0 %vm165_vm0, %v146_v35  ;;  %v87_v35 = vld [vmem:[%s2852_s5 + $0x198] sm:$0xff] }
  0x3e   :  { %410 = vmatprep.mubr.f32.mxu0 %v1812_v3  ;;  %1175 = vmatprep.subr.mxu0 %v45_v7  ;;  %v131_v7 = vld [vmem:[%s2847_s0 + $0xf0] sm:$0xff] }
  0x3f   :  { %1176 = vmatpush1.msra.mxu0 %v44_v9 }
  0x40   :  { %1752 = vmatmul.mubr.msk.f32.gmra.mxu1 %vm165_vm0, %v164_v36  ;;  %1177 = vmatprep.subr.mxu0 %v43_v10  ;;  %v86_v36 = vld [vmem:[%s2852_s5 + $0x190] sm:$0xff] }
  0x41   :  { %680 = vmatprep.mubr.f32.mxu1 %v1812_v3  ;;  %1735 = vmatmul.mubr.msk.f32.gmra.mxu0 %vm165_vm0, %v147_v37  ;;  %v85_v37 = vld [vmem:[%s2852_s5 + $0x188] sm:$0xff] }
  0x42   :  { %416 = vmatprep.mubr.f32.mxu0 %v1812_v3  ;;  %1178 = vmatpush1.msra.mxu0 %v42_v11 }
  0x43   :  { %1179 = vmatprep.subr.mxu0 %v41_v12 }
  0x44   :  { %1753 = vmatmul.mubr.msk.f32.vlgmr.msra.gmra.mxu1 %vm519_vm1, %v101_v38  ;;  %1180 = vmatpush1.msra.mxu0 %v40_v14  ;;  %v116_v38 = vld [vmem:[%s2847_s0 + $0x78] sm:$0xff] }
  0x45   :  { %686 = vmatprep.mubr.f32.mxu1 %v1812_v3  ;;  %1736 = vmatmul.mubr.msk.f32.gmra.mxu0 %vm165_vm0, %v148_v39  ;;  %v84_v39 = vld [vmem:[%s2852_s5 + $0x180] sm:$0xff] }
  0x46   :  { %1181 = vmatprep.subr.mxu0 %v39_v15 }
  0x47   :  { %1182 = vmatpush1.msra.mxu0 %v38_v16 }
  0x48   :  { %1754 = vmatmul.mubr.msk.f32.gmra.mxu1 %vm519_vm1, %v102_v40  ;;  %1183 = vmatprep.subr.mxu0 %v37_v17  ;;  %v83_v40 = vld [vmem:[%s2852_s5 + $0x178] sm:$0xff] }
  0x49   :  { %692 = vmatprep.mubr.f32.mxu1 %v1812_v3  ;;  %1184 = vmatpush1.msra.mxu0 %v36_v19 }
  0x4a   :  { %1185 = vmatprep.subr.mxu0 %v99_v20 }
  0x4b   :  { %1186 = vmatpush2.msra.mxu0 %v98_v21 }
  0x4c   :  { %1755 = vmatmul.mubr.msk.f32.gmra.mxu1 %vm519_vm1, %v103_v41  ;;  %1187 = vmatprep.subr.mxu0 %v97_v22  ;;  %v82_v41 = vld [vmem:[%s2852_s5 + $0x170] sm:$0xff] }
  0x4d   :  { %698 = vmatprep.mubr.f32.mxu1 %v1812_v3  ;;  %1188 = vmatpush2.msra.mxu0 %v96_v24 }
  0x4e   :  { %1189 = vmatprep.subr.mxu0 %v95_v25 }
  0x4f   :  { %1190 = vmatpush2.msra.mxu0 %v94_v26 }
  0x50   :  { %1756 = vmatmul.mubr.msk.f32.gmra.mxu1 %vm519_vm1, %v104_v42  ;;  %1191 = vmatprep.subr.mxu0 %v93_v27  ;;  %v81_v42 = vld [vmem:[%s2852_s5 + $0x168] sm:$0xff] }
  0x51   :  { %704 = vmatprep.mubr.f32.mxu1 %v1812_v3  ;;  %1192 = vmatpush2.msra.mxu0 %v92_v29 }
  0x52   :  { %1193 = vmatprep.subr.mxu0 %v91_v30 }
  0x53   :  { %1194 = vmatpush2.msra.mxu0 %v90_v31 }
  0x54   :  { %1757 = vmatmul.mubr.msk.f32.gmra.mxu1 %vm519_vm1, %v105_v46  ;;  %1195 = vmatprep.subr.mxu0 %v89_v32  ;;  %v78_v46 = vld [vmem:[%s2852_s5 + $0x150] sm:$0xff] }
  0x55   :  { %710 = vmatprep.mubr.f32.mxu1 %v1812_v3  ;;  %1196 = vmatpush2.msra.mxu0 %v88_v34 }
  0x56   :  { %1197 = vmatprep.subr.mxu0 %v87_v35 }
  0x57   :  { %1198 = vmatpush2.msra.mxu0 %v86_v36 }
  0x58   :  { %1758 = vmatmul.mubr.msk.f32.gmra.mxu1 %vm519_vm1, %v106_v51  ;;  %1199 = vmatprep.subr.mxu0 %v85_v37  ;;  %v74_v51 = vld [vmem:[%s2852_s5 + $0x130] sm:$0xff] }
  0x59   :  { %716 = vmatprep.mubr.f32.mxu1 %v1812_v3  ;;  %1200 = vmatpush2.msra.mxu0 %v84_v39 }
  0x5a   :  { %1201 = vmatprep.subr.mxu0 %v83_v40 }
  0x5b   :  { %1202 = vmatpush2.msra.mxu0 %v82_v41 }
  0x5c   :  { %1759 = vmatmul.mubr.msk.f32.gmra.mxu1 %vm519_vm1, %v107_v56  ;;  %1203 = vmatprep.subr.mxu0 %v81_v42  ;;  %v70_v56 = vld [vmem:[%s2852_s5 + $0x110] sm:$0xff] }
  0x5d   :  { %722 = vmatprep.mubr.f32.mxu1 %v1812_v3  ;;  %1204 = vmatpush2.msra.mxu0 %v80_v44 }
  0x5e   :  { %1205 = vmatprep.subr.mxu0 %v79_v45 }
  0x5f   :  { %1206 = vmatpush2.msra.mxu0 %v78_v46 }
  0x60   :  { %1760 = vmatmul.mubr.msk.f32.gmra.mxu1 %vm519_vm1, %v108_v61  ;;  %1207 = vmatprep.subr.mxu0 %v77_v47  ;;  %v122_v61 = vld [vmem:[%s2847_s0 + $0xa8] sm:$0xff]  ;;  %v2856_v47 = vlaneseq }
  0x61   :  { %728 = vmatprep.mubr.f32.mxu1 %v1812_v3  ;;  %1208 = vmatpush2.msra.mxu0 %v76_v49 }
  0x62   :  { %1209 = vmatprep.subr.mxu0 %v75_v50 }
  0x63   :  { %1210 = vmatpush2.msra.mxu0 %v74_v51  ;;  %v2465_v51 = vshrl.u32 %v2856_v47, 7 }
  0x64   :  { %1761 = vmatmul.mubr.msk.f32.gmra.mxu1 %vm519_vm1, %v109_v2  ;;  %1211 = vmatprep.subr.mxu0 %v73_v52  ;;  %v127_v2 = vld [vmem:[%s2847_s0 + $0xd0] sm:$0xff] }
  0x65   :  { %734 = vmatprep.mubr.f32.mxu1 %v1812_v3  ;;  %1212 = vmatpush2.msra.mxu0 %v72_v54  ;;  %2862 = vst [vmem:[#allocation5_spill] sm:$0xff] %v2465_v51 }
  0x66   :  { %1213 = vmatprep.subr.mxu0 %v71_v55  ;;  %v2474_v55 = vsub.s32 0, %v2465_v51 }
  0x67   :  { %1214 = vmatpush2.msra.mxu0 %v70_v56 }
  0x68   :  { %1762 = vmatmul.mubr.msk.f32.gmra.mxu1 %vm519_vm1, %v110_v8  ;;  %1215 = vmatprep.subr.mxu0 %v69_v57  ;;  %v132_v8 = vld [vmem:[%s2847_s0 + $0xf8] sm:$0xff]  ;;  %2864 = vst [vmem:[#allocation7_spill] sm:$0xff] %v2474_v55  ;;  %v873_v57 = vld [vmem:[%s2851_s4] sm:$0x3] }
  0x69   :  { %740 = vmatprep.mubr.f32.mxu1 %v1812_v3  ;;  %1216 = vmatpush2.msra.mxu0 %v68_v59 }
  0x6c   :  { %1763 = vmatmul.mubr.msk.f32.gmra.mxu1 %vm519_vm1, %v111_v13 }
  0x6d   :  { %746 = vmatprep.mubr.f32.mxu1 %v1812_v3 }
  0x70   :  { %1764 = vmatmul.mubr.msk.f32.gmra.mxu1 %vm519_vm1, %v112_v18 }
  0x71   :  { %752 = vmatprep.mubr.f32.mxu1 %v1812_v3 }
  0x74   :  { %1765 = vmatmul.mubr.msk.f32.gmra.mxu1 %vm519_vm1, %v113_v23 }
  0x75   :  { %758 = vmatprep.mubr.f32.mxu1 %v1812_v3 }
  0x78   :  { %1766 = vmatmul.mubr.msk.f32.gmra.mxu1 %vm519_vm1, %v114_v28 }
  0x79   :  { %764 = vmatprep.mubr.f32.mxu1 %v1812_v3 }
  0x7c   :  { %1767 = vmatmul.mubr.msk.f32.gmra.mxu1 %vm519_vm1, %v115_v33 }
  0x7d   :  { %770 = vmatprep.mubr.f32.mxu1 %v1812_v3 }
  0x80   :  { %1768 = vmatmul.mubr.msk.f32.gmra.mxu1 %vm519_vm1, %v116_v38 }
  0x81   :  { %776 = vmatprep.mubr.f32.mxu1 %v1812_v3 }
  0x84   :  { %1769 = vmatmul.mubr.msk.f32.gmra.mxu1 %vm519_vm1, %v117_v43 }
  0x85   :  { %782 = vmatprep.mubr.f32.mxu1 %v1812_v3 }
  0x88   :  { %1770 = vmatmul.mubr.msk.f32.gmra.mxu1 %vm519_vm1, %v118_v48 }
  0x89   :  { %788 = vmatprep.mubr.f32.mxu1 %v1812_v3 }
  0x8c   :  { %1771 = vmatmul.mubr.msk.f32.gmra.mxu1 %vm519_vm1, %v119_v53 }
  0x8d   :  { %794 = vmatprep.mubr.f32.mxu1 %v1812_v3 }
  0x90   :  { %1772 = vmatmul.mubr.msk.f32.gmra.mxu1 %vm519_vm1, %v120_v58  ;;  %v2482_v58 = vsub.s32 1, %v2465_v51 }
  0x91   :  { %800 = vmatprep.mubr.f32.mxu1 %v1812_v3 }
  0x92   :  { %2866 = vst [vmem:[#allocation9_spill] sm:$0xff] %v2482_v58 }
  0x94   :  { %1773 = vmatmul.mubr.msk.f32.gmra.mxu1 %vm519_vm1, %v121_v60 }
  0x95   :  { %806 = vmatprep.mubr.f32.mxu1 %v1812_v3 }
  0x98   :  { %1774 = vmatmul.mubr.msk.f32.gmra.mxu1 %vm519_vm1, %v122_v61  ;;  %v2489_v61 = vrot.slane %v873_v57, %v2474_v55 }
  0x99   :  { %812 = vmatprep.mubr.f32.mxu1 %v1812_v3 }
  0x9c   :  { %1775 = vmatmul.mubr.msk.f32.gmra.mxu1 %vm519_vm1, %v123_v62 }
  0x9d   :  { %818 = vmatprep.mubr.f32.mxu1 %v1812_v3 }
  0xa0   :  { %1776 = vmatmul.mubr.msk.f32.gmra.mxu1 %vm519_vm1, %v124_v63 }
  0xa1   :  { %824 = vmatprep.mubr.f32.mxu1 %v1812_v3 }
  0xa4   :  { %1777 = vmatmul.mubr.msk.f32.gmra.mxu1 %vm519_vm1, %v125_v0  ;;  %v2492_v0 = vrot.slane %v873_v57, %v2482_v58 }
  0xa5   :  { %830 = vmatprep.mubr.f32.mxu1 %v1812_v3 }
  0xa8   :  { %1778 = vmatmul.mubr.msk.f32.gmra.mxu1 %vm519_vm1, %v126_v1 }
  0xa9   :  { %836 = vmatprep.mubr.f32.mxu1 %v1812_v3 }
  0xac   :  { %1779 = vmatmul.mubr.msk.f32.gmra.mxu1 %vm519_vm1, %v127_v2 }
  0xad   :  { %842 = vmatprep.mubr.f32.mxu1 %v1812_v3 }
  0xb0   :  { %1780 = vmatmul.mubr.msk.f32.gmra.mxu1 %vm519_vm1, %v128_v4 }
  0xb1   :  { %848 = vmatprep.mubr.f32.mxu1 %v1812_v3 }
  0xb4   :  { %1781 = vmatmul.mubr.msk.f32.gmra.mxu1 %vm519_vm1, %v129_v5 }
  0xb5   :  { %854 = vmatprep.mubr.f32.mxu1 %v1812_v3 }
  0xb8   :  { %1782 = vmatmul.mubr.msk.f32.gmra.mxu1 %vm519_vm1, %v130_v6 }
  0xb9   :  { %860 = vmatprep.mubr.f32.mxu1 %v1812_v3 }
  0xbc   :  { %1783 = vmatmul.mubr.msk.f32.gmra.mxu1 %vm519_vm1, %v131_v7 }
  0xbd   :  { %866 = vmatprep.mubr.f32.mxu1 %v1812_v3 }
  0xc0   :  { %1784 = vmatmul.mubr.msk.f32.gmra.mxu1 %vm519_vm1, %v132_v8 }
  0xc4   :  { %v2390_v9 = vpop.f32.mrf.mxu1 }
  0xc6   :  { %v2392_v10 = vpop.f32.mrf.mxu1  ;;  %v328_v12 = vpop.f32.mrf.mxu0 }
  0xc8   :  { %v2394_v11 = vpop.f32.mrf.mxu1  ;;  %v330_v14 = vpop.f32.mrf.mxu0 }
  0xca   :  { %v2396_v13 = vpop.f32.mrf.mxu1  ;;  %v334_v3 = vpop.f32.mrf.mxu0 }
  0xcc   :  { %v2398_v15 = vpop.f32.mrf.mxu1  ;;  %v336_v19 = vpop.f32.mrf.mxu0 }
  0xce   :  { %v2400_v16 = vpop.f32.mrf.mxu1  ;;  %v340_v22 = vpop.f32.mrf.mxu0 }
  0xd0   :  { %v2402_v17 = vpop.f32.mrf.mxu1  ;;  %v2414_v25 = vpop.f32.mrf.mxu0 }
  0xd2   :  { %v2404_v18 = vpop.f32.mrf.mxu1 }
  0xd4   :  { %v2406_v20 = vpop.f32.mrf.mxu1 }
  0xd5   :  { %v2420_v28 = vpop.f32.mrf.mxu0 }
  0xd6   :  { %v2408_v21 = vpop.f32.mrf.mxu1 }
  0xd7   :  { %v2426_v31 = vpop.f32.mrf.mxu0 }
  0xd8   :  { %v2410_v23 = vpop.f32.mrf.mxu1 }
  0xd9   :  { %v2432_v34 = vpop.f32.mrf.mxu0 }
  0xda   :  { %v2412_v24 = vpop.f32.mrf.mxu1 }
  0xdb   :  { %v2438_v37 = vpop.f32.mrf.mxu0 }
  0xdc   :  { %v2416_v26 = vpop.f32.mrf.mxu1 }
  0xdd   :  { %v2444_v40 = vpop.f32.mrf.mxu0 }
  0xde   :  { %v2418_v27 = vpop.f32.mrf.mxu1 }
  0xdf   :  { %v2450_v43 = vpop.f32.mrf.mxu0 }
  0xe0   :  { %v2422_v29 = vpop.f32.mrf.mxu1 }
  0xe1   :  { %v2456_v46 = vpop.f32.mrf.mxu0 }
  0xe2   :  { %v2424_v30 = vpop.f32.mrf.mxu1 }
  0xe3   :  { %v2462_v50 = vpop.f32.mrf.mxu0 }
  0xe4   :  { %v2428_v32 = vpop.f32.mrf.mxu1 }
  0xe5   :  { %v2471_v54 = vpop.f32.mrf.mxu0 }
  0xe6   :  { %v2430_v33 = vpop.f32.mrf.mxu1 }
  0xe7   :  { %v2486_v60 = vpop.f32.mrf.mxu0 }
  0xe8   :  { %v2434_v35 = vpop.f32.mrf.mxu1 }
  0xe9   :  { %v2494_v2 = vpop.f32.mrf.mxu0 }
  0xea   :  { %v2436_v36 = vpop.f32.mrf.mxu1 }
  0xeb   :  { %v2498_v55 = vpop.f32.mrf.mxu0 }
  0xec   :  { %v2440_v38 = vpop.f32.mrf.mxu1 }
  0xee   :  { %v2442_v39 = vpop.f32.mrf.mxu1 }
  0xf0   :  { %v2446_v41 = vpop.f32.mrf.mxu1 }
  0xf2   :  { %v2448_v42 = vpop.f32.mrf.mxu1 }
  0xf4   :  { %v2452_v44 = vpop.f32.mrf.mxu1 }
  0xf6   :  { %v2454_v45 = vpop.f32.mrf.mxu1 }
  0xf8   :  { %v2458_v48 = vpop.f32.mrf.mxu1 }
  0xfa   :  { %v2460_v49 = vpop.f32.mrf.mxu1 }
  0xfc   :  { %v2467_v52 = vpop.f32.mrf.mxu1 }
  0xfe   :  { %v2469_v53 = vpop.f32.mrf.mxu1 }
  0xff   :  { %2863 = vst [vmem:[#allocation6_spill] sm:$0xff] %v2469_v53 }
 0x100   :  { %v2476_v56 = vpop.f32.mrf.mxu1 }
 0x101   :  { %2865 = vst [vmem:[#allocation8_spill] sm:$0xff] %v2476_v56 }
 0x102   :  { %v2484_v59 = vpop.f32.mrf.mxu1 }
 0x103   :  { %2867 = vst [vmem:[#allocation10_spill] sm:$0xff] %v2484_v59 }
 0x104   :  { %v682_v62 = vpop.f32.mrf.mxu1 }
 0x105   :  { %v683_v63 = vadd.f32 %v682_v62, %v328_v12 }
 0x106   :  { %v684_v1 = vpop.f32.mrf.mxu1 }
 0x107   :  { %v885_v4 = vadd.f32 %v2489_v61, %v683_v63  ;;  %v685_v5 = vadd.f32 %v684_v1, %v330_v14 }
 0x108   :  { %v688_v6 = vpop.f32.mrf.mxu1 }
 0x109   :  { %v886_v7 = vadd.f32 %v2492_v0, %v685_v5  ;;  %v689_v8 = vadd.f32 %v688_v6, %v334_v3  ;;  %vm949_vm2 = vcmp.ge.f32.partialorder %v885_v4, 0.0  ;;  %v1013_v47 = vmul.f32 0.01, %v885_v4  ;;  %v2502_v5 = vpop.f32.mrf.mxu0 }
 0x10a   :  { %v690_v51 = vpop.f32.mrf.mxu1 }
 0x10b   :  { %v887_v12 = vadd.f32 %v2489_v61, %v689_v8  ;;  %v691_v62 = vadd.f32 %v690_v51, %v336_v19  ;;  %vm950_vm3 = vcmp.ge.f32.partialorder %v886_v7, 0.0  ;;  %v1014_v57 = vmul.f32 0.01, %v886_v7 }
 0x10c   :  { %v694_v58 = vpop.f32.mrf.mxu1  ;;  %v1077_v1 = vsel %vm949_vm2, %v885_v4, %v1013_v47 }
 0x10d   :  { %v888_v59 = vadd.f32 %v2492_v0, %v691_v62  ;;  %v695_v56 = vadd.f32 %v694_v58, %v340_v22  ;;  %v1078_v63 = vsel %vm950_vm3, %v886_v7, %v1014_v57  ;;  %vm951_vm4 = vcmp.ge.f32.partialorder %v887_v12, 0.0  ;;  %v2508_v62 = vpop.f32.mrf.mxu0 }
 0x10e   :  { %v696_v14 = vpop.f32.mrf.mxu1  ;;  %1217 = vmatprep.mubr.f32.mxu0 %v1078_v63  ;;  %v1015_v3 = vmul.f32 0.01, %v887_v12 }
 0x10f   :  { %v889_v6 = vadd.f32 %v2489_v61, %v695_v56  ;;  %v697_v53 = vadd.f32 %v696_v14, %v2414_v25  ;;  %1218 = vmatmul.mubr.f32.vlgmr.msra.gmra.mxu0 %v1077_v1  ;;  %vm952_vm5 = vcmp.ge.f32.partialorder %v888_v59, 0.0  ;;  %v1016_v19 = vmul.f32 0.01, %v888_v59 }
 0x110   :  { %v700_v51 = vpop.f32.mrf.mxu1  ;;  %v1079_v47 = vsel %vm951_vm4, %v887_v12, %v1015_v3  ;;  %v2514_v3 = vpop.f32.mrf.mxu0 }
 0x111   :  { %v890_v8 = vadd.f32 %v2492_v0, %v697_v53  ;;  %v701_v22 = vadd.f32 %v700_v51, %v2420_v28  ;;  %v1080_v58 = vsel %vm952_vm5, %v888_v59, %v1016_v19  ;;  %vm953_vm6 = vcmp.ge.f32.partialorder %v889_v6, 0.0 }
 0x112   :  { %v702_v7 = vpop.f32.mrf.mxu1  ;;  %1223 = vmatprep.mubr.f32.mxu0 %v1080_v58  ;;  %v1017_v4 = vmul.f32 0.01, %v889_v6 }
 0x113   :  { %v891_v56 = vadd.f32 %v2489_v61, %v701_v22  ;;  %v703_v25 = vadd.f32 %v702_v7, %v2426_v31  ;;  %1224 = vmatmul.mubr.f32.gmra.mxu0 %v1079_v47  ;;  %vm954_vm7 = vcmp.ge.f32.partialorder %v890_v8, 0.0  ;;  %v1018_v57 = vmul.f32 0.01, %v890_v8 }
 0x114   :  { %v706_v63 = vpop.f32.mrf.mxu1  ;;  %v1081_v12 = vsel %vm953_vm6, %v889_v6, %v1017_v4  ;;  %v2520_v4 = vpop.f32.mrf.mxu0 }
 0x115   :  { %v892_v53 = vadd.f32 %v2492_v0, %v703_v25  ;;  %v707_v28 = vadd.f32 %v706_v63, %v2432_v34  ;;  %v1082_v59 = vsel %vm954_vm7, %v890_v8, %v1018_v57  ;;  %vm955_vm8 = vcmp.ge.f32.partialorder %v891_v56, 0.0 }
 0x116   :  { %v708_v14 = vpop.f32.mrf.mxu1  ;;  %1229 = vmatprep.mubr.f32.mxu0 %v1082_v59  ;;  %v1019_v1 = vmul.f32 0.01, %v891_v56 }
 0x117   :  { %v893_v19 = vadd.f32 %v2489_v61, %v707_v28  ;;  %v709_v31 = vadd.f32 %v708_v14, %v2438_v37  ;;  %1230 = vmatmul.mubr.f32.gmra.mxu0 %v1081_v12  ;;  %vm956_vm9 = vcmp.ge.f32.partialorder %v892_v53, 0.0  ;;  %v1020_v51 = vmul.f32 0.01, %v892_v53  ;;  %v2526_v12 = vpop.f32.mrf.mxu0 }
 0x118   :  { %v712_v22 = vpop.f32.mrf.mxu1  ;;  %v1083_v6 = vsel %vm955_vm8, %v891_v56, %v1019_v1 }
 0x119   :  { %v894_v58 = vadd.f32 %v2492_v0, %v709_v31  ;;  %v713_v34 = vadd.f32 %v712_v22, %v2444_v40  ;;  %v1084_v8 = vsel %vm956_vm9, %v892_v53, %v1020_v51  ;;  %vm957_vm10 = vcmp.ge.f32.partialorder %v893_v19, 0.0 }
 0x11a   :  { %v714_v7 = vpop.f32.mrf.mxu1  ;;  %1235 = vmatprep.mubr.f32.mxu0 %v1084_v8  ;;  %v1021_v47 = vmul.f32 0.01, %v893_v19 }
 0x11b   :  { %v895_v25 = vadd.f32 %v2489_v61, %v713_v34  ;;  %v715_v37 = vadd.f32 %v714_v7, %v2450_v43  ;;  %1236 = vmatmul.mubr.f32.gmra.mxu0 %v1083_v6  ;;  %vm958_vm11 = vcmp.ge.f32.partialorder %v894_v58, 0.0  ;;  %v1022_v57 = vmul.f32 0.01, %v894_v58  ;;  %v396_v7 = vpop.f32.mrf.mxu0 }
 0x11c   :  { %v718_v63 = vpop.f32.mrf.mxu1  ;;  %v1085_v56 = vsel %vm957_vm10, %v893_v19, %v1021_v47 }
 0x11d   :  { %v896_v28 = vadd.f32 %v2492_v0, %v715_v37  ;;  %v719_v40 = vadd.f32 %v718_v63, %v2456_v46  ;;  %v1086_v53 = vsel %vm958_vm11, %v894_v58, %v1022_v57  ;;  %vm959_vm12 = vcmp.ge.f32.partialorder %v895_v25, 0.0 }
 0x11e   :  { %v720_v59 = vpop.f32.mrf.mxu1  ;;  %1241 = vmatprep.mubr.f32.mxu0 %v1086_v53  ;;  %v1023_v14 = vmul.f32 0.01, %v895_v25  ;;  %v400_v53 = vpop.f32.mrf.mxu0 }
 0x11f   :  { %v897_v1 = vadd.f32 %v2489_v61, %v719_v40  ;;  %v721_v43 = vadd.f32 %v720_v59, %v2462_v50  ;;  %1242 = vmatmul.mubr.f32.gmra.mxu0 %v1085_v56  ;;  %vm960_vm13 = vcmp.ge.f32.partialorder %v896_v28, 0.0  ;;  %v1024_v31 = vmul.f32 0.01, %v896_v28 }
 0x120   :  { %v724_v51 = vpop.f32.mrf.mxu1  ;;  %v1087_v19 = vsel %vm959_vm12, %v895_v25, %v1023_v14 }
 0x121   :  { %v898_v22 = vadd.f32 %v2492_v0, %v721_v43  ;;  %v725_v46 = vadd.f32 %v724_v51, %v2471_v54  ;;  %v1088_v58 = vsel %vm960_vm13, %v896_v28, %v1024_v31  ;;  %vm961_vm14 = vcmp.ge.f32.partialorder %v897_v1, 0.0 }
 0x122   :  { %v726_v34 = vpop.f32.mrf.mxu1  ;;  %1247 = vmatprep.mubr.f32.mxu0 %v1088_v58  ;;  %v1025_v8 = vmul.f32 0.01, %v897_v1 }
 0x123   :  { %v899_v6 = vadd.f32 %v2489_v61, %v725_v46  ;;  %v727_v47 = vadd.f32 %v726_v34, %v2486_v60  ;;  %1248 = vmatmul.mubr.f32.gmra.mxu0 %v1087_v19  ;;  %vm962_vm15 = vcmp.ge.f32.partialorder %v898_v22, 0.0  ;;  %v1026_v50 = vmul.f32 0.01, %v898_v22  ;;  %v402_v46 = vpop.f32.mrf.mxu0 }
 0x124   :  { %v730_v37 = vpop.f32.mrf.mxu1  ;;  %v1089_v40 = vsel %vm961_vm14, %v897_v1, %v1025_v8 }
 0x125   :  { %v900_v57 = vadd.f32 %v2492_v0, %v727_v47  ;;  %v731_v63 = vadd.f32 %v730_v37, %v2494_v2  ;;  %v1090_v54 = vsel %vm962_vm15, %v898_v22, %v1026_v50  ;;  %vm963_vm0 = vcmp.ge.f32.partialorder %v899_v6, 0.0 }
 0x126   :  { %v732_v28 = vpop.f32.mrf.mxu1  ;;  %1253 = vmatprep.mubr.f32.mxu0 %v1090_v54  ;;  %v1027_v25 = vmul.f32 0.01, %v899_v6 }
 0x127   :  { %v901_v59 = vadd.f32 %v2489_v61, %v731_v63  ;;  %v733_v56 = vadd.f32 %v732_v28, %v2498_v55  ;;  %1254 = vmatmul.mubr.f32.gmra.mxu0 %v1089_v40  ;;  %vm964_vm1 = vcmp.ge.f32.partialorder %v900_v57, 0.0  ;;  %v1028_v60 = vmul.f32 0.01, %v900_v57 }
 0x128   :  { %v736_v14 = vpop.f32.mrf.mxu1  ;;  %v1091_v22 = vsel %vm963_vm0, %v899_v6, %v1027_v25 }
 0x129   :  { %v902_v43 = vadd.f32 %v2492_v0, %v733_v56  ;;  %v737_v31 = vadd.f32 %v736_v14, %v2502_v5  ;;  %v1092_v2 = vsel %vm964_vm1, %v900_v57, %v1028_v60  ;;  %vm965_vm2 = vcmp.ge.f32.partialorder %v901_v59, 0.0  ;;  %v406_v57 = vpop.f32.mrf.mxu0 }
 0x12a   :  { %v738_v51 = vpop.f32.mrf.mxu1  ;;  %1259 = vmatprep.mubr.f32.mxu0 %v1092_v2  ;;  %v1029_v1 = vmul.f32 0.01, %v901_v59 }
 0x12b   :  { %v903_v58 = vadd.f32 %v2489_v61, %v737_v31  ;;  %v739_v34 = vadd.f32 %v738_v51, %v2508_v62  ;;  %1260 = vmatmul.mubr.f32.gmra.mxu0 %v1091_v22  ;;  %vm966_vm3 = vcmp.ge.f32.partialorder %v902_v43, 0.0  ;;  %v1030_v55 = vmul.f32 0.01, %v902_v43  ;;  %v408_v14 = vpop.f32.mrf.mxu0 }
 0x12c   :  { %v742_v19 = vpop.f32.mrf.mxu1  ;;  %v1093_v37 = vsel %vm965_vm2, %v901_v59, %v1029_v1 }
 0x12d   :  { %v904_v8 = vadd.f32 %v2492_v0, %v739_v34  ;;  %v743_v47 = vadd.f32 %v742_v19, %v2514_v3  ;;  %v1094_v5 = vsel %vm966_vm3, %v902_v43, %v1030_v55  ;;  %vm967_vm4 = vcmp.ge.f32.partialorder %v903_v58, 0.0  ;;  %v412_v55 = vpop.f32.mrf.mxu0 }
 0x12e   :  { %v744_v50 = vpop.f32.mrf.mxu1  ;;  %1265 = vmatprep.mubr.f32.mxu0 %v1094_v5  ;;  %v1031_v6 = vmul.f32 0.01, %v903_v58 }
 0x12f   :  { %v905_v63 = vadd.f32 %v2489_v61, %v743_v47  ;;  %v745_v54 = vadd.f32 %v744_v50, %v2520_v4  ;;  %1266 = vmatmul.mubr.f32.gmra.mxu0 %v1093_v37  ;;  %vm968_vm5 = vcmp.ge.f32.partialorder %v904_v8, 0.0  ;;  %v1032_v62 = vmul.f32 0.01, %v904_v8 }
 0x130   :  { %v748_v28 = vpop.f32.mrf.mxu1  ;;  %v1095_v60 = vsel %vm967_vm4, %v903_v58, %v1031_v6 }
 0x131   :  { %v906_v40 = vadd.f32 %v2492_v0, %v745_v54  ;;  %v749_v25 = vadd.f32 %v748_v28, %v2526_v12  ;;  %v1096_v3 = vsel %vm968_vm5, %v904_v8, %v1032_v62  ;;  %vm969_vm6 = vcmp.ge.f32.partialorder %v905_v63, 0.0  ;;  %v414_v54 = vpop.f32.mrf.mxu0 }
 0x132   :  { %v750_v56 = vpop.f32.mrf.mxu1  ;;  %1271 = vmatprep.mubr.f32.mxu0 %v1096_v3  ;;  %v1033_v59 = vmul.f32 0.01, %v905_v63 }
 0x133   :  { %v907_v43 = vadd.f32 %v2489_v61, %v749_v25  ;;  %v751_v31 = vadd.f32 %v750_v56, %v396_v7  ;;  %1272 = vmatmul.mubr.f32.gmra.mxu0 %v1095_v60  ;;  %vm970_vm7 = vcmp.ge.f32.partialorder %v906_v40, 0.0  ;;  %v1034_v4 = vmul.f32 0.01, %v906_v40  ;;  %v418_v60 = vpop.f32.mrf.mxu0 }
 0x134   :  { %v754_v2 = vpop.f32.mrf.mxu1  ;;  %v1097_v12 = vsel %vm969_vm6, %v905_v63, %v1033_v59 }
 0x135   :  { %v908_v51 = vadd.f32 %v2492_v0, %v751_v31  ;;  %v755_v22 = vadd.f32 %v754_v2, %v400_v53  ;;  %v1098_v1 = vsel %vm970_vm7, %v906_v40, %v1034_v4  ;;  %vm971_vm8 = vcmp.ge.f32.partialorder %v907_v43, 0.0 }
 0x136   :  { %v756_v34 = vpop.f32.mrf.mxu1  ;;  %1277 = vmatprep.mubr.f32.mxu0 %v1098_v1  ;;  %v1035_v58 = vmul.f32 0.01, %v907_v43 }
 0x137   :  { %v909_v19 = vadd.f32 %v2489_v61, %v755_v22  ;;  %v757_v8 = vadd.f32 %v756_v34, %v402_v46  ;;  %1278 = vmatmul.mubr.f32.gmra.mxu0 %v1097_v12  ;;  %vm972_vm9 = vcmp.ge.f32.partialorder %v908_v51, 0.0  ;;  %v1036_v7 = vmul.f32 0.01, %v908_v51  ;;  %v420_v34 = vpop.f32.mrf.mxu0 }
 0x138   :  { %v760_v47 = vpop.f32.mrf.mxu1  ;;  %v1099_v53 = vsel %vm971_vm8, %v907_v43, %v1035_v58 }
 0x139   :  { %v910_v5 = vadd.f32 %v2492_v0, %v757_v8  ;;  %v761_v50 = vadd.f32 %v760_v47, %v406_v57  ;;  %v1100_v37 = vsel %vm972_vm9, %v908_v51, %v1036_v7  ;;  %vm973_vm10 = vcmp.ge.f32.partialorder %v909_v19, 0.0 }
 0x13a   :  { %v762_v6 = vpop.f32.mrf.mxu1  ;;  %1283 = vmatprep.mubr.f32.mxu0 %v1100_v37  ;;  %v1037_v63 = vmul.f32 0.01, %v909_v19 }
 0x13b   :  { %v911_v62 = vadd.f32 %v2489_v61, %v761_v50  ;;  %v763_v28 = vadd.f32 %v762_v6, %v408_v14  ;;  %1284 = vmatmul.mubr.f32.gmra.mxu0 %v1099_v53  ;;  %vm974_vm11 = vcmp.ge.f32.partialorder %v910_v5, 0.0  ;;  %v1038_v46 = vmul.f32 0.01, %v910_v5 }
 0x13c   :  { %v766_v40 = vpop.f32.mrf.mxu1  ;;  %v1101_v59 = vsel %vm973_vm10, %v909_v19, %v1037_v63 }
 0x13d   :  { %v912_v25 = vadd.f32 %v2492_v0, %v763_v28  ;;  %v767_v3 = vadd.f32 %v766_v40, %v412_v55  ;;  %v1102_v56 = vsel %vm974_vm11, %v910_v5, %v1038_v46  ;;  %vm975_vm12 = vcmp.ge.f32.partialorder %v911_v62, 0.0 }
 0x13e   :  { %v768_v57 = vpop.f32.mrf.mxu1  ;;  %1289 = vmatprep.mubr.f32.mxu0 %v1102_v56  ;;  %v1039_v43 = vmul.f32 0.01, %v911_v62 }
 0x13f   :  { %v913_v31 = vadd.f32 %v2489_v61, %v767_v3  ;;  %v769_v4 = vadd.f32 %v768_v57, %v414_v54  ;;  %1290 = vmatmul.mubr.f32.gmra.mxu0 %v1101_v59  ;;  %vm976_vm13 = vcmp.ge.f32.partialorder %v912_v25, 0.0  ;;  %v1040_v14 = vmul.f32 0.01, %v912_v25 }
 0x140   :  { %v772_v2 = vpop.f32.mrf.mxu1  ;;  %v1103_v55 = vsel %vm975_vm12, %v911_v62, %v1039_v43 }
 0x141   :  { %v914_v51 = vadd.f32 %v2492_v0, %v769_v4  ;;  %v773_v22 = vadd.f32 %v772_v2, %v418_v60  ;;  %v1104_v1 = vsel %vm976_vm13, %v912_v25, %v1040_v14  ;;  %vm977_vm14 = vcmp.ge.f32.partialorder %v913_v31, 0.0 }
 0x142   :  { %v774_v12 = vpop.f32.mrf.mxu1  ;;  %1295 = vmatprep.mubr.f32.mxu0 %v1104_v1  ;;  %v1041_v58 = vmul.f32 0.01, %v913_v31 }
 0x143   :  { %v915_v19 = vadd.f32 %v2489_v61, %v773_v22  ;;  %v775_v8 = vadd.f32 %v774_v12, %v420_v34  ;;  %1296 = vmatmul.mubr.f32.gmra.mxu0 %v1103_v55  ;;  %vm978_vm15 = vcmp.ge.f32.partialorder %v914_v51, 0.0  ;;  %v1042_v7 = vmul.f32 0.01, %v914_v51 }
 0x144   :  { %v778_v47 = vpop.f32.mrf.mxu1  ;;  %v1105_v53 = vsel %vm977_vm14, %v913_v31, %v1041_v58 }
 0x145   :  { %v916_v5 = vadd.f32 %v2492_v0, %v775_v8  ;;  %v779_v50 = vadd.f32 %v778_v47, %v2390_v9  ;;  %v1106_v37 = vsel %vm978_vm15, %v914_v51, %v1042_v7  ;;  %vm979_vm0 = vcmp.ge.f32.partialorder %v915_v19, 0.0 }
 0x146   :  { %v780_v6 = vpop.f32.mrf.mxu1  ;;  %1301 = vmatprep.mubr.f32.mxu0 %v1106_v37  ;;  %v1043_v54 = vmul.f32 0.01, %v915_v19 }
 0x147   :  { %v917_v63 = vadd.f32 %v2489_v61, %v779_v50  ;;  %v781_v62 = vadd.f32 %v780_v6, %v2392_v10  ;;  %1302 = vmatmul.mubr.f32.gmra.mxu0 %v1105_v53  ;;  %vm980_vm1 = vcmp.ge.f32.partialorder %v916_v5, 0.0  ;;  %v1044_v28 = vmul.f32 0.01, %v916_v5 }
 0x148   :  { %v784_v46 = vpop.f32.mrf.mxu1  ;;  %v1107_v56 = vsel %vm979_vm0, %v915_v19, %v1043_v54 }
 0x149   :  { %v918_v40 = vadd.f32 %v2492_v0, %v781_v62  ;;  %v785_v25 = vadd.f32 %v784_v46, %v2394_v11  ;;  %v1108_v3 = vsel %vm980_vm1, %v916_v5, %v1044_v28  ;;  %vm981_vm2 = vcmp.ge.f32.partialorder %v917_v63, 0.0 }
 0x14a   :  { %v786_v9 = vpop.f32.mrf.mxu1  ;;  %1307 = vmatprep.mubr.f32.mxu0 %v1108_v3  ;;  %v1045_v60 = vmul.f32 0.01, %v917_v63 }
 0x14b   :  { %v919_v57 = vadd.f32 %v2489_v61, %v785_v25  ;;  %v787_v59 = vadd.f32 %v786_v9, %v2396_v13  ;;  %1308 = vmatmul.mubr.f32.gmra.mxu0 %v1107_v56  ;;  %vm982_vm3 = vcmp.ge.f32.partialorder %v918_v40, 0.0  ;;  %v1046_v10 = vmul.f32 0.01, %v918_v40 }
 0x14c   :  { %v790_v43 = vpop.f32.mrf.mxu1  ;;  %v1109_v2 = vsel %vm981_vm2, %v917_v63, %v1045_v60 }
 0x14d   :  { %v920_v31 = vadd.f32 %v2492_v0, %v787_v59  ;;  %v791_v4 = vadd.f32 %v790_v43, %v2398_v15  ;;  %v1110_v14 = vsel %vm982_vm3, %v918_v40, %v1046_v10  ;;  %vm983_vm4 = vcmp.ge.f32.partialorder %v919_v57, 0.0 }
 0x14e   :  { %v792_v11 = vpop.f32.mrf.mxu1  ;;  %1313 = vmatprep.mubr.f32.mxu0 %v1110_v14  ;;  %v1047_v51 = vmul.f32 0.01, %v919_v57 }
 0x14f   :  { %v921_v22 = vadd.f32 %v2489_v61, %v791_v4  ;;  %v793_v1 = vadd.f32 %v792_v11, %v2400_v16  ;;  %1314 = vmatmul.mubr.f32.gmra.mxu0 %v1109_v2  ;;  %vm984_vm5 = vcmp.ge.f32.partialorder %v920_v31, 0.0  ;;  %v1048_v13 = vmul.f32 0.01, %v920_v31 }
 0x150   :  { %v796_v34 = vpop.f32.mrf.mxu1  ;;  %v1111_v19 = vsel %vm983_vm4, %v919_v57, %v1047_v51 }
 0x151   :  { %v922_v12 = vadd.f32 %v2492_v0, %v793_v1  ;;  %v797_v55 = vadd.f32 %v796_v34, %v2402_v17  ;;  %v1112_v58 = vsel %vm984_vm5, %v920_v31, %v1048_v13  ;;  %vm985_vm6 = vcmp.ge.f32.partialorder %v921_v22, 0.0 }
 0x152   :  { %v798_v15 = vpop.f32.mrf.mxu1  ;;  %1319 = vmatprep.mubr.f32.mxu0 %v1112_v58  ;;  %v1049_v8 = vmul.f32 0.01, %v921_v22 }
 0x153   :  { %v923_v7 = vadd.f32 %v2489_v61, %v797_v55  ;;  %v799_v47 = vadd.f32 %v798_v15, %v2404_v18  ;;  %1320 = vmatmul.mubr.f32.gmra.mxu0 %v1111_v19  ;;  %vm986_vm7 = vcmp.ge.f32.partialorder %v922_v12, 0.0  ;;  %v1050_v16 = vmul.f32 0.01, %v922_v12 }
 0x154   :  { %v802_v5 = vpop.f32.mrf.mxu1  ;;  %v1113_v53 = vsel %vm985_vm6, %v921_v22, %v1049_v8 }
 0x155   :  { %v924_v50 = vadd.f32 %v2492_v0, %v799_v47  ;;  %v803_v37 = vadd.f32 %v802_v5, %v2406_v20  ;;  %v1114_v6 = vsel %vm986_vm7, %v922_v12, %v1050_v16  ;;  %vm987_vm8 = vcmp.ge.f32.partialorder %v923_v7, 0.0 }
 0x156   :  { %v804_v17 = vpop.f32.mrf.mxu1  ;;  %1325 = vmatprep.mubr.f32.mxu0 %v1114_v6  ;;  %v1051_v54 = vmul.f32 0.01, %v923_v7 }
 0x157   :  { %v925_v63 = vadd.f32 %v2489_v61, %v803_v37  ;;  %v805_v62 = vadd.f32 %v804_v17, %v2408_v21  ;;  %1326 = vmatmul.mubr.f32.gmra.mxu0 %v1113_v53  ;;  %vm988_vm9 = vcmp.ge.f32.partialorder %v924_v50, 0.0  ;;  %v1052_v18 = vmul.f32 0.01, %v924_v50 }
 0x158   :  { %v808_v28 = vpop.f32.mrf.mxu1  ;;  %v1115_v3 = vsel %vm987_vm8, %v923_v7, %v1051_v54 }
 0x159   :  { %v926_v46 = vadd.f32 %v2492_v0, %v805_v62  ;;  %v809_v40 = vadd.f32 %v808_v28, %v2410_v23  ;;  %v1116_v25 = vsel %vm988_vm9, %v924_v50, %v1052_v18  ;;  %vm989_vm10 = vcmp.ge.f32.partialorder %v925_v63, 0.0 }
 0x15a   :  { %v810_v20 = vpop.f32.mrf.mxu1  ;;  %1331 = vmatprep.mubr.f32.mxu0 %v1116_v25  ;;  %v1053_v9 = vmul.f32 0.01, %v925_v63 }
 0x15b   :  { %v927_v56 = vadd.f32 %v2489_v61, %v809_v40  ;;  %v811_v60 = vadd.f32 %v810_v20, %v2412_v24  ;;  %1332 = vmatmul.mubr.f32.gmra.mxu0 %v1115_v3  ;;  %vm990_vm11 = vcmp.ge.f32.partialorder %v926_v46, 0.0  ;;  %v1054_v21 = vmul.f32 0.01, %v926_v46 }
 0x15c   :  { %v814_v57 = vpop.f32.mrf.mxu1  ;;  %v1117_v31 = vsel %vm989_vm10, %v925_v63, %v1053_v9 }
 0x15d   :  { %v928_v59 = vadd.f32 %v2492_v0, %v811_v60  ;;  %v815_v10 = vadd.f32 %v814_v57, %v2416_v26  ;;  %v1118_v43 = vsel %vm990_vm11, %v926_v46, %v1054_v21  ;;  %vm991_vm12 = vcmp.ge.f32.partialorder %v927_v56, 0.0 }
 0x15e   :  { %v816_v23 = vpop.f32.mrf.mxu1  ;;  %1337 = vmatprep.mubr.f32.mxu0 %v1118_v43  ;;  %v1055_v4 = vmul.f32 0.01, %v927_v56 }
 0x15f   :  { %v929_v14 = vadd.f32 %v2489_v61, %v815_v10  ;;  %v817_v11 = vadd.f32 %v816_v23, %v2418_v27  ;;  %1338 = vmatmul.mubr.f32.gmra.mxu0 %v1117_v31  ;;  %vm992_vm13 = vcmp.ge.f32.partialorder %v928_v59, 0.0  ;;  %v1056_v24 = vmul.f32 0.01, %v928_v59 }
 0x160   :  { %v820_v2 = vpop.f32.mrf.mxu1  ;;  %v1119_v13 = vsel %vm991_vm12, %v927_v56, %v1055_v4 }
 0x161   :  { %v930_v51 = vadd.f32 %v2492_v0, %v817_v11  ;;  %v821_v22 = vadd.f32 %v820_v2, %v2422_v29  ;;  %v1120_v1 = vsel %vm992_vm13, %v928_v59, %v1056_v24  ;;  %vm993_vm14 = vcmp.ge.f32.partialorder %v929_v14, 0.0 }
 0x162   :  { %v822_v26 = vpop.f32.mrf.mxu1  ;;  %1343 = vmatprep.mubr.f32.mxu0 %v1120_v1  ;;  %v1057_v34 = vmul.f32 0.01, %v929_v14 }
 0x163   :  { %v931_v12 = vadd.f32 %v2489_v61, %v821_v22  ;;  %v823_v55 = vadd.f32 %v822_v26, %v2424_v30  ;;  %1344 = vmatmul.mubr.f32.gmra.mxu0 %v1119_v13  ;;  %vm994_vm15 = vcmp.ge.f32.partialorder %v930_v51, 0.0  ;;  %v1058_v27 = vmul.f32 0.01, %v930_v51 }
 0x164   :  { %v826_v58 = vpop.f32.mrf.mxu1  ;;  %v1121_v7 = vsel %vm993_vm14, %v929_v14, %v1057_v34 }
 0x165   :  { %v932_v15 = vadd.f32 %v2492_v0, %v823_v55  ;;  %v827_v19 = vadd.f32 %v826_v58, %v2428_v32  ;;  %v1122_v8 = vsel %vm994_vm15, %v930_v51, %v1058_v27  ;;  %vm995_vm0 = vcmp.ge.f32.partialorder %v931_v12, 0.0 }
 0x166   :  { %v828_v29 = vpop.f32.mrf.mxu1  ;;  %1349 = vmatprep.mubr.f32.mxu0 %v1122_v8  ;;  %v1059_v47 = vmul.f32 0.01, %v931_v12 }
 0x167   :  { %v933_v16 = vadd.f32 %v2489_v61, %v827_v19  ;;  %v829_v5 = vadd.f32 %v828_v29, %v2430_v33  ;;  %1350 = vmatmul.mubr.f32.gmra.mxu0 %v1121_v7  ;;  %vm996_vm1 = vcmp.ge.f32.partialorder %v932_v15, 0.0  ;;  %v1060_v30 = vmul.f32 0.01, %v932_v15 }
 0x168   :  { %v832_v50 = vpop.f32.mrf.mxu1  ;;  %v1123_v53 = vsel %vm995_vm0, %v931_v12, %v1059_v47 }
 0x169   :  { %v934_v37 = vadd.f32 %v2492_v0, %v829_v5  ;;  %v833_v6 = vadd.f32 %v832_v50, %v2434_v35  ;;  %v1124_v17 = vsel %vm996_vm1, %v932_v15, %v1060_v30  ;;  %vm997_vm2 = vcmp.ge.f32.partialorder %v933_v16, 0.0  ;;  %v2868_v5 = vld [vmem:[#allocation6_spill] sm:$0xff] }
 0x16a   :  { %v834_v32 = vpop.f32.mrf.mxu1  ;;  %1355 = vmatprep.mubr.f32.mxu0 %v1124_v17  ;;  %v1061_v54 = vmul.f32 0.01, %v933_v16 }
 0x16b   :  { %v935_v63 = vadd.f32 %v2489_v61, %v833_v6  ;;  %v835_v62 = vadd.f32 %v834_v32, %v2436_v36  ;;  %1356 = vmatmul.mubr.f32.gmra.mxu0 %v1123_v53  ;;  %vm998_vm3 = vcmp.ge.f32.partialorder %v934_v37, 0.0  ;;  %v1062_v33 = vmul.f32 0.01, %v934_v37  ;;  %v2869_v6 = vld [vmem:[#allocation8_spill] sm:$0xff] }
 0x16c   :  { %v838_v18 = vpop.f32.mrf.mxu1  ;;  %v1125_v25 = vsel %vm997_vm2, %v933_v16, %v1061_v54 }
 0x16d   :  { %v936_v28 = vadd.f32 %v2492_v0, %v835_v62  ;;  %v839_v46 = vadd.f32 %v838_v18, %v2440_v38  ;;  %v1126_v40 = vsel %vm998_vm3, %v934_v37, %v1062_v33  ;;  %vm999_vm4 = vcmp.ge.f32.partialorder %v935_v63, 0.0  ;;  %v2870_v62 = vld [vmem:[#allocation10_spill] sm:$0xff] }
 0x16e   :  { %v840_v35 = vpop.f32.mrf.mxu1  ;;  %1361 = vmatprep.mubr.f32.mxu0 %v1126_v40  ;;  %v1063_v20 = vmul.f32 0.01, %v935_v63 }
 0x16f   :  { %v937_v3 = vadd.f32 %v2489_v61, %v839_v46  ;;  %v841_v9 = vadd.f32 %v840_v35, %v2442_v39  ;;  %1362 = vmatmul.mubr.f32.gmra.mxu0 %v1125_v25  ;;  %vm1000_vm5 = vcmp.ge.f32.partialorder %v936_v28, 0.0  ;;  %v1064_v36 = vmul.f32 0.01, %v936_v28 }
 0x170   :  { %v844_v56 = vpop.f32.mrf.mxu1  ;;  %v1127_v59 = vsel %vm999_vm4, %v935_v63, %v1063_v20 }
 0x171   :  { %v938_v60 = vadd.f32 %v2492_v0, %v841_v9  ;;  %v845_v21 = vadd.f32 %v844_v56, %v2446_v41  ;;  %v1128_v57 = vsel %vm1000_vm5, %v936_v28, %v1064_v36  ;;  %vm1001_vm6 = vcmp.ge.f32.partialorder %v937_v3, 0.0 }
 0x172   :  { %v846_v38 = vpop.f32.mrf.mxu1  ;;  %1367 = vmatprep.mubr.f32.mxu0 %v1128_v57  ;;  %v1065_v10 = vmul.f32 0.01, %v937_v3 }
 0x173   :  { %v939_v43 = vadd.f32 %v2489_v61, %v845_v21  ;;  %v847_v23 = vadd.f32 %v846_v38, %v2448_v42  ;;  %1368 = vmatmul.mubr.f32.gmra.mxu0 %v1127_v59  ;;  %vm1002_vm7 = vcmp.ge.f32.partialorder %v938_v60, 0.0  ;;  %v1066_v39 = vmul.f32 0.01, %v938_v60 }
 0x174   :  { %v850_v31 = vpop.f32.mrf.mxu1  ;;  %v1129_v24 = vsel %vm1001_vm6, %v937_v3, %v1065_v10 }
 0x175   :  { %v940_v4 = vadd.f32 %v2492_v0, %v847_v23  ;;  %v851_v14 = vadd.f32 %v850_v31, %v2452_v44  ;;  %v1130_v11 = vsel %vm1002_vm7, %v938_v60, %v1066_v39  ;;  %vm1003_vm8 = vcmp.ge.f32.partialorder %v939_v43, 0.0 }
 0x176   :  { %v852_v41 = vpop.f32.mrf.mxu1  ;;  %1373 = vmatprep.mubr.f32.mxu0 %v1130_v11  ;;  %v1067_v2 = vmul.f32 0.01, %v939_v43 }
 0x177   :  { %v941_v51 = vadd.f32 %v2489_v61, %v851_v14  ;;  %v853_v22 = vadd.f32 %v852_v41, %v2454_v45  ;;  %1374 = vmatmul.mubr.f32.gmra.mxu0 %v1129_v24  ;;  %vm1004_vm9 = vcmp.ge.f32.partialorder %v940_v4, 0.0  ;;  %v1068_v42 = vmul.f32 0.01, %v940_v4 }
 0x178   :  { %v856_v1 = vpop.f32.mrf.mxu1  ;;  %v1131_v12 = vsel %vm1003_vm8, %v939_v43, %v1067_v2 }
 0x179   :  { %v942_v26 = vadd.f32 %v2492_v0, %v853_v22  ;;  %v857_v13 = vadd.f32 %v856_v1, %v2458_v48  ;;  %v1132_v34 = vsel %vm1004_vm9, %v940_v4, %v1068_v42  ;;  %vm1005_vm10 = vcmp.ge.f32.partialorder %v941_v51, 0.0 }
 0x17a   :  { %v858_v44 = vpop.f32.mrf.mxu1  ;;  %1379 = vmatprep.mubr.f32.mxu0 %v1132_v34  ;;  %v1069_v55 = vmul.f32 0.01, %v941_v51 }
 0x17b   :  { %v943_v27 = vadd.f32 %v2489_v61, %v857_v13  ;;  %v859_v58 = vadd.f32 %v858_v44, %v2460_v49  ;;  %1380 = vmatmul.mubr.f32.gmra.mxu0 %v1131_v12  ;;  %vm1006_vm11 = vcmp.ge.f32.partialorder %v942_v26, 0.0  ;;  %v1070_v45 = vmul.f32 0.01, %v942_v26  ;;  %v1141_v44 = vld [vmem:[%s2853_s6] sm:$0x3] }
 0x17c   :  { %v862_v15 = vpop.f32.mrf.mxu1  ;;  %v1133_v7 = vsel %vm1005_vm10, %v941_v51, %v1069_v55  ;;  %v2871_v55 = vld [vmem:[#allocation9_spill] sm:$0xff] }
 0x17d   :  { %v944_v19 = vadd.f32 %v2492_v0, %v859_v58  ;;  %v863_v8 = vadd.f32 %v862_v15, %v2467_v52  ;;  %v1134_v29 = vsel %vm1006_vm11, %v942_v26, %v1070_v45  ;;  %vm1007_vm12 = vcmp.ge.f32.partialorder %v943_v27, 0.0  ;;  %v2872_v45 = vld [vmem:[#allocation7_spill] sm:$0xff] }
 0x17e   :  { %v864_v48 = vpop.f32.mrf.mxu1  ;;  %1385 = vmatprep.mubr.f32.mxu0 %v1134_v29  ;;  %v1071_v47 = vmul.f32 0.01, %v943_v27  ;;  %v2671_v15 = vrot.slane %v1141_v44, %v2872_v45 }
 0x17f   :  { %v945_v16 = vadd.f32 %v2489_v61, %v863_v8  ;;  %v865_v30 = vadd.f32 %v864_v48, %v2868_v5  ;;  %1386 = vmatmul.mubr.f32.gmra.mxu0 %v1133_v7  ;;  %vm1008_vm13 = vcmp.ge.f32.partialorder %v944_v19, 0.0  ;;  %v1072_v49 = vmul.f32 0.01, %v944_v19 }
 0x180   :  { %v868_v50 = vpop.f32.mrf.mxu1  ;;  %v1135_v53 = vsel %vm1007_vm12, %v943_v27, %v1071_v47  ;;  %v2668_v27 = vrot.slane %v1141_v44, %v2871_v55 }
 0x181   :  { %v946_v37 = vadd.f32 %v2492_v0, %v865_v30  ;;  %v869_v17 = vadd.f32 %v868_v50, %v2869_v6  ;;  %v1136_v32 = vsel %vm1008_vm13, %v944_v19, %v1072_v49  ;;  %vm1009_vm14 = vcmp.ge.f32.partialorder %v945_v16, 0.0 }
 0x182   :  { %v870_v52 = vpop.f32.mrf.mxu1  ;;  %1391 = vmatprep.mubr.f32.mxu0 %v1136_v32  ;;  %v1073_v54 = vmul.f32 0.01, %v945_v16 }
 0x183   :  { %v947_v63 = vadd.f32 %v2489_v61, %v869_v17  ;;  %v871_v33 = vadd.f32 %v870_v52, %v2870_v62  ;;  %1392 = vmatmul.mubr.f32.gmra.mxu0 %v1135_v53  ;;  %vm1010_vm15 = vcmp.ge.f32.partialorder %v946_v37, 0.0  ;;  %v1074_v18 = vmul.f32 0.01, %v946_v37 }
 0x184   :  { %v1137_v40 = vsel %vm1009_vm14, %v945_v16, %v1073_v54 }
 0x185   :  { %v948_v28 = vadd.f32 %v2492_v0, %v871_v33  ;;  %v1138_v46 = vsel %vm1010_vm15, %v946_v37, %v1074_v18  ;;  %v1075_v35 = vmul.f32 0.01, %v947_v63  ;;  %vm1011_vm1 = vcmp.ge.f32.partialorder %v947_v63, 0.0  ;;  %v2683_v37 = vld [vmem:[%s2854_s7] sm:$0x3]  ;;  %s1814_s7 = smov [#allocation2]  }
 0x186   :  { %1397 = vmatprep.mubr.f32.mxu0 %v1138_v46  ;;  %v1610_v17 = vrot.slane %v2683_v37, %v2871_v55  ;;  %s1713_s25 = sshll.u32 %s1814_s7, 4  ;;  %s1714_s25 = int_to_ptr.vmem [resolvable:$true] %s1713_s25 }
 0x187   :  { %1398 = vmatmul.mubr.f32.gmra.mxu0 %v1137_v40  ;;  %vm1012_vm0 = vcmp.ge.f32.partialorder %v948_v28, 0.0  ;;  %v1076_v25 = vmul.f32 0.01, %v948_v28  ;;  %v1139_v3 = vsel %vm1011_vm1, %v947_v63, %v1075_v35  ;;  %s1790_s26 = scalar_lea.vmem %s1714_s25, 32  ;;  %p1795_p1 = scmp.lt.s32.totalorder %s1714_s25, %s1714_s25 }
 0x188   :  { %1677 = vmatprep.mubr.f32.mxu1 %v1610_v17  ;;  %p1791_p0 = scmp.ne.s32.totalorder %s1714_s25, %s1790_s26  ;;  %p1796_p2 = scmp.lt.s32.totalorder %s1790_s26, %s1790_s26 }
 0x189   :  { %v1140_v20 = vsel %vm1012_vm0, %v948_v28, %v1076_v25 }
 0x18a   :  { %1403 = vmatprep.mubr.f32.mxu0 %v1140_v20  ;;  %p1797_p3 = por %p1796_p2, %p1795_p1 }
 0x18b   :  { %1404 = vmatmul.mubr.f32.gmra.mxu0 %v1139_v3 }
 0x18c   :  { %p1798_p4 = pnand %p1797_p3, %p1791_p0 }
 0x1cf   :  { %v2622_v61 = vpop.f32.mrf.mxu0 }
 0x1d1   :  { %v2624_v9 = vpop.f32.mrf.mxu0 }
 0x1d3   :  { %v2626_v36 = vpop.f32.mrf.mxu0 }
 0x1d5   :  { %v2628_v56 = vpop.f32.mrf.mxu0 }
 0x1d7   :  { %v2630_v0 = vpop.f32.mrf.mxu0 }
 0x1d9   :  { %v2632_v60 = vpop.f32.mrf.mxu0 }
 0x1db   :  { %v2634_v21 = vpop.f32.mrf.mxu0 }
 0x1dd   :  { %v2636_v57 = vpop.f32.mrf.mxu0 }
 0x1df   :  { %v2638_v38 = vpop.f32.mrf.mxu0 }
 0x1e1   :  { %v2640_v59 = vpop.f32.mrf.mxu0 }
 0x1e3   :  { %v2642_v10 = vpop.f32.mrf.mxu0 }
 0x1e5   :  { %v2644_v43 = vpop.f32.mrf.mxu0 }
 0x1e7   :  { %v2646_v23 = vpop.f32.mrf.mxu0 }
 0x1e9   :  { %v2648_v39 = vpop.f32.mrf.mxu0 }
 0x1eb   :  { %v2650_v31 = vpop.f32.mrf.mxu0 }
 0x1ed   :  { %v2652_v4 = vpop.f32.mrf.mxu0 }
 0x1ef   :  { %v2654_v14 = vpop.f32.mrf.mxu0 }
 0x1f1   :  { %v2656_v11 = vpop.f32.mrf.mxu0 }
 0x1f2   :  { %v1270_v17 = vadd.f32 %v2656_v11, %v2668_v27 }
 0x1f3   :  { %v2658_v41 = vpop.f32.mrf.mxu0 }
 0x1f4   :  { %vm1427_vm0 = vcmp.ge.f32.partialorder %v1270_v17, 0.0 }
 0x1f5   :  { %v2660_v24 = vpop.f32.mrf.mxu0 }
 0x1f7   :  { %v2662_v2 = vpop.f32.mrf.mxu0 }
 0x1f9   :  { %v1281_v51 = vpop.f32.mrf.mxu0 }
 0x1fa   :  { %v1282_v55 = vadd.f32 %v1281_v51, %v2668_v27 }
 0x1fb   :  { %v1285_v22 = vpop.f32.mrf.mxu0 }
 0x1fc   :  { %vm1431_vm12 = vcmp.ge.f32.partialorder %v1282_v55, 0.0 }
 0x1fd   :  { %v1287_v42 = vpop.f32.mrf.mxu0 }
 0x1fe   :  { %v1288_v20 = vadd.f32 %v1287_v42, %v2668_v27 }
 0x1ff   :  { %v1291_v1 = vpop.f32.mrf.mxu0 }
 0x200   :  { %v1292_v46 = vadd.f32 %v1291_v1, %v2671_v15  ;;  %vm1433_vm10 = vcmp.ge.f32.partialorder %v1288_v20, 0.0 }
 0x201   :  { %v1293_v26 = vpop.f32.mrf.mxu0 }
 0x202   :  { %v1294_v62 = vadd.f32 %v1293_v26, %v2668_v27  ;;  %v1498_v44 = vmul.f32 0.01, %v1292_v46  ;;  %vm1434_vm9 = vcmp.ge.f32.partialorder %v1292_v46, 0.0 }
 0x203   :  { %v1297_v13 = vpop.f32.mrf.mxu0 }
 0x204   :  { %v1298_v52 = vadd.f32 %v1297_v13, %v2671_v15  ;;  %v1499_v3 = vmul.f32 0.01, %v1294_v62  ;;  %vm1435_vm8 = vcmp.ge.f32.partialorder %v1294_v62, 0.0 }
 0x205   :  { %v1299_v34 = vpop.f32.mrf.mxu0 }
 0x206   :  { %v1300_v49 = vadd.f32 %v1299_v34, %v2668_v27  ;;  %v1500_v40 = vmul.f32 0.01, %v1298_v52  ;;  %vm1436_vm7 = vcmp.ge.f32.partialorder %v1298_v52, 0.0  ;;  %v1286_v34 = vadd.f32 %v1285_v22, %v2671_v15 }
 0x207   :  { %v1303_v12 = vpop.f32.mrf.mxu0  ;;  %v1563_v42 = vsel %vm1435_vm8, %v1294_v62, %v1499_v3  ;;  %v1562_v22 = vsel %vm1434_vm9, %v1292_v46, %v1498_v44  ;;  %v1258_v3 = vadd.f32 %v2648_v39, %v2668_v27  ;;  %v1256_v44 = vadd.f32 %v2646_v23, %v2671_v15 }
 0x208   :  { %v1304_v47 = vadd.f32 %v1303_v12, %v2671_v15  ;;  %v1501_v33 = vmul.f32 0.01, %v1300_v49  ;;  %vm1437_vm6 = vcmp.ge.f32.partialorder %v1300_v49, 0.0  ;;  %v1564_v1 = vsel %vm1436_vm7, %v1298_v52, %v1500_v40 }
 0x209   :  { %v1305_v58 = vpop.f32.mrf.mxu0  ;;  %vm1432_vm11 = vcmp.ge.f32.partialorder %v1286_v34, 0.0  ;;  %v1262_v40 = vadd.f32 %v2650_v31, %v2671_v15 }
 0x20a   :  { %v1306_v19 = vadd.f32 %v1305_v58, %v2668_v27  ;;  %v1502_v53 = vmul.f32 0.01, %v1304_v47  ;;  %vm1438_vm5 = vcmp.ge.f32.partialorder %v1304_v47, 0.0  ;;  %v1565_v26 = vsel %vm1437_vm6, %v1300_v49, %v1501_v33 }
 0x20b   :  { %v1309_v8 = vpop.f32.mrf.mxu0  ;;  %v1497_v58 = vmul.f32 0.01, %v1288_v20  ;;  %v1264_v33 = vadd.f32 %v2652_v4, %v2668_v27 }
 0x20c   :  { %v1310_v29 = vadd.f32 %v1309_v8, %v2671_v15  ;;  %v1503_v16 = vmul.f32 0.01, %v1306_v19  ;;  %vm1439_vm4 = vcmp.ge.f32.partialorder %v1306_v19, 0.0  ;;  %v1566_v25 = vsel %vm1438_vm5, %v1304_v47, %v1502_v53 }
 0x20d   :  { %v1311_v48 = vpop.f32.mrf.mxu0  ;;  %v1280_v8 = vadd.f32 %v2662_v2, %v2671_v15  ;;  %v1495_v47 = vmul.f32 0.01, %v1282_v55  ;;  %v1561_v51 = vsel %vm1433_vm10, %v1288_v20, %v1497_v58  ;;  %v1268_v53 = vadd.f32 %v2654_v14, %v2671_v15 }
 0x20e   :  { %v1312_v7 = vadd.f32 %v1311_v48, %v2668_v27  ;;  %v1504_v5 = vmul.f32 0.01, %v1310_v29  ;;  %vm1440_vm2 = vcmp.ge.f32.partialorder %v1310_v29, 0.0  ;;  %v1567_v18 = vsel %vm1439_vm4, %v1306_v19, %v1503_v16 }
 0x20f   :  { %v2677_v30 = vpop.f32.mrf.mxu0  ;;  %v1494_v49 = vmul.f32 0.01, %v1280_v8  ;;  %vm1430_vm13 = vcmp.ge.f32.partialorder %v1280_v8, 0.0  ;;  %vm1426_vm1 = vcmp.ge.f32.partialorder %v1268_v53, 0.0  ;;  %v1252_v58 = vadd.f32 %v2644_v43, %v2668_v27 }
 0x210   :  { %v1505_v50 = vmul.f32 0.01, %v1312_v7  ;;  %vm1441_vm3 = vcmp.ge.f32.partialorder %v1312_v7, 0.0  ;;  %v1568_v63 = vsel %vm1440_vm2, %v1310_v29, %v1504_v5  ;;  %v1496_v29 = vmul.f32 0.01, %v1286_v34 }
 0x211   :  { %v2685_v6 = vpop.f32.mrf.mxu0  ;;  %v1274_v5 = vadd.f32 %v2658_v41, %v2671_v15  ;;  %v1558_v62 = vsel %vm1430_vm13, %v1280_v8, %v1494_v49  ;;  %vm1425_vm2 = vcmp.ge.f32.partialorder %v1264_v33, 0.0  ;;  %vm1423_vm4 = vcmp.ge.f32.partialorder %v1258_v3, 0.0 }
 0x212   :  { %v1569_v32 = vsel %vm1441_vm3, %v1312_v7, %v1505_v50  ;;  %v1276_v7 = vadd.f32 %v2660_v24, %v2668_v27  ;;  %v1560_v50 = vsel %vm1432_vm11, %v1286_v34, %v1496_v29  ;;  %v1559_v24 = vsel %vm1431_vm12, %v1282_v55, %v1495_v47 }
 0x213   :  { %v2690_v54 = vpop.f32.mrf.mxu0  ;;  %1613 = vmatprep.subr.mxu1 %v1569_v32  ;;  %vm1428_vm15 = vcmp.ge.f32.partialorder %v1274_v5, 0.0  ;;  %vm1424_vm3 = vcmp.ge.f32.partialorder %v1262_v40, 0.0  ;;  %v1250_v29 = vadd.f32 %v2642_v10, %v2671_v15  ;;  %v1246_v47 = vadd.f32 %v2640_v59, %v2668_v27 }
 0x214   :  { %1614 = vmatpush1.xpose.msra.mxu1 %v1568_v63  ;;  %v1493_v32 = vmul.f32 0.01, %v1276_v7  ;;  %vm1429_vm14 = vcmp.ge.f32.partialorder %v1276_v7, 0.0  ;;  %v1492_v63 = vmul.f32 0.01, %v1274_v5  ;;  %vm1422_vm5 = vcmp.ge.f32.partialorder %v1256_v44, 0.0 }
 0x215   :  { %v2693_v28 = vpop.f32.mrf.mxu0  ;;  %1615 = vmatprep.subr.mxu1 %v1567_v18  ;;  %v1491_v18 = vmul.f32 0.01, %v1270_v17  ;;  %vm1421_vm6 = vcmp.ge.f32.partialorder %v1252_v58, 0.0  ;;  %v1244_v49 = vadd.f32 %v2638_v38, %v2671_v15  ;;  %vm1420_vm7 = vcmp.ge.f32.partialorder %v1250_v29, 0.0 }
 0x216   :  { %v1557_v11 = vsel %vm1429_vm14, %v1276_v7, %v1493_v32  ;;  %v1556_v20 = vsel %vm1428_vm15, %v1274_v5, %v1492_v63  ;;  %v1240_v32 = vadd.f32 %v2636_v57, %v2668_v27  ;;  %vm1419_vm8 = vcmp.ge.f32.partialorder %v1246_v47, 0.0 }
 0x217   :  { %v2696_v35 = vpop.f32.mrf.mxu0  ;;  %v1555_v4 = vsel %vm1427_vm0, %v1270_v17, %v1491_v18  ;;  %v1238_v63 = vadd.f32 %v2634_v21, %v2671_v15  ;;  %v1234_v18 = vadd.f32 %v2632_v60, %v2668_v27  ;;  %vm1418_vm9 = vcmp.ge.f32.partialorder %v1244_v49, 0.0 }
 0x218   :  { %1616 = vmatpush1.xpose.msra.mxu1 %v1566_v25  ;;  %v1490_v25 = vmul.f32 0.01, %v1268_v53  ;;  %vm1417_vm10 = vcmp.ge.f32.partialorder %v1240_v32, 0.0 }
 0x219   :  { %v2699_v13 = vpop.f32.mrf.mxu0  ;;  %1617 = vmatprep.subr.mxu1 %v1565_v26  ;;  %v1489_v26 = vmul.f32 0.01, %v1264_v33  ;;  %vm1416_vm11 = vcmp.ge.f32.partialorder %v1238_v63, 0.0  ;;  %vm1415_vm12 = vcmp.ge.f32.partialorder %v1234_v18, 0.0 }
 0x21a   :  { %v1554_v55 = vsel %vm1426_vm1, %v1268_v53, %v1490_v25  ;;  %v1232_v25 = vadd.f32 %v2630_v0, %v2671_v15 }
 0x21b   :  { %v2702_v12 = vpop.f32.mrf.mxu0  ;;  %v1553_v39 = vsel %vm1425_vm2, %v1264_v33, %v1489_v26  ;;  %v1228_v26 = vadd.f32 %v2628_v56, %v2668_v27 }
 0x21c   :  { %1618 = vmatpush1.xpose.msra.mxu1 %v1564_v1  ;;  %v1488_v1 = vmul.f32 0.01, %v1262_v40  ;;  %vm1414_vm13 = vcmp.ge.f32.partialorder %v1232_v25, 0.0 }
 0x21d   :  { %v2705_v19 = vpop.f32.mrf.mxu0  ;;  %1619 = vmatprep.subr.mxu1 %v1563_v42  ;;  %v1487_v42 = vmul.f32 0.01, %v1258_v3  ;;  %vm1413_vm14 = vcmp.ge.f32.partialorder %v1228_v26, 0.0 }
 0x21e   :  { %v1552_v7 = vsel %vm1424_vm3, %v1262_v40, %v1488_v1  ;;  %v1226_v1 = vadd.f32 %v2626_v36, %v2671_v15 }
 0x21f   :  { %v2709_v48 = vpop.f32.mrf.mxu0  ;;  %v1551_v43 = vsel %vm1423_vm4, %v1258_v3, %v1487_v42  ;;  %v1222_v42 = vadd.f32 %v2624_v9, %v2668_v27 }
 0x220   :  { %1620 = vmatpush1.xpose.msra.mxu1 %v1562_v22  ;;  %v1486_v22 = vmul.f32 0.01, %v1256_v44  ;;  %vm1412_vm15 = vcmp.ge.f32.partialorder %v1226_v1, 0.0 }
 0x221   :  { %v2713_v16 = vpop.f32.mrf.mxu0  ;;  %1621 = vmatprep.subr.mxu1 %v1561_v51  ;;  %v1485_v51 = vmul.f32 0.01, %v1252_v58  ;;  %v1475_v36 = vmul.f32 0.01, %v1222_v42  ;;  %vm1411_vm0 = vcmp.ge.f32.partialorder %v1222_v42, 0.0 }
 0x222   :  { %v1550_v17 = vsel %vm1422_vm5, %v1256_v44, %v1486_v22  ;;  %v1220_v22 = vadd.f32 %v2622_v61, %v2671_v15 }
 0x223   :  { %v2717_v2 = vpop.f32.mrf.mxu0  ;;  %v1549_v59 = vsel %vm1421_vm6, %v1252_v58, %v1485_v51  ;;  %v1539_v61 = vsel %vm1411_vm0, %v1222_v42, %v1475_v36 }
 0x224   :  { %1622 = vmatpush1.xpose.msra.mxu1 %v1560_v50  ;;  %v1484_v50 = vmul.f32 0.01, %v1250_v29  ;;  %v1474_v9 = vmul.f32 0.01, %v1220_v22  ;;  %vm1410_vm1 = vcmp.ge.f32.partialorder %v1220_v22, 0.0 }
 0x225   :  { %v2721_v52 = vpop.f32.mrf.mxu0  ;;  %1623 = vmatprep.subr.mxu1 %v1559_v24  ;;  %v1483_v24 = vmul.f32 0.01, %v1246_v47 }
 0x226   :  { %v1548_v33 = vsel %vm1420_vm7, %v1250_v29, %v1484_v50 }
 0x227   :  { %v2725_v41 = vpop.f32.mrf.mxu0  ;;  %v1547_v57 = vsel %vm1419_vm8, %v1246_v47, %v1483_v24 }
 0x228   :  { %1624 = vmatpush1.xpose.msra.mxu1 %v1558_v62  ;;  %v1482_v62 = vmul.f32 0.01, %v1244_v49 }
 0x229   :  { %v2729_v46 = vpop.f32.mrf.mxu0  ;;  %1625 = vmatprep.subr.mxu1 %v1557_v11  ;;  %v1481_v11 = vmul.f32 0.01, %v1240_v32 }
 0x22a   :  { %v1546_v3 = vsel %vm1418_vm9, %v1244_v49, %v1482_v62 }
 0x22b   :  { %v2733_v14 = vpop.f32.mrf.mxu0  ;;  %v1545_v60 = vsel %vm1417_vm10, %v1240_v32, %v1481_v11  ;;  %v1538_v11 = vsel %vm1410_vm1, %v1220_v22, %v1474_v9 }
 0x22c   :  { %1626 = vmatpush1.xpose.msra.mxu1 %v1556_v20  ;;  %v1480_v20 = vmul.f32 0.01, %v1238_v63 }
 0x22d   :  { %v2737_v34 = vpop.f32.mrf.mxu0  ;;  %1627 = vmatprep.subr.mxu1 %v1555_v4  ;;  %v1479_v4 = vmul.f32 0.01, %v1234_v18 }
 0x22e   :  { %v1544_v0 = vsel %vm1416_vm11, %v1238_v63, %v1480_v20 }
 0x22f   :  { %v2741_v31 = vpop.f32.mrf.mxu0  ;;  %v1543_v56 = vsel %vm1415_vm12, %v1234_v18, %v1479_v4 }
 0x230   :  { %1628 = vmatpush1.xpose.msra.mxu1 %v1554_v55  ;;  %v1478_v55 = vmul.f32 0.01, %v1232_v25 }
 0x231   :  { %v2745_v8 = vpop.f32.mrf.mxu0  ;;  %1629 = vmatprep.subr.mxu1 %v1553_v39  ;;  %v1477_v39 = vmul.f32 0.01, %v1228_v26 }
 0x232   :  { %v1542_v51 = vsel %vm1414_vm13, %v1232_v25, %v1478_v55 }
 0x233   :  { %v2749_v23 = vpop.f32.mrf.mxu0 }
 0x234   :  { %1630 = vmatpush1.xpose.msra.mxu1 %v1552_v7  ;;  %v1476_v7 = vmul.f32 0.01, %v1226_v1 }
 0x235   :  { %v2753_v5 = vpop.f32.mrf.mxu0  ;;  %1631 = vmatprep.subr.mxu1 %v1551_v43  ;;  %v1541_v43 = vsel %vm1413_vm14, %v1228_v26, %v1477_v39 }
 0x237   :  { %v2757_v10 = vpop.f32.mrf.mxu0 }
 0x238   :  { %1632 = vmatpush1.xpose.msra.mxu1 %v1550_v17  ;;  %v1540_v17 = vsel %vm1412_vm15, %v1226_v1, %v1476_v7 }
 0x239   :  { %v2761_v53 = vpop.f32.mrf.mxu0  ;;  %1633 = vmatprep.subr.mxu1 %v1549_v59 }
 0x23b   :  { %v2765_v38 = vpop.f32.mrf.mxu0 }
 0x23c   :  { %1634 = vmatpush1.xpose.msra.mxu1 %v1548_v33 }
 0x23d   :  { %v2769_v40 = vpop.f32.mrf.mxu0  ;;  %1635 = vmatprep.subr.mxu1 %v1547_v57 }
 0x23f   :  { %v2773_v21 = vpop.f32.mrf.mxu0 }
 0x240   :  { %1636 = vmatpush1.xpose.msra.mxu1 %v1546_v3 }
 0x241   :  { %v1389_v44 = vpop.f32.mrf.mxu0  ;;  %1637 = vmatprep.subr.mxu1 %v1545_v60 }
 0x242   :  { %v1390_v60 = vadd.f32 %v1389_v44, %v2668_v27  ;;  %v1382_v44 = vadd.f32 %v2765_v38, %v2671_v15 }
 0x243   :  { %v1393_v58 = vpop.f32.mrf.mxu0 }
 0x244   :  { %1638 = vmatpush1.xpose.msra.mxu1 %v1544_v0  ;;  %v1394_v3 = vadd.f32 %v1393_v58, %v2671_v15  ;;  %v1388_v0 = vadd.f32 %v2773_v21, %v2671_v15  ;;  %v1531_v58 = vmul.f32 0.01, %v1390_v60  ;;  %vm1467_vm8 = vcmp.ge.f32.partialorder %v1390_v60, 0.0 }
 0x245   :  { %v1395_v29 = vpop.f32.mrf.mxu0  ;;  %1639 = vmatprep.subr.mxu1 %v1543_v56  ;;  %v1384_v56 = vadd.f32 %v2769_v40, %v2668_v27  ;;  %v1376_v40 = vadd.f32 %v2757_v10, %v2671_v15  ;;  %v1528_v36 = vmul.f32 0.01, %v1382_v44  ;;  %vm1464_vm11 = vcmp.ge.f32.partialorder %v1382_v44, 0.0 }
 0x246   :  { %v1396_v62 = vadd.f32 %v1395_v29, %v2668_v27  ;;  %v1532_v42 = vmul.f32 0.01, %v1394_v3  ;;  %vm1468_vm7 = vcmp.ge.f32.partialorder %v1394_v3, 0.0  ;;  %v1530_v22 = vmul.f32 0.01, %v1388_v0 }
 0x247   :  { %v1399_v47 = vpop.f32.mrf.mxu0  ;;  %v1529_v21 = vmul.f32 0.01, %v1384_v56  ;;  %vm1466_vm9 = vcmp.ge.f32.partialorder %v1388_v0, 0.0  ;;  %vm1465_vm10 = vcmp.ge.f32.partialorder %v1384_v56, 0.0  ;;  %vm1462_vm13 = vcmp.ge.f32.partialorder %v1376_v40, 0.0 }
 0x248   :  { %1640 = vmatpush1.xpose.msra.mxu1 %v1542_v51  ;;  %v1400_v33 = vadd.f32 %v1399_v47, %v2671_v15  ;;  %v1533_v1 = vmul.f32 0.01, %v1396_v62  ;;  %vm1469_vm6 = vcmp.ge.f32.partialorder %v1396_v62, 0.0  ;;  %v1596_v7 = vsel %vm1468_vm7, %v1394_v3, %v1532_v42 }
 0x249   :  { %v1401_v49 = vpop.f32.mrf.mxu0  ;;  %1641 = vmatprep.subr.mxu1 %v1541_v43  ;;  %v1378_v47 = vadd.f32 %v2761_v53, %v2668_v27  ;;  %v1595_v51 = vsel %vm1467_vm8, %v1390_v60, %v1531_v58  ;;  %v1594_v43 = vsel %vm1466_vm9, %v1388_v0, %v1530_v22  ;;  %v1593_v9 = vsel %vm1465_vm10, %v1384_v56, %v1529_v21 }
 0x24a   :  { %v1402_v32 = vadd.f32 %v1401_v49, %v2668_v27  ;;  %v1534_v26 = vmul.f32 0.01, %v1400_v33  ;;  %vm1470_vm5 = vcmp.ge.f32.partialorder %v1400_v33, 0.0  ;;  %v1597_v29 = vsel %vm1469_vm6, %v1396_v62, %v1533_v1 }
 0x24b   :  { %v1405_v50 = vpop.f32.mrf.mxu0  ;;  %v1372_v49 = vadd.f32 %v2753_v5, %v2668_v27  ;;  %v1527_v38 = vmul.f32 0.01, %v1378_v47  ;;  %vm1463_vm12 = vcmp.ge.f32.partialorder %v1378_v47, 0.0  ;;  %v1370_v53 = vadd.f32 %v2749_v23, %v2671_v15 }
 0x24c   :  { %v1406_v24 = vadd.f32 %v1405_v50, %v2671_v15  ;;  %1642 = vmatpush1.xpose.msra.mxu1 %v1540_v17  ;;  %v1535_v57 = vmul.f32 0.01, %v1402_v32  ;;  %vm1471_vm4 = vcmp.ge.f32.partialorder %v1402_v32, 0.0  ;;  %v1598_v39 = vsel %vm1470_vm5, %v1400_v33, %v1534_v26 }
 0x24d   :  { %v1407_v59 = vpop.f32.mrf.mxu0  ;;  %1643 = vmatprep.subr.mxu1 %v1539_v61  ;;  %v1526_v50 = vmul.f32 0.01, %v1376_v40  ;;  %v1592_v17 = vsel %vm1464_vm11, %v1382_v44, %v1528_v36  ;;  %v1525_v10 = vmul.f32 0.01, %v1372_v49  ;;  %vm1461_vm14 = vcmp.ge.f32.partialorder %v1372_v49, 0.0 }
 0x24e   :  { %v1408_v63 = vadd.f32 %v1407_v59, %v2668_v27  ;;  %v1536_v18 = vmul.f32 0.01, %v1406_v24  ;;  %vm1472_vm2 = vcmp.ge.f32.partialorder %v1406_v24, 0.0  ;;  %v1599_v55 = vsel %vm1471_vm4, %v1402_v32, %v1535_v57 }
 0x24f   :  { %v1366_v32 = vadd.f32 %v2745_v8, %v2668_v27  ;;  %v1364_v5 = vadd.f32 %v2741_v31, %v2671_v15  ;;  %v1524_v61 = vmul.f32 0.01, %v1370_v53  ;;  %v1590_v59 = vsel %vm1462_vm13, %v1376_v40, %v1526_v50 }
 0x250   :  { %v1537_v25 = vmul.f32 0.01, %v1408_v63  ;;  %1644 = vmatpush1.xpose.msra.mxu1 %v1538_v11  ;;  %vm1473_vm3 = vcmp.ge.f32.partialorder %v1408_v63, 0.0  ;;  %v1600_v4 = vsel %vm1472_vm2, %v1406_v24, %v1536_v18  ;;  %v1591_v24 = vsel %vm1463_vm12, %v1378_v47, %v1527_v38 }
 0x251   :  { %v1523_v23 = vmul.f32 0.01, %v1366_v32  ;;  %vm1460_vm15 = vcmp.ge.f32.partialorder %v1370_v53, 0.0  ;;  %v1589_v62 = vsel %vm1461_vm14, %v1372_v49, %v1525_v10  ;;  %vm1459_vm0 = vcmp.ge.f32.partialorder %v1366_v32, 0.0 }
 0x252   :  { %v1601_v20 = vsel %vm1473_vm3, %v1408_v63, %v1537_v25  ;;  %v1360_v63 = vadd.f32 %v2737_v34, %v2668_v27  ;;  %v1358_v8 = vadd.f32 %v2733_v14, %v2671_v15  ;;  %v1522_v33 = vmul.f32 0.01, %v1364_v5 }
 0x253   :  { %1645 = vmatprep.subr.mxu1 %v1601_v20  ;;  %v1588_v18 = vsel %vm1460_vm15, %v1370_v53, %v1524_v61  ;;  %v1354_v11 = vadd.f32 %v2729_v46, %v2668_v27  ;;  %vm1458_vm1 = vcmp.ge.f32.partialorder %v1364_v5, 0.0  ;;  %v1587_v57 = vsel %vm1459_vm0, %v1366_v32, %v1523_v23 }
 0x254   :  { %1646 = vmatpush2.xpose.msra.mxu1 %v1600_v4  ;;  %v1521_v31 = vmul.f32 0.01, %v1360_v63  ;;  %vm1457_vm2 = vcmp.ge.f32.partialorder %v1360_v63, 0.0  ;;  %v1352_v34 = vadd.f32 %v2725_v41, %v2671_v15  ;;  %v1520_v25 = vmul.f32 0.01, %v1358_v8 }
 0x255   :  { %1647 = vmatprep.subr.mxu1 %v1599_v55  ;;  %v1586_v20 = vsel %vm1458_vm1, %v1364_v5, %v1522_v33  ;;  %v1348_v3 = vadd.f32 %v2721_v52, %v2668_v27  ;;  %v1519_v14 = vmul.f32 0.01, %v1354_v11  ;;  %vm1456_vm3 = vcmp.ge.f32.partialorder %v1358_v8, 0.0  ;;  %v2873_v5 = vld [vmem:[#allocation5_spill] sm:$0xff] }
 0x256   :  { %v1585_v26 = vsel %vm1457_vm2, %v1360_v63, %v1521_v31  ;;  %vm1455_vm4 = vcmp.ge.f32.partialorder %v1354_v11, 0.0  ;;  %v1346_v46 = vadd.f32 %v2717_v2, %v2671_v15  ;;  %v1518_v4 = vmul.f32 0.01, %v1352_v34 }
 0x257   :  { %v1584_v60 = vsel %vm1456_vm3, %v1358_v8, %v1520_v25  ;;  %v1342_v1 = vadd.f32 %v2713_v16, %v2668_v27  ;;  %v1517_v41 = vmul.f32 0.01, %v1348_v3  ;;  %vm1454_vm5 = vcmp.ge.f32.partialorder %v1352_v34, 0.0 }
 0x258   :  { %1648 = vmatpush2.xpose.msra.mxu1 %v1598_v39  ;;  %v1583_v55 = vsel %vm1455_vm4, %v1354_v11, %v1519_v14  ;;  %vm1453_vm6 = vcmp.ge.f32.partialorder %v1348_v3, 0.0  ;;  %v1340_v52 = vadd.f32 %v2709_v48, %v2671_v15  ;;  %v1516_v0 = vmul.f32 0.01, %v1346_v46 }
 0x259   :  { %1649 = vmatprep.subr.mxu1 %v1597_v29  ;;  %v1582_v42 = vsel %vm1454_vm5, %v1352_v34, %v1518_v4  ;;  %v1336_v39 = vadd.f32 %v2705_v19, %v2668_v27  ;;  %v1515_v2 = vmul.f32 0.01, %v1342_v1  ;;  %vm1452_vm7 = vcmp.ge.f32.partialorder %v1346_v46, 0.0 }
 0x25a   :  { %v1581_v56 = vsel %vm1453_vm6, %v1348_v3, %v1517_v41  ;;  %vm1451_vm8 = vcmp.ge.f32.partialorder %v1342_v1, 0.0  ;;  %v1334_v16 = vadd.f32 %v2702_v12, %v2671_v15  ;;  %v1514_v58 = vmul.f32 0.01, %v1340_v52 }
 0x25b   :  { %v1580_v29 = vsel %vm1452_vm7, %v1346_v46, %v1516_v0  ;;  %v1330_v44 = vadd.f32 %v2699_v13, %v2668_v27  ;;  %v1513_v48 = vmul.f32 0.01, %v1336_v39  ;;  %vm1450_vm9 = vcmp.ge.f32.partialorder %v1340_v52, 0.0 }
 0x25c   :  { %1650 = vmatpush2.xpose.msra.mxu1 %v1596_v7  ;;  %v1579_v22 = vsel %vm1451_vm8, %v1342_v1, %v1515_v2  ;;  %vm1449_vm10 = vcmp.ge.f32.partialorder %v1336_v39, 0.0  ;;  %v1328_v19 = vadd.f32 %v2696_v35, %v2671_v15  ;;  %v1512_v7 = vmul.f32 0.01, %v1334_v16 }
 0x25d   :  { %1651 = vmatprep.subr.mxu1 %v1595_v51  ;;  %v1578_v47 = vsel %vm1450_vm9, %v1340_v52, %v1514_v58  ;;  %v1324_v21 = vadd.f32 %v2693_v28, %v2668_v27  ;;  %v1511_v12 = vmul.f32 0.01, %v1330_v44  ;;  %vm1448_vm11 = vcmp.ge.f32.partialorder %v1334_v16, 0.0 }
 0x25e   :  { %v1577_v51 = vsel %vm1449_vm10, %v1336_v39, %v1513_v48  ;;  %vm1447_vm12 = vcmp.ge.f32.partialorder %v1330_v44, 0.0  ;;  %v1322_v13 = vadd.f32 %v2690_v54, %v2671_v15  ;;  %v1510_v40 = vmul.f32 0.01, %v1328_v19 }
 0x25f   :  { %v1576_v36 = vsel %vm1448_vm11, %v1334_v16, %v1512_v7  ;;  %v1509_v35 = vmul.f32 0.01, %v1324_v21  ;;  %vm1446_vm13 = vcmp.ge.f32.partialorder %v1328_v19, 0.0  ;;  %v1575_v49 = vsel %vm1447_vm12, %v1330_v44, %v1511_v12 }
 0x260   :  { %1652 = vmatpush2.xpose.msra.mxu1 %v1594_v43  ;;  %v1318_v43 = vadd.f32 %v2685_v6, %v2668_v27  ;;  %vm1445_vm14 = vcmp.ge.f32.partialorder %v1324_v21, 0.0  ;;  %v1316_v28 = vadd.f32 %v2677_v30, %v2671_v15  ;;  %v1508_v38 = vmul.f32 0.01, %v1322_v13 }
 0x261   :  { %1653 = vmatprep.subr.mxu1 %v1593_v9  ;;  %v1574_v9 = vsel %vm1446_vm13, %v1328_v19, %v1510_v40  ;;  %vm1444_vm15 = vcmp.ge.f32.partialorder %v1322_v13, 0.0  ;;  %v1573_v54 = vsel %vm1445_vm14, %v1324_v21, %v1509_v35  ;;  %v1606_v32 = vrot.slane %v2683_v37, %v2872_v45 }
 0x262   :  { %v1507_v53 = vmul.f32 0.01, %v1318_v43  ;;  %vm1443_vm0 = vcmp.ge.f32.partialorder %v1318_v43, 0.0  ;;  %v1506_v50 = vmul.f32 0.01, %v1316_v28  ;;  %vm1442_vm1 = vcmp.ge.f32.partialorder %v1316_v28, 0.0 }
 0x263   :  { %v1813_v15 = vmov 1966171168  }
 0x264   :  { %1654 = vmatpush2.xpose.msra.mxu1 %v1592_v17  ;;  %v1572_v17 = vsel %vm1444_vm15, %v1322_v13, %v1508_v38  ;;  %v1571_v27 = vsel %vm1443_vm0, %v1318_v43, %v1507_v53  ;;  %v1570_v6 = vsel %vm1442_vm1, %v1316_v28, %v1506_v50  ;;  %v1688_v30 = vunpack.c.l.s4 %v1813_v15 }
 0x265   :  { %1655 = vmatprep.subr.mxu1 %v1591_v24 }
 0x266   :  { %v1689_v10 = vunpack.c.0.s8 %v1688_v30 }
 0x268   :  { %1656 = vmatpush2.xpose.msra.mxu1 %v1590_v59  ;;  %v1692_v61 = vsub.s32 %v1689_v10, %v2873_v5 }
 0x269   :  { %1657 = vmatprep.subr.mxu1 %v1589_v62  ;;  %v2874_v62 = vlaneseq }
 0x26b   :  { %vm1704_vm2 = vcmp.lt.s32.totalorder %v2874_v62, 256 }
 0x26c   :  { %1658 = vmatpush2.xpose.msra.mxu1 %v1588_v18 }
 0x26d   :  { %1659 = vmatprep.subr.mxu1 %v1587_v57 }
 0x270   :  { %1660 = vmatpush2.xpose.msra.mxu1 %v1586_v20 }
 0x271   :  { %1661 = vmatprep.subr.mxu1 %v1585_v26 }
 0x274   :  { %1662 = vmatpush2.xpose.msra.mxu1 %v1584_v60 }
 0x275   :  { %1663 = vmatprep.subr.mxu1 %v1583_v55 }
 0x278   :  { %1664 = vmatpush2.xpose.msra.mxu1 %v1582_v42 }
 0x279   :  { %1665 = vmatprep.subr.mxu1 %v1581_v56 }
 0x27c   :  { %1666 = vmatpush2.xpose.msra.mxu1 %v1580_v29 }
 0x27d   :  { %1667 = vmatprep.subr.mxu1 %v1579_v22 }
 0x280   :  { %1668 = vmatpush2.xpose.msra.mxu1 %v1578_v47 }
 0x281   :  { %1669 = vmatprep.subr.mxu1 %v1577_v51 }
 0x284   :  { %1670 = vmatpush2.xpose.msra.mxu1 %v1576_v36 }
 0x285   :  { %1671 = vmatprep.subr.mxu1 %v1575_v49 }
 0x288   :  { %1672 = vmatpush2.xpose.msra.mxu1 %v1574_v9 }
 0x289   :  { %1673 = vmatprep.subr.mxu1 %v1573_v54 }
 0x28c   :  { %1674 = vmatpush2.xpose.msra.mxu1 %v1572_v17 }
 0x28d   :  { %1675 = vmatprep.subr.mxu1 %v1571_v27 }
 0x290   :  { %1676 = vmatpush2.xpose.msra.mxu1 %v1570_v6 }
 0x293   :  { %1678 = vmatmul.mubr.f32.vlgmr.msra.gmra.mxu1 %v1606_v32 }
 0x353   :  { %v1679_v24 = vpop.f32.mrf.mxu1 }
 0x355   :  { %v1681_v59 = vpop.f32.mrf.mxu1 }
 0x356   :  { %v1686_v63 = vcombine.low %v1679_v24, %v1681_v59 }
 0x358   :  { %v1693_v23 = vrot.slane %v1686_v63, %v1692_v61 }
 0x35a   :  { %v1700_v8 = vrot.slane %v1693_v23, %v1692_v61 }
 0x35c   :  { %1706 = vst.msk [vmem:[#allocation2] sm:$0x3] %vm1704_vm2, %v1700_v8 }
 0x35d   :  { %1801 = shalt.err (!%p1798_p4)
}
 0x35e   :  { %1716 = dma.vmem_to_hbm [thread:$0]  %s1714_s25, 32, %s2855_s8, [#allocation3]  }
 0x35f   :  { %1810 = dma.done.wait [#allocation3], 32  }
 0x360   :  { %1811 = vsyncadd [#allocation3], 4294967264 }
 0x361   :  { %1720 = vsyncpa [#allocation3], 1 }

</bundles_post_ra>
